<compile_context>
chip_gen: v5e
topology: v5e:2x2
jax: 0.10.0
libtpu: 0.0.40
codegen_flags: <defaults>
</compile_context>

<pallas_src>
import functools
import math

import jax
import jax.numpy as jnp
from jax.experimental import pallas as pl
from jax.experimental.pallas import tpu as pltpu


# ------------------------------ tiling helper ------------------------------

def _pick_tile(dim, target, gran):
    """Largest tile <= target that divides `dim` and is a multiple of `gran`,
    or the full dim when dim <= target.  Falls back to the full dim if no
    aligned divisor exists (TODO(synk): pad + mask instead)."""
    if dim <= target:
        return dim
    t = (target // gran) * gran
    while t >= gran:
        if dim % t == 0:
            return t
        t -= gran
    return dim


# -------------------- fused LayerNorm + Linear (+gelu) ---------------------

def _ln_linear_kernel(x_ref, g_ref, bln_ref, w_ref, b_ref, o_ref, xn_sc,
                      *, activation, eps):
    # Cache the LayerNorm'd, bf16-cast row tile once per row tile (j == 0)
    # and reuse it across all N tiles.
    @pl.when(pl.program_id(1) == 0)
    def _():
        x = x_ref[...].astype(jnp.float32)
        mu = jnp.mean(x, axis=-1, keepdims=True)
        var = jnp.mean(jnp.square(x - mu), axis=-1, keepdims=True)
        xn = (x - mu) * jax.lax.rsqrt(var + eps) * g_ref[...] + bln_ref[...]
        xn_sc[...] = xn.astype(jnp.bfloat16)

    y = jnp.dot(xn_sc[...], w_ref[...], preferred_element_type=jnp.float32)
    y = y + b_ref[...]
    if activation == "gelu_new":
        # GPT-2 "gelu_new" (tanh approximation), kept in f32.
        y = 0.5 * y * (1.0 + jnp.tanh(0.7978845608028654
                                      * (y + 0.044715 * y * y * y)))
    o_ref[...] = y.astype(o_ref.dtype)


def ln_linear(x, ln_g, ln_b, w, b, *, activation=None, eps=1e-5,
              out_dtype=jnp.bfloat16, tm_target=256, tn_target=512):
    """y = LN(x) @ w + b [+gelu].  x:(M,K) f32, w:(K,N) bf16.  K kept whole so
    the fused LayerNorm sees full rows; tiled over (M, N)."""
    M, K = x.shape
    N = w.shape[1]
    tm = _pick_tile(M, tm_target, 8)
    tn = _pick_tile(N, tn_target, 128)
    kern = functools.partial(_ln_linear_kernel, activation=activation, eps=eps)
    return pl.pallas_call(
        kern,
        out_shape=jax.ShapeDtypeStruct((M, N), out_dtype),
        grid=(M // tm, N // tn),
        in_specs=[pl.BlockSpec((tm, K), lambda i, j: (i, 0)),
                  pl.BlockSpec((1, K), lambda i, j: (0, 0)),
                  pl.BlockSpec((1, K), lambda i, j: (0, 0)),
                  pl.BlockSpec((K, tn), lambda i, j: (0, j)),
                  pl.BlockSpec((1, tn), lambda i, j: (0, j))],
        out_specs=pl.BlockSpec((tm, tn), lambda i, j: (i, j)),
        scratch_shapes=[pltpu.VMEM((tm, K), jnp.bfloat16)],
        compiler_params=pltpu.CompilerParams(
            dimension_semantics=("parallel", "arbitrary")),
    )(x.astype(jnp.float32),
      ln_g.reshape(1, K).astype(jnp.float32),
      ln_b.reshape(1, K).astype(jnp.float32),
      w.astype(jnp.bfloat16),
      b.reshape(1, N).astype(jnp.float32))


# ------------------- K-tiled Linear (+residual), no LN ---------------------

def _linear_acc_kernel(*refs, has_res):
    it = iter(refs)
    x_ref = next(it)
    w_ref = next(it)
    b_ref = next(it)
    r_ref = next(it) if has_res else None
    o_ref = next(it)
    acc_ref = next(it)

    k = pl.program_id(2)

    @pl.when(k == 0)
    def _():
        acc_ref[...] = jnp.zeros(acc_ref.shape, acc_ref.dtype)

    acc_ref[...] += jnp.dot(x_ref[...].astype(jnp.bfloat16), w_ref[...],
                            preferred_element_type=jnp.float32)

    @pl.when(k == pl.num_programs(2) - 1)
    def _():
        y = acc_ref[...] + b_ref[...]
        if has_res:
            y = y + r_ref[...].astype(jnp.float32)
        o_ref[...] = y.astype(o_ref.dtype)


def linear_acc(x, w, b, *, residual=None, out_dtype=jnp.float32,
               tm_target=256, tn_target=512, tk_target=512):
    """y = x @ w + b [+residual].  x streamed in bf16; f32 VMEM accumulator
    over a K grid axis (pl.when init/finalize)."""
    M, K = x.shape
    N = w.shape[1]
    tm = _pick_tile(M, tm_target, 8)
    tn = _pick_tile(N, tn_target, 128)
    tk = _pick_tile(K, tk_target, 128)
    has_res = residual is not None

    inputs = [x.astype(jnp.bfloat16), w.astype(jnp.bfloat16),
              b.reshape(1, N).astype(jnp.float32)]
    in_specs = [pl.BlockSpec((tm, tk), lambda i, j, k: (i, k)),
                pl.BlockSpec((tk, tn), lambda i, j, k: (k, j)),
                pl.BlockSpec((1, tn), lambda i, j, k: (0, j))]
    if has_res:
        inputs.append(residual.astype(jnp.float32))
        in_specs.append(pl.BlockSpec((tm, tn), lambda i, j, k: (i, j)))

    kern = functools.partial(_linear_acc_kernel, has_res=has_res)
    return pl.pallas_call(
        kern,
        out_shape=jax.ShapeDtypeStruct((M, N), out_dtype),
        grid=(M // tm, N // tn, K // tk),
        in_specs=in_specs,
        out_specs=pl.BlockSpec((tm, tn), lambda i, j, k: (i, j)),
        scratch_shapes=[pltpu.VMEM((tm, tn), jnp.float32)],
        compiler_params=pltpu.CompilerParams(
            dimension_semantics=("parallel", "parallel", "arbitrary")),
    )(*inputs)


# --------------------------- flash attention --------------------------------

def _flash_attn_kernel(q_ref, k_ref, v_ref, o_ref, m_sc, l_sc, acc_sc,
                       *, scale, past_len):
    kv = pl.program_id(3)

    @pl.when(kv == 0)
    def _():
        m_sc[...] = jnp.full(m_sc.shape, -jnp.inf, m_sc.dtype)
        l_sc[...] = jnp.zeros(l_sc.shape, l_sc.dtype)
        acc_sc[...] = jnp.zeros(acc_sc.shape, acc_sc.dtype)

    q = q_ref[0, 0]                                    # (tq, hd) bf16
    k = k_ref[0, 0]                                    # (tk, hd) bf16
    v = v_ref[0, 0]                                    # (tk, hd) bf16
    tq, tk = q.shape[0], k.shape[0]

    # Contract last dims directly (no in-kernel transpose relayout).
    s = jax.lax.dot_general(q, k, (((1,), (1,)), ((), ())),
                            preferred_element_type=jnp.float32) * scale
    qpos = (past_len + pl.program_id(2) * tq
            + jax.lax.broadcasted_iota(jnp.int32, s.shape, 0))
    kpos = kv * tk + jax.lax.broadcasted_iota(jnp.int32, s.shape, 1)
    s = jnp.where(kpos <= qpos, s, -1e30)

    m_new = jnp.maximum(m_sc[...], jnp.max(s, axis=-1, keepdims=True))
    alpha = jnp.exp(m_sc[...] - m_new)
    p = jnp.exp(s - m_new)
    l_sc[...] = alpha * l_sc[...] + jnp.sum(p, axis=-1, keepdims=True)
    acc_sc[...] = alpha * acc_sc[...] + jnp.dot(
        p.astype(jnp.bfloat16), v, preferred_element_type=jnp.float32)
    m_sc[...] = m_new

    @pl.when(kv == pl.num_programs(3) - 1)
    def _():
        inv = pl.reciprocal(l_sc[...], approx=True)
        o_ref[0, 0] = (acc_sc[...] * inv).astype(o_ref.dtype)


def flash_attention(q, k, v, *, past_len, tq_target=128, tk_target=512):
    """q:(B,H,Tq,hd), k/v:(B,H,Tk,hd) bf16 -> (B,H,Tq,hd) bf16.
    Causal with a `past_len` prefix; online softmax over Tk tiles."""
    B, H, Tq, hd = q.shape
    Tk = k.shape[2]
    tq = _pick_tile(Tq, tq_target, 8)
    tk = _pick_tile(Tk, tk_target, 128)
    scale = 1.0 / math.sqrt(hd)
    kern = functools.partial(_flash_attn_kernel, scale=scale, past_len=past_len)
    return pl.pallas_call(
        kern,
        out_shape=jax.ShapeDtypeStruct((B, H, Tq, hd), jnp.bfloat16),
        grid=(B, H, Tq // tq, Tk // tk),
        in_specs=[pl.BlockSpec((1, 1, tq, hd), lambda b, h, qi, kv: (b, h, qi, 0)),
                  pl.BlockSpec((1, 1, tk, hd), lambda b, h, qi, kv: (b, h, kv, 0)),
                  pl.BlockSpec((1, 1, tk, hd), lambda b, h, qi, kv: (b, h, kv, 0))],
        out_specs=pl.BlockSpec((1, 1, tq, hd), lambda b, h, qi, kv: (b, h, qi, 0)),
        scratch_shapes=[pltpu.VMEM((tq, 1), jnp.float32),
                        pltpu.VMEM((tq, 1), jnp.float32),
                        pltpu.VMEM((tq, hd), jnp.float32)],
        compiler_params=pltpu.CompilerParams(
            dimension_semantics=("parallel", "parallel", "parallel", "arbitrary")),
    )(q.astype(jnp.bfloat16), k.astype(jnp.bfloat16), v.astype(jnp.bfloat16))


# ----------- fused LN_f + tied LM head + cross-entropy (+argmax) ------------

def _lmhead_ce_kernel(h_ref, g_ref, bln_ref, w_ref, lbl_ref, acc_ref,
                      xn_sc, m_sc, l_sc, lg_sc, av_sc, ai_sc, *, eps):
    i = pl.program_id(0)
    v = pl.program_id(1)
    tv = w_ref.shape[1]

    @pl.when((i == 0) & (v == 0))
    def _():
        acc_ref[...] = jnp.zeros(acc_ref.shape, acc_ref.dtype)

    @pl.when(v == 0)
    def _():
        x = h_ref[...].astype(jnp.float32)
        mu = jnp.mean(x, axis=-1, keepdims=True)
        var = jnp.mean(jnp.square(x - mu), axis=-1, keepdims=True)
        xn = (x - mu) * jax.lax.rsqrt(var + eps) * g_ref[...] + bln_ref[...]
        xn_sc[...] = xn.astype(jnp.bfloat16)
        m_sc[...] = jnp.full(m_sc.shape, -jnp.inf, m_sc.dtype)
        l_sc[...] = jnp.zeros(l_sc.shape, l_sc.dtype)
        lg_sc[...] = jnp.zeros(lg_sc.shape, lg_sc.dtype)
        av_sc[...] = jnp.full(av_sc.shape, -jnp.inf, av_sc.dtype)
        ai_sc[...] = jnp.zeros(ai_sc.shape, ai_sc.dtype)

    # logits for this vocab chunk; never written to HBM.
    logits = jnp.dot(xn_sc[...], w_ref[...], preferred_element_type=jnp.float32)
    labels = lbl_ref[...]                                    # (tm, 1) int32
    col = v * tv + jax.lax.broadcasted_iota(jnp.int32, logits.shape, 1)

    # online logsumexp
    cmax = jnp.max(logits, axis=-1, keepdims=True)
    m_new = jnp.maximum(m_sc[...], cmax)
    l_sc[...] = (l_sc[...] * jnp.exp(m_sc[...] - m_new)
                 + jnp.sum(jnp.exp(logits - m_new), axis=-1, keepdims=True))
    m_sc[...] = m_new

    # label logit (at most one matching column over all chunks)
    lg_sc[...] = lg_sc[...] + jnp.sum(
        jnp.where(col == labels, logits, 0.0), axis=-1, keepdims=True)

    # running argmax (first occurrence on ties)
    big = jnp.int32(2 ** 30)
    cidx = jnp.min(jnp.where(logits == cmax, col, big), axis=-1, keepdims=True)
    better = cmax > av_sc[...]
    ai_sc[...] = jnp.where(better, cidx, ai_sc[...])
    av_sc[...] = jnp.maximum(av_sc[...], cmax)

    @pl.when(v == pl.num_programs(1) - 1)
    def _():
        lse = m_sc[...] + jnp.log(l_sc[...])
        valid = labels != -1
        loss_rows = jnp.where(valid, lse - lg_sc[...], 0.0)
        correct_rows = (ai_sc[...] == labels).astype(jnp.float32)
        # Lane-dense accumulator: lane 0 = loss sum, lane 1 = correct count.
        lane = jax.lax.broadcasted_iota(jnp.int32, acc_ref.shape, 1)
        upd = jnp.where(lane == 0, jnp.sum(loss_rows),
                        jnp.where(lane == 1, jnp.sum(correct_rows), 0.0))
        acc_ref[...] = acc_ref[...] + upd


def lm_head_cross_entropy(hidden2d, labels1d, ln_g, ln_b, wte_T, *, eps=1e-5,
                          tm_target=256, tv_target=512):
    """Returns (sum of per-token CE loss over valid labels, #argmax-correct)."""
    M, D = hidden2d.shape
    V = wte_T.shape[1]
    tm = _pick_tile(M, tm_target, 8)
    tv = _pick_tile(V, tv_target, 128)
    kern = functools.partial(_lmhead_ce_kernel, eps=eps)
    sums = pl.pallas_call(
        kern,
        out_shape=jax.ShapeDtypeStruct((1, 128), jnp.float32),
        grid=(M // tm, V // tv),
        in_specs=[pl.BlockSpec((tm, D), lambda i, v: (i, 0)),
                  pl.BlockSpec((1, D), lambda i, v: (0, 0)),
                  pl.BlockSpec((1, D), lambda i, v: (0, 0)),
                  pl.BlockSpec((D, tv), lambda i, v: (0, v)),
                  pl.BlockSpec((tm, 1), lambda i, v: (i, 0))],
        out_specs=pl.BlockSpec((1, 128), lambda i, v: (0, 0)),
        scratch_shapes=[pltpu.VMEM((tm, D), jnp.bfloat16),
                        pltpu.VMEM((tm, 1), jnp.float32),
                        pltpu.VMEM((tm, 1), jnp.float32),
                        pltpu.VMEM((tm, 1), jnp.float32),
                        pltpu.VMEM((tm, 1), jnp.float32),
                        pltpu.VMEM((tm, 1), jnp.int32)],
        compiler_params=pltpu.CompilerParams(
            dimension_semantics=("arbitrary", "arbitrary")),
    )(hidden2d.astype(jnp.float32),
      ln_g.reshape(1, D).astype(jnp.float32),
      ln_b.reshape(1, D).astype(jnp.float32),
      wte_T.astype(jnp.bfloat16),
      labels1d.reshape(M, 1).astype(jnp.int32))
    return sums[0, 0], sums[0, 1]


# -------------------------- GPT-2 model (glue) ------------------------------

def init_gpt2_params(key, *, vocab, n_pos, n_embd, n_layer):
    std = 0.02
    keys = jax.random.split(key, 2 + 4 * n_layer)
    wte = jax.random.normal(keys[0], (vocab, n_embd), jnp.float32) * std
    params = {
        "wte": wte,                                  # f32 for embedding gather
        "wte_T": wte.T.astype(jnp.bfloat16),         # pre-transposed tied LM head
        "wpe": jax.random.normal(keys[1], (n_pos, n_embd), jnp.float32) * std,
        "lnf_g": jnp.ones((n_embd,), jnp.float32),
        "lnf_b": jnp.zeros((n_embd,), jnp.float32),
        "blocks": [],
    }
    for li in range(n_layer):
        k0, k1, k2, k3 = keys[2 + 4 * li: 2 + 4 * (li + 1)]
        params["blocks"].append({
            "ln1_g": jnp.ones((n_embd,), jnp.float32),
            "ln1_b": jnp.zeros((n_embd,), jnp.float32),
            "c_attn_w": (jax.random.normal(k0, (n_embd, 3 * n_embd), jnp.float32)
                         * std).astype(jnp.bfloat16),
            "c_attn_b": jnp.zeros((3 * n_embd,), jnp.float32),
            "c_proj_w": (jax.random.normal(k1, (n_embd, n_embd), jnp.float32)
                         * std).astype(jnp.bfloat16),
            "c_proj_b": jnp.zeros((n_embd,), jnp.float32),
            "ln2_g": jnp.ones((n_embd,), jnp.float32),
            "ln2_b": jnp.zeros((n_embd,), jnp.float32),
            "c_fc_w": (jax.random.normal(k2, (n_embd, 4 * n_embd), jnp.float32)
                       * std).astype(jnp.bfloat16),
            "c_fc_b": jnp.zeros((4 * n_embd,), jnp.float32),
            "mlp_proj_w": (jax.random.normal(k3, (4 * n_embd, n_embd), jnp.float32)
                           * std).astype(jnp.bfloat16),
            "mlp_proj_b": jnp.zeros((n_embd,), jnp.float32),
        })
    return params


def gpt2_model(params, n_head, inputs_embeds=None, input_ids=None, past=None):
    """GPT2LMHeadModel transformer stack.  Returns (final hidden pre-LN_f,
    presents).  The LM head is fused with cross-entropy downstream."""
    if inputs_embeds is None:
        inputs_embeds = params["wte"][input_ids]        # (B, T, D) gather (glue)
    B, T, D = inputs_embeds.shape
    past_len = 0 if past is None else past[0][0].shape[2]
    positions = past_len + jnp.arange(T)
    hidden = inputs_embeds.astype(jnp.float32) + params["wpe"][positions][None]
    H = n_head
    hd = D // H
    presents = []
    for li, blk in enumerate(params["blocks"]):
        h2d = hidden.reshape(B * T, D)                  # residual stream (f32)
        # --- attention: fused LN1 + c_attn -> bf16 qkv ---
        qkv = ln_linear(h2d, blk["ln1_g"], blk["ln1_b"],
                        blk["c_attn_w"], blk["c_attn_b"])        # (B*T, 3D) bf16
        qkv = qkv.reshape(B, T, 3, H, hd)
        q = qkv[:, :, 0].transpose(0, 2, 1, 3)                   # (B, H, T, hd)
        k = qkv[:, :, 1].transpose(0, 2, 1, 3)
        v = qkv[:, :, 2].transpose(0, 2, 1, 3)
        if past is not None:
            pk, pv = past[li]
            k = jnp.concatenate([pk, k], axis=2)
            v = jnp.concatenate([pv, v], axis=2)
        presents.append((k, v))
        a = flash_attention(q, k, v, past_len=past_len)          # (B,H,T,hd) bf16
        a2d = a.transpose(0, 2, 1, 3).reshape(B * T, D)          # bf16
        # c_proj with fused residual add (residual stream stays f32)
        hidden = linear_acc(a2d, blk["c_proj_w"], blk["c_proj_b"],
                            residual=h2d).reshape(B, T, D)
        # --- MLP: fused LN2 + c_fc + gelu -> bf16, then proj + residual ---
        h2d = hidden.reshape(B * T, D)
        mfc = ln_linear(h2d, blk["ln2_g"], blk["ln2_b"],
                        blk["c_fc_w"], blk["c_fc_b"],
                        activation="gelu_new")                   # (B*T, 4D) bf16
        hidden = linear_acc(mfc, blk["mlp_proj_w"], blk["mlp_proj_b"],
                            residual=h2d).reshape(B, T, D)
    return hidden, presents


def gpt2_decoder_forward(params, hidden_state, input_ids_dec, lm_labels, *, n_head):
    """Semantics of GPT2Decoder.forward."""
    B, L, F = hidden_state.shape                 # (B, latent, num_feature)
    # permute(0,2,1) -> adapter Linear(latent -> n_embd) -> permute(0,2,1)
    h = hidden_state.transpose(0, 2, 1).reshape(B * F, L)
    h = linear_acc(h, params["adapter_w"], params["adapter_b"])   # (B*F, n_embd) f32
    n_embd = h.shape[1]
    h3 = h.reshape(B, F, n_embd)
    hidden_adapted = h3.transpose(0, 2, 1)       # (B, n_embd, num_feature)

    # model_pre(inputs_embeds=hidden.permute(0,2,1))[-1] -> past_key_values
    _, context = gpt2_model(params["pre"], n_head, inputs_embeds=h3)
    # model_gpt(input_ids=input_ids_dec, past_key_values=context)
    final_hidden, _ = gpt2_model(params["gpt"], n_head,
                                 input_ids=input_ids_dec, past=context)
    Bq, T, D = final_hidden.shape

    # Fused LN_f + tied LM head + CE (+argmax correct): logits never hit HBM.
    loss_sum, correct_sum = lm_head_cross_entropy(
        final_hidden.reshape(Bq * T, D), lm_labels.reshape(-1),
        params["gpt"]["lnf_g"], params["gpt"]["lnf_b"], params["gpt"]["wte_T"])
    total = jnp.sum((lm_labels != -1).astype(jnp.float32))
    loss = loss_sum / total
    correct = correct_sum.astype(jnp.int32)
    return loss, correct, total, hidden_adapted


# --------------------------------- main ------------------------------------

if __name__ == "__main__":
    B, LATENT, NUM_FEATURE = 2, 16, 4
    N_EMBD, N_HEAD, N_LAYER = 32, 2, 2
    VOCAB, SEQ_LEN, N_POS = 128, 8, 32

    key = jax.random.PRNGKey(0)
    k_pre, k_gpt, k_ad, k_h, k_ids, k_lbl = jax.random.split(key, 6)

    params = {
        "adapter_w": (jax.random.normal(k_ad, (LATENT, N_EMBD), jnp.float32)
                      * 0.02).astype(jnp.bfloat16),
        "adapter_b": jnp.zeros((N_EMBD,), jnp.float32),
        "pre": init_gpt2_params(k_pre, vocab=VOCAB, n_pos=N_POS,
                                n_embd=N_EMBD, n_layer=N_LAYER),
        "gpt": init_gpt2_params(k_gpt, vocab=VOCAB, n_pos=N_POS,
                                n_embd=N_EMBD, n_layer=N_LAYER),
    }

    hidden_state = jax.random.normal(k_h, (B, LATENT, NUM_FEATURE), jnp.float32)
    input_ids_dec = jax.random.randint(k_ids, (B, SEQ_LEN), 0, VOCAB, dtype=jnp.int32)
    lm_labels = jax.random.randint(k_lbl, (B, SEQ_LEN), 0, VOCAB, dtype=jnp.int32)
    lm_labels = lm_labels.at[:, -2:].set(-1)   # some ignore_index positions

    fwd = jax.jit(functools.partial(gpt2_decoder_forward, n_head=N_HEAD))
    loss, correct, total, h_out = fwd(params, hidden_state, input_ids_dec, lm_labels)
    jax.block_until_ready((loss, correct, total, h_out))

    assert h_out.shape == (B, N_EMBD, NUM_FEATURE)
    assert loss.shape == () and total.shape == () and correct.shape == ()
    assert bool(jnp.isfinite(loss))
    print("KERNEL_OK")
</pallas_src>

<mosaic_0001>
module attributes {stable_mosaic.version = 11 : i64} {
  func.func @_ln_linear_kernel(%arg0: i32, %arg1: i32, %arg2: memref<16x32xf32, #tpu.memory_space<vmem>>, %arg3: memref<1x32xf32, #tpu.memory_space<vmem>>, %arg4: memref<1x32xf32, #tpu.memory_space<vmem>>, %arg5: memref<32x96xbf16, #tpu.memory_space<vmem>>, %arg6: memref<1x96xf32, #tpu.memory_space<vmem>>, %arg7: memref<16x96xbf16, #tpu.memory_space<vmem>>, %arg8: memref<16x32xbf16, #tpu.memory_space<vmem>>) attributes {dimension_semantics = [#tpu.dimension_semantics<parallel>, #tpu.dimension_semantics<arbitrary>], iteration_bounds = array<i64: 1, 1>, scalar_prefetch = 0 : i64, scratch_operands = 1 : i64, tpu.core_type = #tpu.core_type<tc>, window_params = [{transform_indices = @transform_0, window_bounds = array<i64: 16, 32>}, {pipeline_mode = #tpu.pipeline_mode<synchronous>, transform_indices = @transform_1, window_bounds = array<i64: 1, 32>}, {pipeline_mode = #tpu.pipeline_mode<synchronous>, transform_indices = @transform_2, window_bounds = array<i64: 1, 32>}, {transform_indices = @transform_3, window_bounds = array<i64: 32, 96>}, {transform_indices = @transform_4, window_bounds = array<i64: 1, 96>}, {transform_indices = @transform_5, window_bounds = array<i64: 16, 96>}]} {
    %c0_i32 = arith.constant 0 : i32
    %0 = arith.cmpi eq, %arg1, %c0_i32 : i32
    %1 = arith.extui %0 : i1 to i32
    %c0_i32_0 = arith.constant 0 : i32
    %2 = arith.cmpi ne, %1, %c0_i32_0 : i32
    scf.if %2 {
      %c0_8 = arith.constant 0 : index
      %c0_9 = arith.constant 0 : index
      %11 = vector.load %arg2[%c0_8, %c0_9] : memref<16x32xf32, #tpu.memory_space<vmem>>, vector<16x32xf32>
      %cst_10 = arith.constant dense<0.000000e+00> : vector<16xf32>
      %12 = vector.multi_reduction <add>, %11, %cst_10 [1] : vector<16x32xf32> to vector<16xf32>
      %13 = vector.shape_cast %12 : vector<16xf32> to vector<16x1xf32>
      %cst_11 = arith.constant 3.200000e+01 : f32
      %14 = vector.broadcast %cst_11 : f32 to vector<16x1xf32>
      %15 = arith.divf %13, %14 : vector<16x1xf32>
      %16 = vector.broadcast %15 : vector<16x1xf32> to vector<16x32xf32>
      %17 = arith.subf %11, %16 : vector<16x32xf32>
      %18 = arith.mulf %17, %17 : vector<16x32xf32>
      %cst_12 = arith.constant dense<0.000000e+00> : vector<16xf32>
      %19 = vector.multi_reduction <add>, %18, %cst_12 [1] : vector<16x32xf32> to vector<16xf32>
      %20 = vector.shape_cast %19 : vector<16xf32> to vector<16x1xf32>
      %cst_13 = arith.constant 3.200000e+01 : f32
      %21 = vector.broadcast %cst_13 : f32 to vector<16x1xf32>
      %22 = arith.divf %20, %21 : vector<16x1xf32>
      %23 = vector.broadcast %15 : vector<16x1xf32> to vector<16x32xf32>
      %24 = arith.subf %11, %23 : vector<16x32xf32>
      %cst_14 = arith.constant 9.99999974E-6 : f32
      %25 = vector.broadcast %cst_14 : f32 to vector<16x1xf32>
      %26 = arith.addf %22, %25 : vector<16x1xf32>
      %27 = math.rsqrt %26 : vector<16x1xf32>
      %28 = vector.broadcast %27 : vector<16x1xf32> to vector<16x32xf32>
      %29 = arith.mulf %24, %28 : vector<16x32xf32>
      %c0_15 = arith.constant 0 : index
      %c0_16 = arith.constant 0 : index
      %30 = vector.load %arg3[%c0_15, %c0_16] : memref<1x32xf32, #tpu.memory_space<vmem>>, vector<1x32xf32>
      %31 = vector.broadcast %30 : vector<1x32xf32> to vector<16x32xf32>
      %32 = arith.mulf %29, %31 : vector<16x32xf32>
      %c0_17 = arith.constant 0 : index
      %c0_18 = arith.constant 0 : index
      %33 = vector.load %arg4[%c0_17, %c0_18] : memref<1x32xf32, #tpu.memory_space<vmem>>, vector<1x32xf32>
      %34 = vector.broadcast %33 : vector<1x32xf32> to vector<16x32xf32>
      %35 = arith.addf %32, %34 : vector<16x32xf32>
      %36 = arith.truncf %35 : vector<16x32xf32> to vector<16x32xbf16>
      %c0_19 = arith.constant 0 : index
      %c0_20 = arith.constant 0 : index
      %37 = vector.load %arg8[%c0_19, %c0_20] : memref<16x32xbf16, #tpu.memory_space<vmem>>, vector<16x32xbf16>
      tpu.vector_store %arg8[%c0_19, %c0_20], %36 {strides = array<i32>} : memref<16x32xbf16, #tpu.memory_space<vmem>>, vector<16x32xbf16>,
    } else {
    }
    %c0 = arith.constant 0 : index
    %c0_1 = arith.constant 0 : index
    %3 = vector.load %arg8[%c0, %c0_1] : memref<16x32xbf16, #tpu.memory_space<vmem>>, vector<16x32xbf16>
    %c0_2 = arith.constant 0 : index
    %c0_3 = arith.constant 0 : index
    %4 = vector.load %arg5[%c0_2, %c0_3] : memref<32x96xbf16, #tpu.memory_space<vmem>>, vector<32x96xbf16>
    %cst = arith.constant dense<0.000000e+00> : vector<16x96xf32>
    %5 = tpu.matmul %3, %4, %cst {dimension_numbers = #tpu.dot_dimension_numbers<[1], [0], [0], [1], [0, 0, 1, 1], [], []>} : vector<16x32xbf16>, vector<32x96xbf16>, vector<16x96xf32> -> vector<16x96xf32>
    %c0_4 = arith.constant 0 : index
    %c0_5 = arith.constant 0 : index
    %6 = vector.load %arg6[%c0_4, %c0_5] : memref<1x96xf32, #tpu.memory_space<vmem>>, vector<1x96xf32>
    %7 = vector.broadcast %6 : vector<1x96xf32> to vector<16x96xf32>
    %8 = arith.addf %5, %7 : vector<16x96xf32>
    %9 = arith.truncf %8 : vector<16x96xf32> to vector<16x96xbf16>
    %c0_6 = arith.constant 0 : index
    %c0_7 = arith.constant 0 : index
    %10 = vector.load %arg7[%c0_6, %c0_7] : memref<16x96xbf16, #tpu.memory_space<vmem>>, vector<16x96xbf16>
    tpu.vector_store %arg7[%c0_6, %c0_7], %9 {strides = array<i32>} : memref<16x96xbf16, #tpu.memory_space<vmem>>, vector<16x96xbf16>,
    return
  }
  func.func @transform_0(%arg0: i32, %arg1: i32) -> (i32, i32) {
    %c0_i32 = arith.constant 0 : i32
    %c0_i32_0 = arith.constant 0 : i32
    return %arg0, %c0_i32 : i32, i32
  }
  func.func @transform_1(%arg0: i32, %arg1: i32) -> (i32, i32) {
    %c0_i32 = arith.constant 0 : i32
    %c0_i32_0 = arith.constant 0 : i32
    %c0_i32_1 = arith.constant 0 : i32
    return %c0_i32, %c0_i32_0 : i32, i32
  }
  func.func @transform_2(%arg0: i32, %arg1: i32) -> (i32, i32) {
    %c0_i32 = arith.constant 0 : i32
    %c0_i32_0 = arith.constant 0 : i32
    %c0_i32_1 = arith.constant 0 : i32
    return %c0_i32, %c0_i32_0 : i32, i32
  }
  func.func @transform_3(%arg0: i32, %arg1: i32) -> (i32, i32) {
    %c0_i32 = arith.constant 0 : i32
    %c0_i32_0 = arith.constant 0 : i32
    return %c0_i32, %arg1 : i32, i32
  }
  func.func @transform_4(%arg0: i32, %arg1: i32) -> (i32, i32) {
    %c0_i32 = arith.constant 0 : i32
    %c0_i32_0 = arith.constant 0 : i32
    return %c0_i32, %arg1 : i32, i32
  }
  func.func @transform_5(%arg0: i32, %arg1: i32) -> (i32, i32) {
    %c0_i32 = arith.constant 0 : i32
    return %arg0, %arg1 : i32, i32
  }
}

module attributes {stable_mosaic.version = 11 : i64} {
  func.func @_linear_acc_kernel(%arg0: i32, %arg1: i32, %arg2: i32, %arg3: memref<8x16xbf16, #tpu.memory_space<vmem>>, %arg4: memref<16x32xbf16, #tpu.memory_space<vmem>>, %arg5: memref<1x32xf32, #tpu.memory_space<vmem>>, %arg6: memref<8x32xf32, #tpu.memory_space<vmem>>, %arg7: memref<8x32xf32, #tpu.memory_space<vmem>>) attributes {dimension_semantics = [#tpu.dimension_semantics<parallel>, #tpu.dimension_semantics<parallel>, #tpu.dimension_semantics<arbitrary>], iteration_bounds = array<i64: 1, 1, 1>, scalar_prefetch = 0 : i64, scratch_operands = 1 : i64, tpu.core_type = #tpu.core_type<tc>, window_params = [{transform_indices = @transform_0, window_bounds = array<i64: 8, 16>}, {transform_indices = @transform_1, window_bounds = array<i64: 16, 32>}, {transform_indices = @transform_2, window_bounds = array<i64: 1, 32>}, {transform_indices = @transform_3, window_bounds = array<i64: 8, 32>}]} {
    %c0_i32 = arith.constant 0 : i32
    %0 = arith.cmpi eq, %arg2, %c0_i32 : i32
    %1 = arith.extui %0 : i1 to i32
    %c0_i32_0 = arith.constant 0 : i32
    %2 = arith.cmpi ne, %1, %c0_i32_0 : i32
    scf.if %2 {
      %cst_10 = arith.constant 0.000000e+00 : f32
      %12 = vector.broadcast %cst_10 : f32 to vector<8x32xf32>
      %c0_11 = arith.constant 0 : index
      %c0_12 = arith.constant 0 : index
      %13 = vector.load %arg7[%c0_11, %c0_12] : memref<8x32xf32, #tpu.memory_space<vmem>>, vector<8x32xf32>
      tpu.vector_store %arg7[%c0_11, %c0_12], %12 {strides = array<i32>} : memref<8x32xf32, #tpu.memory_space<vmem>>, vector<8x32xf32>,
    } else {
    }
    %c0 = arith.constant 0 : index
    %c0_1 = arith.constant 0 : index
    %3 = vector.load %arg7[%c0, %c0_1] : memref<8x32xf32, #tpu.memory_space<vmem>>, vector<8x32xf32>
    %c0_2 = arith.constant 0 : index
    %c0_3 = arith.constant 0 : index
    %4 = vector.load %arg3[%c0_2, %c0_3] : memref<8x16xbf16, #tpu.memory_space<vmem>>, vector<8x16xbf16>
    %c0_4 = arith.constant 0 : index
    %c0_5 = arith.constant 0 : index
    %5 = vector.load %arg4[%c0_4, %c0_5] : memref<16x32xbf16, #tpu.memory_space<vmem>>, vector<16x32xbf16>
    %cst = arith.constant dense<0.000000e+00> : vector<8x32xf32>
    %6 = tpu.matmul %4, %5, %cst {dimension_numbers = #tpu.dot_dimension_numbers<[1], [0], [0], [1], [0, 0, 1, 1], [], []>} : vector<8x16xbf16>, vector<16x32xbf16>, vector<8x32xf32> -> vector<8x32xf32>
    %7 = arith.addf %3, %6 : vector<8x32xf32>
    %c0_6 = arith.constant 0 : index
    %c0_7 = arith.constant 0 : index
    %8 = vector.load %arg7[%c0_6, %c0_7] : memref<8x32xf32, #tpu.memory_space<vmem>>, vector<8x32xf32>
    tpu.vector_store %arg7[%c0_6, %c0_7], %7 {strides = array<i32>} : memref<8x32xf32, #tpu.memory_space<vmem>>, vector<8x32xf32>,
    %c0_i32_8 = arith.constant 0 : i32
    %9 = arith.cmpi eq, %arg2, %c0_i32_8 : i32
    %10 = arith.extui %9 : i1 to i32
    %c0_i32_9 = arith.constant 0 : i32
    %11 = arith.cmpi ne, %10, %c0_i32_9 : i32
    scf.if %11 {
      %c0_10 = arith.constant 0 : index
      %c0_11 = arith.constant 0 : index
      %12 = vector.load %arg7[%c0_10, %c0_11] : memref<8x32xf32, #tpu.memory_space<vmem>>, vector<8x32xf32>
      %c0_12 = arith.constant 0 : index
      %c0_13 = arith.constant 0 : index
      %13 = vector.load %arg5[%c0_12, %c0_13] : memref<1x32xf32, #tpu.memory_space<vmem>>, vector<1x32xf32>
      %14 = vector.broadcast %13 : vector<1x32xf32> to vector<8x32xf32>
      %15 = arith.addf %12, %14 : vector<8x32xf32>
      %c0_14 = arith.constant 0 : index
      %c0_15 = arith.constant 0 : index
      %16 = vector.load %arg6[%c0_14, %c0_15] : memref<8x32xf32, #tpu.memory_space<vmem>>, vector<8x32xf32>
      tpu.vector_store %arg6[%c0_14, %c0_15], %15 {strides = array<i32>} : memref<8x32xf32, #tpu.memory_space<vmem>>, vector<8x32xf32>,
    } else {
    }
    return
  }
  func.func @transform_0(%arg0: i32, %arg1: i32, %arg2: i32) -> (i32, i32) {
    %c0_i32 = arith.constant 0 : i32
    return %arg0, %arg2 : i32, i32
  }
  func.func @transform_1(%arg0: i32, %arg1: i32, %arg2: i32) -> (i32, i32) {
    %c0_i32 = arith.constant 0 : i32
    return %arg2, %arg1 : i32, i32
  }
  func.func @transform_2(%arg0: i32, %arg1: i32, %arg2: i32) -> (i32, i32) {
    %c0_i32 = arith.constant 0 : i32
    %c0_i32_0 = arith.constant 0 : i32
    return %c0_i32, %arg1 : i32, i32
  }
  func.func @transform_3(%arg0: i32, %arg1: i32, %arg2: i32) -> (i32, i32) {
    %c0_i32 = arith.constant 0 : i32
    return %arg0, %arg1 : i32, i32
  }
}

module attributes {stable_mosaic.version = 11 : i64} {
  func.func @_ln_linear_kernel(%arg0: i32, %arg1: i32, %arg2: memref<8x32xf32, #tpu.memory_space<vmem>>, %arg3: memref<1x32xf32, #tpu.memory_space<vmem>>, %arg4: memref<1x32xf32, #tpu.memory_space<vmem>>, %arg5: memref<32x96xbf16, #tpu.memory_space<vmem>>, %arg6: memref<1x96xf32, #tpu.memory_space<vmem>>, %arg7: memref<8x96xbf16, #tpu.memory_space<vmem>>, %arg8: memref<8x32xbf16, #tpu.memory_space<vmem>>) attributes {dimension_semantics = [#tpu.dimension_semantics<parallel>, #tpu.dimension_semantics<arbitrary>], iteration_bounds = array<i64: 1, 1>, scalar_prefetch = 0 : i64, scratch_operands = 1 : i64, tpu.core_type = #tpu.core_type<tc>, window_params = [{transform_indices = @transform_0, window_bounds = array<i64: 8, 32>}, {pipeline_mode = #tpu.pipeline_mode<synchronous>, transform_indices = @transform_1, window_bounds = array<i64: 1, 32>}, {pipeline_mode = #tpu.pipeline_mode<synchronous>, transform_indices = @transform_2, window_bounds = array<i64: 1, 32>}, {transform_indices = @transform_3, window_bounds = array<i64: 32, 96>}, {transform_indices = @transform_4, window_bounds = array<i64: 1, 96>}, {transform_indices = @transform_5, window_bounds = array<i64: 8, 96>}]} {
    %c0_i32 = arith.constant 0 : i32
    %0 = arith.cmpi eq, %arg1, %c0_i32 : i32
    %1 = arith.extui %0 : i1 to i32
    %c0_i32_0 = arith.constant 0 : i32
    %2 = arith.cmpi ne, %1, %c0_i32_0 : i32
    scf.if %2 {
      %c0_8 = arith.constant 0 : index
      %c0_9 = arith.constant 0 : index
      %11 = vector.load %arg2[%c0_8, %c0_9] : memref<8x32xf32, #tpu.memory_space<vmem>>, vector<8x32xf32>
      %cst_10 = arith.constant dense<0.000000e+00> : vector<8xf32>
      %12 = vector.multi_reduction <add>, %11, %cst_10 [1] : vector<8x32xf32> to vector<8xf32>
      %13 = vector.shape_cast %12 : vector<8xf32> to vector<8x1xf32>
      %cst_11 = arith.constant 3.200000e+01 : f32
      %14 = vector.broadcast %cst_11 : f32 to vector<8x1xf32>
      %15 = arith.divf %13, %14 : vector<8x1xf32>
      %16 = vector.broadcast %15 : vector<8x1xf32> to vector<8x32xf32>
      %17 = arith.subf %11, %16 : vector<8x32xf32>
      %18 = arith.mulf %17, %17 : vector<8x32xf32>
      %cst_12 = arith.constant dense<0.000000e+00> : vector<8xf32>
      %19 = vector.multi_reduction <add>, %18, %cst_12 [1] : vector<8x32xf32> to vector<8xf32>
      %20 = vector.shape_cast %19 : vector<8xf32> to vector<8x1xf32>
      %cst_13 = arith.constant 3.200000e+01 : f32
      %21 = vector.broadcast %cst_13 : f32 to vector<8x1xf32>
      %22 = arith.divf %20, %21 : vector<8x1xf32>
      %23 = vector.broadcast %15 : vector<8x1xf32> to vector<8x32xf32>
      %24 = arith.subf %11, %23 : vector<8x32xf32>
      %cst_14 = arith.constant 9.99999974E-6 : f32
      %25 = vector.broadcast %cst_14 : f32 to vector<8x1xf32>
      %26 = arith.addf %22, %25 : vector<8x1xf32>
      %27 = math.rsqrt %26 : vector<8x1xf32>
      %28 = vector.broadcast %27 : vector<8x1xf32> to vector<8x32xf32>
      %29 = arith.mulf %24, %28 : vector<8x32xf32>
      %c0_15 = arith.constant 0 : index
      %c0_16 = arith.constant 0 : index
      %30 = vector.load %arg3[%c0_15, %c0_16] : memref<1x32xf32, #tpu.memory_space<vmem>>, vector<1x32xf32>
      %31 = vector.broadcast %30 : vector<1x32xf32> to vector<8x32xf32>
      %32 = arith.mulf %29, %31 : vector<8x32xf32>
      %c0_17 = arith.constant 0 : index
      %c0_18 = arith.constant 0 : index
      %33 = vector.load %arg4[%c0_17, %c0_18] : memref<1x32xf32, #tpu.memory_space<vmem>>, vector<1x32xf32>
      %34 = vector.broadcast %33 : vector<1x32xf32> to vector<8x32xf32>
      %35 = arith.addf %32, %34 : vector<8x32xf32>
      %36 = arith.truncf %35 : vector<8x32xf32> to vector<8x32xbf16>
      %c0_19 = arith.constant 0 : index
      %c0_20 = arith.constant 0 : index
      %37 = vector.load %arg8[%c0_19, %c0_20] : memref<8x32xbf16, #tpu.memory_space<vmem>>, vector<8x32xbf16>
      tpu.vector_store %arg8[%c0_19, %c0_20], %36 {strides = array<i32>} : memref<8x32xbf16, #tpu.memory_space<vmem>>, vector<8x32xbf16>,
    } else {
    }
    %c0 = arith.constant 0 : index
    %c0_1 = arith.constant 0 : index
    %3 = vector.load %arg8[%c0, %c0_1] : memref<8x32xbf16, #tpu.memory_space<vmem>>, vector<8x32xbf16>
    %c0_2 = arith.constant 0 : index
    %c0_3 = arith.constant 0 : index
    %4 = vector.load %arg5[%c0_2, %c0_3] : memref<32x96xbf16, #tpu.memory_space<vmem>>, vector<32x96xbf16>
    %cst = arith.constant dense<0.000000e+00> : vector<8x96xf32>
    %5 = tpu.matmul %3, %4, %cst {dimension_numbers = #tpu.dot_dimension_numbers<[1], [0], [0], [1], [0, 0, 1, 1], [], []>} : vector<8x32xbf16>, vector<32x96xbf16>, vector<8x96xf32> -> vector<8x96xf32>
    %c0_4 = arith.constant 0 : index
    %c0_5 = arith.constant 0 : index
    %6 = vector.load %arg6[%c0_4, %c0_5] : memref<1x96xf32, #tpu.memory_space<vmem>>, vector<1x96xf32>
    %7 = vector.broadcast %6 : vector<1x96xf32> to vector<8x96xf32>
    %8 = arith.addf %5, %7 : vector<8x96xf32>
    %9 = arith.truncf %8 : vector<8x96xf32> to vector<8x96xbf16>
    %c0_6 = arith.constant 0 : index
    %c0_7 = arith.constant 0 : index
    %10 = vector.load %arg7[%c0_6, %c0_7] : memref<8x96xbf16, #tpu.memory_space<vmem>>, vector<8x96xbf16>
    tpu.vector_store %arg7[%c0_6, %c0_7], %9 {strides = array<i32>} : memref<8x96xbf16, #tpu.memory_space<vmem>>, vector<8x96xbf16>,
    return
  }
  func.func @transform_0(%arg0: i32, %arg1: i32) -> (i32, i32) {
    %c0_i32 = arith.constant 0 : i32
    %c0_i32_0 = arith.constant 0 : i32
    return %arg0, %c0_i32 : i32, i32
  }
  func.func @transform_1(%arg0: i32, %arg1: i32) -> (i32, i32) {
    %c0_i32 = arith.constant 0 : i32
    %c0_i32_0 = arith.constant 0 : i32
    %c0_i32_1 = arith.constant 0 : i32
    return %c0_i32, %c0_i32_0 : i32, i32
  }
  func.func @transform_2(%arg0: i32, %arg1: i32) -> (i32, i32) {
    %c0_i32 = arith.constant 0 : i32
    %c0_i32_0 = arith.constant 0 : i32
    %c0_i32_1 = arith.constant 0 : i32
    return %c0_i32, %c0_i32_0 : i32, i32
  }
  func.func @transform_3(%arg0: i32, %arg1: i32) -> (i32, i32) {
    %c0_i32 = arith.constant 0 : i32
    %c0_i32_0 = arith.constant 0 : i32
    return %c0_i32, %arg1 : i32, i32
  }
  func.func @transform_4(%arg0: i32, %arg1: i32) -> (i32, i32) {
    %c0_i32 = arith.constant 0 : i32
    %c0_i32_0 = arith.constant 0 : i32
    return %c0_i32, %arg1 : i32, i32
  }
  func.func @transform_5(%arg0: i32, %arg1: i32) -> (i32, i32) {
    %c0_i32 = arith.constant 0 : i32
    return %arg0, %arg1 : i32, i32
  }
}

module attributes {stable_mosaic.version = 11 : i64} {
  func.func @_flash_attn_kernel(%arg0: i32, %arg1: i32, %arg2: i32, %arg3: i32, %arg4: memref<1x1x8x16xbf16, #tpu.memory_space<vmem>>, %arg5: memref<1x1x12x16xbf16, #tpu.memory_space<vmem>>, %arg6: memref<1x1x12x16xbf16, #tpu.memory_space<vmem>>, %arg7: memref<1x1x8x16xbf16, #tpu.memory_space<vmem>>, %arg8: memref<8x1xf32, #tpu.memory_space<vmem>>, %arg9: memref<8x1xf32, #tpu.memory_space<vmem>>, %arg10: memref<8x16xf32, #tpu.memory_space<vmem>>) attributes {dimension_semantics = [#tpu.dimension_semantics<parallel>, #tpu.dimension_semantics<parallel>, #tpu.dimension_semantics<parallel>, #tpu.dimension_semantics<arbitrary>], iteration_bounds = array<i64: 2, 2, 1, 1>, scalar_prefetch = 0 : i64, scratch_operands = 3 : i64, tpu.core_type = #tpu.core_type<tc>, window_params = [{transform_indices = @transform_0, window_bounds = array<i64: 1, 1, 8, 16>}, {transform_indices = @transform_1, window_bounds = array<i64: 1, 1, 12, 16>}, {transform_indices = @transform_2, window_bounds = array<i64: 1, 1, 12, 16>}, {transform_indices = @transform_3, window_bounds = array<i64: 1, 1, 8, 16>}]} {
    %c0_i32 = arith.constant 0 : i32
    %0 = arith.cmpi eq, %arg3, %c0_i32 : i32
    %1 = arith.extui %0 : i1 to i32
    %c0_i32_0 = arith.constant 0 : i32
    %2 = arith.cmpi ne, %1, %c0_i32_0 : i32
    scf.if %2 {
      %cst_33 = arith.constant 0xFF800000 : f32
      %51 = vector.broadcast %cst_33 : f32 to vector<8x1xf32>
      %c0_34 = arith.constant 0 : index
      %c0_35 = arith.constant 0 : index
      %52 = vector.load %arg8[%c0_34, %c0_35] : memref<8x1xf32, #tpu.memory_space<vmem>>, vector<8x1xf32>
      tpu.vector_store %arg8[%c0_34, %c0_35], %51 {strides = array<i32>} : memref<8x1xf32, #tpu.memory_space<vmem>>, vector<8x1xf32>,
      %cst_36 = arith.constant 0.000000e+00 : f32
      %53 = vector.broadcast %cst_36 : f32 to vector<8x1xf32>
      %c0_37 = arith.constant 0 : index
      %c0_38 = arith.constant 0 : index
      %54 = vector.load %arg9[%c0_37, %c0_38] : memref<8x1xf32, #tpu.memory_space<vmem>>, vector<8x1xf32>
      tpu.vector_store %arg9[%c0_37, %c0_38], %53 {strides = array<i32>} : memref<8x1xf32, #tpu.memory_space<vmem>>, vector<8x1xf32>,
      %cst_39 = arith.constant 0.000000e+00 : f32
      %55 = vector.broadcast %cst_39 : f32 to vector<8x16xf32>
      %c0_40 = arith.constant 0 : index
      %c0_41 = arith.constant 0 : index
      %56 = vector.load %arg10[%c0_40, %c0_41] : memref<8x16xf32, #tpu.memory_space<vmem>>, vector<8x16xf32>
      tpu.vector_store %arg10[%c0_40, %c0_41], %55 {strides = array<i32>} : memref<8x16xf32, #tpu.memory_space<vmem>>, vector<8x16xf32>,
    } else {
    }
    %c0 = arith.constant 0 : index
    %c0_1 = arith.constant 0 : index
    %c0_2 = arith.constant 0 : index
    %c0_3 = arith.constant 0 : index
    %3 = vector.load %arg4[%c0, %c0_1, %c0_2, %c0_3] : memref<1x1x8x16xbf16, #tpu.memory_space<vmem>>, vector<1x1x8x16xbf16>
    %4 = vector.shape_cast %3 : vector<1x1x8x16xbf16> to vector<8x16xbf16>
    %c0_4 = arith.constant 0 : index
    %c0_5 = arith.constant 0 : index
    %c0_6 = arith.constant 0 : index
    %c0_7 = arith.constant 0 : index
    %5 = vector.load %arg5[%c0_4, %c0_5, %c0_6, %c0_7] : memref<1x1x12x16xbf16, #tpu.memory_space<vmem>>, vector<1x1x12x16xbf16>
    %6 = vector.shape_cast %5 : vector<1x1x12x16xbf16> to vector<12x16xbf16>
    %c0_8 = arith.constant 0 : index
    %c0_9 = arith.constant 0 : index
    %c0_10 = arith.constant 0 : index
    %c0_11 = arith.constant 0 : index
    %7 = vector.load %arg6[%c0_8, %c0_9, %c0_10, %c0_11] : memref<1x1x12x16xbf16, #tpu.memory_space<vmem>>, vector<1x1x12x16xbf16>
    %8 = vector.shape_cast %7 : vector<1x1x12x16xbf16> to vector<12x16xbf16>
    %cst = arith.constant dense<0.000000e+00> : vector<8x12xf32>
    %9 = tpu.matmul %4, %6, %cst {dimension_numbers = #tpu.dot_dimension_numbers<[1], [1], [0], [0], [0, 0, 1, 0], [], []>} : vector<8x16xbf16>, vector<12x16xbf16>, vector<8x12xf32> -> vector<8x12xf32>
    %cst_12 = arith.constant 2.500000e-01 : f32
    %10 = vector.broadcast %cst_12 : f32 to vector<8x12xf32>
    %11 = arith.mulf %9, %10 : vector<8x12xf32>
    %c8_i32 = arith.constant 8 : i32
    %12 = arith.muli %arg2, %c8_i32 : i32
    %c4_i32 = arith.constant 4 : i32
    %13 = arith.addi %c4_i32, %12 : i32
    %14 = tpu.iota {dimensions = array<i32: 0>} : vector<8x12xi32>
    %15 = vector.broadcast %13 : i32 to vector<8x12xi32>
    %16 = arith.addi %15, %14 : vector<8x12xi32>
    %c12_i32 = arith.constant 12 : i32
    %17 = arith.muli %arg3, %c12_i32 : i32
    %18 = tpu.iota {dimensions = array<i32: 1>} : vector<8x12xi32>
    %19 = vector.broadcast %17 : i32 to vector<8x12xi32>
    %20 = arith.addi %19, %18 : vector<8x12xi32>
    %21 = arith.cmpi sle, %20, %16 : vector<8x12xi32>
    %cst_13 = arith.constant -1.000000e+30 : f32
    %22 = vector.broadcast %cst_13 : f32 to vector<8x12xf32>
    %23 = arith.select %21, %11, %22 : vector<8x12xi1>, vector<8x12xf32>
    %c0_14 = arith.constant 0 : index
    %c0_15 = arith.constant 0 : index
    %24 = vector.load %arg8[%c0_14, %c0_15] : memref<8x1xf32, #tpu.memory_space<vmem>>, vector<8x1xf32>
    %cst_16 = arith.constant dense<0xFF800000> : vector<8xf32>
    %25 = vector.multi_reduction <maximumf>, %23, %cst_16 [1] : vector<8x12xf32> to vector<8xf32>
    %26 = vector.shape_cast %25 : vector<8xf32> to vector<8x1xf32>
    %27 = arith.maximumf %24, %26 : vector<8x1xf32>
    %c0_17 = arith.constant 0 : index
    %c0_18 = arith.constant 0 : index
    %28 = vector.load %arg8[%c0_17, %c0_18] : memref<8x1xf32, #tpu.memory_space<vmem>>, vector<8x1xf32>
    %29 = arith.subf %28, %27 : vector<8x1xf32>
    %30 = math.exp %29 : vector<8x1xf32>
    %31 = vector.broadcast %27 : vector<8x1xf32> to vector<8x12xf32>
    %32 = arith.subf %23, %31 : vector<8x12xf32>
    %33 = math.exp %32 : vector<8x12xf32>
    %c0_19 = arith.constant 0 : index
    %c0_20 = arith.constant 0 : index
    %34 = vector.load %arg9[%c0_19, %c0_20] : memref<8x1xf32, #tpu.memory_space<vmem>>, vector<8x1xf32>
    %35 = arith.mulf %30, %34 : vector<8x1xf32>
    %cst_21 = arith.constant dense<0.000000e+00> : vector<8xf32>
    %36 = vector.multi_reduction <add>, %33, %cst_21 [1] : vector<8x12xf32> to vector<8xf32>
    %37 = vector.shape_cast %36 : vector<8xf32> to vector<8x1xf32>
    %38 = arith.addf %35, %37 : vector<8x1xf32>
    %c0_22 = arith.constant 0 : index
    %c0_23 = arith.constant 0 : index
    %39 = vector.load %arg9[%c0_22, %c0_23] : memref<8x1xf32, #tpu.memory_space<vmem>>, vector<8x1xf32>
    tpu.vector_store %arg9[%c0_22, %c0_23], %38 {strides = array<i32>} : memref<8x1xf32, #tpu.memory_space<vmem>>, vector<8x1xf32>,
    %c0_24 = arith.constant 0 : index
    %c0_25 = arith.constant 0 : index
    %40 = vector.load %arg10[%c0_24, %c0_25] : memref<8x16xf32, #tpu.memory_space<vmem>>, vector<8x16xf32>
    %41 = vector.broadcast %30 : vector<8x1xf32> to vector<8x16xf32>
    %42 = arith.mulf %41, %40 : vector<8x16xf32>
    %43 = arith.truncf %33 : vector<8x12xf32> to vector<8x12xbf16>
    %cst_26 = arith.constant dense<0.000000e+00> : vector<8x16xf32>
    %44 = tpu.matmul %43, %8, %cst_26 {dimension_numbers = #tpu.dot_dimension_numbers<[1], [0], [0], [1], [0, 0, 1, 1], [], []>} : vector<8x12xbf16>, vector<12x16xbf16>, vector<8x16xf32> -> vector<8x16xf32>
    %45 = arith.addf %42, %44 : vector<8x16xf32>
    %c0_27 = arith.constant 0 : index
    %c0_28 = arith.constant 0 : index
    %46 = vector.load %arg10[%c0_27, %c0_28] : memref<8x16xf32, #tpu.memory_space<vmem>>, vector<8x16xf32>
    tpu.vector_store %arg10[%c0_27, %c0_28], %45 {strides = array<i32>} : memref<8x16xf32, #tpu.memory_space<vmem>>, vector<8x16xf32>,
    %c0_29 = arith.constant 0 : index
    %c0_30 = arith.constant 0 : index
    %47 = vector.load %arg8[%c0_29, %c0_30] : memref<8x1xf32, #tpu.memory_space<vmem>>, vector<8x1xf32>
    tpu.vector_store %arg8[%c0_29, %c0_30], %27 {strides = array<i32>} : memref<8x1xf32, #tpu.memory_space<vmem>>, vector<8x1xf32>,
    %c0_i32_31 = arith.constant 0 : i32
    %48 = arith.cmpi eq, %arg3, %c0_i32_31 : i32
    %49 = arith.extui %48 : i1 to i32
    %c0_i32_32 = arith.constant 0 : i32
    %50 = arith.cmpi ne, %49, %c0_i32_32 : i32
    scf.if %50 {
      %c0_33 = arith.constant 0 : index
      %c0_34 = arith.constant 0 : index
      %51 = vector.load %arg9[%c0_33, %c0_34] : memref<8x1xf32, #tpu.memory_space<vmem>>, vector<8x1xf32>
      %52 = tpu.reciprocal %51 {approx = true} : vector<8x1xf32> -> vector<8x1xf32>
      %c0_35 = arith.constant 0 : index
      %c0_36 = arith.constant 0 : index
      %53 = vector.load %arg10[%c0_35, %c0_36] : memref<8x16xf32, #tpu.memory_space<vmem>>, vector<8x16xf32>
      %54 = vector.broadcast %52 : vector<8x1xf32> to vector<8x16xf32>
      %55 = arith.mulf %53, %54 : vector<8x16xf32>
      %56 = arith.truncf %55 : vector<8x16xf32> to vector<8x16xbf16>
      %c0_37 = arith.constant 0 : index
      %c0_38 = arith.constant 0 : index
      %c0_39 = arith.constant 0 : index
      %c0_40 = arith.constant 0 : index
      %57 = vector.load %arg7[%c0_37, %c0_38, %c0_39, %c0_40] : memref<1x1x8x16xbf16, #tpu.memory_space<vmem>>, vector<1x1x8x16xbf16>
      %58 = vector.shape_cast %57 : vector<1x1x8x16xbf16> to vector<8x16xbf16>
      %59 = vector.shape_cast %56 : vector<8x16xbf16> to vector<1x1x8x16xbf16>
      tpu.vector_store %arg7[%c0_37, %c0_38, %c0_39, %c0_40], %59 {strides = array<i32>} : memref<1x1x8x16xbf16, #tpu.memory_space<vmem>>, vector<1x1x8x16xbf16>,
    } else {
    }
    return
  }
  func.func @transform_0(%arg0: i32, %arg1: i32, %arg2: i32, %arg3: i32) -> (i32, i32, i32, i32) {
    %c0_i32 = arith.constant 0 : i32
    %c0_i32_0 = arith.constant 0 : i32
    return %arg0, %arg1, %arg2, %c0_i32 : i32, i32, i32, i32
  }
  func.func @transform_1(%arg0: i32, %arg1: i32, %arg2: i32, %arg3: i32) -> (i32, i32, i32, i32) {
    %c0_i32 = arith.constant 0 : i32
    %c0_i32_0 = arith.constant 0 : i32
    return %arg0, %arg1, %arg3, %c0_i32 : i32, i32, i32, i32
  }
  func.func @transform_2(%arg0: i32, %arg1: i32, %arg2: i32, %arg3: i32) -> (i32, i32, i32, i32) {
    %c0_i32 = arith.constant 0 : i32
    %c0_i32_0 = arith.constant 0 : i32
    return %arg0, %arg1, %arg3, %c0_i32 : i32, i32, i32, i32
  }
  func.func @transform_3(%arg0: i32, %arg1: i32, %arg2: i32, %arg3: i32) -> (i32, i32, i32, i32) {
    %c0_i32 = arith.constant 0 : i32
    %c0_i32_0 = arith.constant 0 : i32
    return %arg0, %arg1, %arg2, %c0_i32 : i32, i32, i32, i32
  }
}

module attributes {stable_mosaic.version = 11 : i64} {
  func.func @_linear_acc_kernel(%arg0: i32, %arg1: i32, %arg2: i32, %arg3: memref<16x32xbf16, #tpu.memory_space<vmem>>, %arg4: memref<32x32xbf16, #tpu.memory_space<vmem>>, %arg5: memref<1x32xf32, #tpu.memory_space<vmem>>, %arg6: memref<16x32xf32, #tpu.memory_space<vmem>>, %arg7: memref<16x32xf32, #tpu.memory_space<vmem>>, %arg8: memref<16x32xf32, #tpu.memory_space<vmem>>) attributes {dimension_semantics = [#tpu.dimension_semantics<parallel>, #tpu.dimension_semantics<parallel>, #tpu.dimension_semantics<arbitrary>], iteration_bounds = array<i64: 1, 1, 1>, scalar_prefetch = 0 : i64, scratch_operands = 1 : i64, tpu.core_type = #tpu.core_type<tc>, window_params = [{transform_indices = @transform_0, window_bounds = array<i64: 16, 32>}, {transform_indices = @transform_1, window_bounds = array<i64: 32, 32>}, {transform_indices = @transform_2, window_bounds = array<i64: 1, 32>}, {transform_indices = @transform_3, window_bounds = array<i64: 16, 32>}, {transform_indices = @transform_4, window_bounds = array<i64: 16, 32>}]} {
    %c0_i32 = arith.constant 0 : i32
    %0 = arith.cmpi eq, %arg2, %c0_i32 : i32
    %1 = arith.extui %0 : i1 to i32
    %c0_i32_0 = arith.constant 0 : i32
    %2 = arith.cmpi ne, %1, %c0_i32_0 : i32
    scf.if %2 {
      %cst_10 = arith.constant 0.000000e+00 : f32
      %12 = vector.broadcast %cst_10 : f32 to vector<16x32xf32>
      %c0_11 = arith.constant 0 : index
      %c0_12 = arith.constant 0 : index
      %13 = vector.load %arg8[%c0_11, %c0_12] : memref<16x32xf32, #tpu.memory_space<vmem>>, vector<16x32xf32>
      tpu.vector_store %arg8[%c0_11, %c0_12], %12 {strides = array<i32>} : memref<16x32xf32, #tpu.memory_space<vmem>>, vector<16x32xf32>,
    } else {
    }
    %c0 = arith.constant 0 : index
    %c0_1 = arith.constant 0 : index
    %3 = vector.load %arg8[%c0, %c0_1] : memref<16x32xf32, #tpu.memory_space<vmem>>, vector<16x32xf32>
    %c0_2 = arith.constant 0 : index
    %c0_3 = arith.constant 0 : index
    %4 = vector.load %arg3[%c0_2, %c0_3] : memref<16x32xbf16, #tpu.memory_space<vmem>>, vector<16x32xbf16>
    %c0_4 = arith.constant 0 : index
    %c0_5 = arith.constant 0 : index
    %5 = vector.load %arg4[%c0_4, %c0_5] : memref<32x32xbf16, #tpu.memory_space<vmem>>, vector<32x32xbf16>
    %cst = arith.constant dense<0.000000e+00> : vector<16x32xf32>
    %6 = tpu.matmul %4, %5, %cst {dimension_numbers = #tpu.dot_dimension_numbers<[1], [0], [0], [1], [0, 0, 1, 1], [], []>} : vector<16x32xbf16>, vector<32x32xbf16>, vector<16x32xf32> -> vector<16x32xf32>
    %7 = arith.addf %3, %6 : vector<16x32xf32>
    %c0_6 = arith.constant 0 : index
    %c0_7 = arith.constant 0 : index
    %8 = vector.load %arg8[%c0_6, %c0_7] : memref<16x32xf32, #tpu.memory_space<vmem>>, vector<16x32xf32>
    tpu.vector_store %arg8[%c0_6, %c0_7], %7 {strides = array<i32>} : memref<16x32xf32, #tpu.memory_space<vmem>>, vector<16x32xf32>,
    %c0_i32_8 = arith.constant 0 : i32
    %9 = arith.cmpi eq, %arg2, %c0_i32_8 : i32
    %10 = arith.extui %9 : i1 to i32
    %c0_i32_9 = arith.constant 0 : i32
    %11 = arith.cmpi ne, %10, %c0_i32_9 : i32
    scf.if %11 {
      %c0_10 = arith.constant 0 : index
      %c0_11 = arith.constant 0 : index
      %12 = vector.load %arg8[%c0_10, %c0_11] : memref<16x32xf32, #tpu.memory_space<vmem>>, vector<16x32xf32>
      %c0_12 = arith.constant 0 : index
      %c0_13 = arith.constant 0 : index
      %13 = vector.load %arg5[%c0_12, %c0_13] : memref<1x32xf32, #tpu.memory_space<vmem>>, vector<1x32xf32>
      %14 = vector.broadcast %13 : vector<1x32xf32> to vector<16x32xf32>
      %15 = arith.addf %12, %14 : vector<16x32xf32>
      %c0_14 = arith.constant 0 : index
      %c0_15 = arith.constant 0 : index
      %16 = vector.load %arg6[%c0_14, %c0_15] : memref<16x32xf32, #tpu.memory_space<vmem>>, vector<16x32xf32>
      %17 = arith.addf %15, %16 : vector<16x32xf32>
      %c0_16 = arith.constant 0 : index
      %c0_17 = arith.constant 0 : index
      %18 = vector.load %arg7[%c0_16, %c0_17] : memref<16x32xf32, #tpu.memory_space<vmem>>, vector<16x32xf32>
      tpu.vector_store %arg7[%c0_16, %c0_17], %17 {strides = array<i32>} : memref<16x32xf32, #tpu.memory_space<vmem>>, vector<16x32xf32>,
    } else {
    }
    return
  }
  func.func @transform_0(%arg0: i32, %arg1: i32, %arg2: i32) -> (i32, i32) {
    %c0_i32 = arith.constant 0 : i32
    return %arg0, %arg2 : i32, i32
  }
  func.func @transform_1(%arg0: i32, %arg1: i32, %arg2: i32) -> (i32, i32) {
    %c0_i32 = arith.constant 0 : i32
    return %arg2, %arg1 : i32, i32
  }
  func.func @transform_2(%arg0: i32, %arg1: i32, %arg2: i32) -> (i32, i32) {
    %c0_i32 = arith.constant 0 : i32
    %c0_i32_0 = arith.constant 0 : i32
    return %c0_i32, %arg1 : i32, i32
  }
  func.func @transform_3(%arg0: i32, %arg1: i32, %arg2: i32) -> (i32, i32) {
    %c0_i32 = arith.constant 0 : i32
    return %arg0, %arg1 : i32, i32
  }
  func.func @transform_4(%arg0: i32, %arg1: i32, %arg2: i32) -> (i32, i32) {
    %c0_i32 = arith.constant 0 : i32
    return %arg0, %arg1 : i32, i32
  }
}

module attributes {stable_mosaic.version = 11 : i64} {
  func.func @_linear_acc_kernel(%arg0: i32, %arg1: i32, %arg2: i32, %arg3: memref<16x128xbf16, #tpu.memory_space<vmem>>, %arg4: memref<128x32xbf16, #tpu.memory_space<vmem>>, %arg5: memref<1x32xf32, #tpu.memory_space<vmem>>, %arg6: memref<16x32xf32, #tpu.memory_space<vmem>>, %arg7: memref<16x32xf32, #tpu.memory_space<vmem>>, %arg8: memref<16x32xf32, #tpu.memory_space<vmem>>) attributes {dimension_semantics = [#tpu.dimension_semantics<parallel>, #tpu.dimension_semantics<parallel>, #tpu.dimension_semantics<arbitrary>], iteration_bounds = array<i64: 1, 1, 1>, scalar_prefetch = 0 : i64, scratch_operands = 1 : i64, tpu.core_type = #tpu.core_type<tc>, window_params = [{transform_indices = @transform_0, window_bounds = array<i64: 16, 128>}, {transform_indices = @transform_1, window_bounds = array<i64: 128, 32>}, {transform_indices = @transform_2, window_bounds = array<i64: 1, 32>}, {transform_indices = @transform_3, window_bounds = array<i64: 16, 32>}, {transform_indices = @transform_4, window_bounds = array<i64: 16, 32>}]} {
    %c0_i32 = arith.constant 0 : i32
    %0 = arith.cmpi eq, %arg2, %c0_i32 : i32
    %1 = arith.extui %0 : i1 to i32
    %c0_i32_0 = arith.constant 0 : i32
    %2 = arith.cmpi ne, %1, %c0_i32_0 : i32
    scf.if %2 {
      %cst_10 = arith.constant 0.000000e+00 : f32
      %12 = vector.broadcast %cst_10 : f32 to vector<16x32xf32>
      %c0_11 = arith.constant 0 : index
      %c0_12 = arith.constant 0 : index
      %13 = vector.load %arg8[%c0_11, %c0_12] : memref<16x32xf32, #tpu.memory_space<vmem>>, vector<16x32xf32>
      tpu.vector_store %arg8[%c0_11, %c0_12], %12 {strides = array<i32>} : memref<16x32xf32, #tpu.memory_space<vmem>>, vector<16x32xf32>,
    } else {
    }
    %c0 = arith.constant 0 : index
    %c0_1 = arith.constant 0 : index
    %3 = vector.load %arg8[%c0, %c0_1] : memref<16x32xf32, #tpu.memory_space<vmem>>, vector<16x32xf32>
    %c0_2 = arith.constant 0 : index
    %c0_3 = arith.constant 0 : index
    %4 = vector.load %arg3[%c0_2, %c0_3] : memref<16x128xbf16, #tpu.memory_space<vmem>>, vector<16x128xbf16>
    %c0_4 = arith.constant 0 : index
    %c0_5 = arith.constant 0 : index
    %5 = vector.load %arg4[%c0_4, %c0_5] : memref<128x32xbf16, #tpu.memory_space<vmem>>, vector<128x32xbf16>
    %cst = arith.constant dense<0.000000e+00> : vector<16x32xf32>
    %6 = tpu.matmul %4, %5, %cst {dimension_numbers = #tpu.dot_dimension_numbers<[1], [0], [0], [1], [0, 0, 1, 1], [], []>} : vector<16x128xbf16>, vector<128x32xbf16>, vector<16x32xf32> -> vector<16x32xf32>
    %7 = arith.addf %3, %6 : vector<16x32xf32>
    %c0_6 = arith.constant 0 : index
    %c0_7 = arith.constant 0 : index
    %8 = vector.load %arg8[%c0_6, %c0_7] : memref<16x32xf32, #tpu.memory_space<vmem>>, vector<16x32xf32>
    tpu.vector_store %arg8[%c0_6, %c0_7], %7 {strides = array<i32>} : memref<16x32xf32, #tpu.memory_space<vmem>>, vector<16x32xf32>,
    %c0_i32_8 = arith.constant 0 : i32
    %9 = arith.cmpi eq, %arg2, %c0_i32_8 : i32
    %10 = arith.extui %9 : i1 to i32
    %c0_i32_9 = arith.constant 0 : i32
    %11 = arith.cmpi ne, %10, %c0_i32_9 : i32
    scf.if %11 {
      %c0_10 = arith.constant 0 : index
      %c0_11 = arith.constant 0 : index
      %12 = vector.load %arg8[%c0_10, %c0_11] : memref<16x32xf32, #tpu.memory_space<vmem>>, vector<16x32xf32>
      %c0_12 = arith.constant 0 : index
      %c0_13 = arith.constant 0 : index
      %13 = vector.load %arg5[%c0_12, %c0_13] : memref<1x32xf32, #tpu.memory_space<vmem>>, vector<1x32xf32>
      %14 = vector.broadcast %13 : vector<1x32xf32> to vector<16x32xf32>
      %15 = arith.addf %12, %14 : vector<16x32xf32>
      %c0_14 = arith.constant 0 : index
      %c0_15 = arith.constant 0 : index
      %16 = vector.load %arg6[%c0_14, %c0_15] : memref<16x32xf32, #tpu.memory_space<vmem>>, vector<16x32xf32>
      %17 = arith.addf %15, %16 : vector<16x32xf32>
      %c0_16 = arith.constant 0 : index
      %c0_17 = arith.constant 0 : index
      %18 = vector.load %arg7[%c0_16, %c0_17] : memref<16x32xf32, #tpu.memory_space<vmem>>, vector<16x32xf32>
      tpu.vector_store %arg7[%c0_16, %c0_17], %17 {strides = array<i32>} : memref<16x32xf32, #tpu.memory_space<vmem>>, vector<16x32xf32>,
    } else {
    }
    return
  }
  func.func @transform_0(%arg0: i32, %arg1: i32, %arg2: i32) -> (i32, i32) {
    %c0_i32 = arith.constant 0 : i32
    return %arg0, %arg2 : i32, i32
  }
  func.func @transform_1(%arg0: i32, %arg1: i32, %arg2: i32) -> (i32, i32) {
    %c0_i32 = arith.constant 0 : i32
    return %arg2, %arg1 : i32, i32
  }
  func.func @transform_2(%arg0: i32, %arg1: i32, %arg2: i32) -> (i32, i32) {
    %c0_i32 = arith.constant 0 : i32
    %c0_i32_0 = arith.constant 0 : i32
    return %c0_i32, %arg1 : i32, i32
  }
  func.func @transform_3(%arg0: i32, %arg1: i32, %arg2: i32) -> (i32, i32) {
    %c0_i32 = arith.constant 0 : i32
    return %arg0, %arg1 : i32, i32
  }
  func.func @transform_4(%arg0: i32, %arg1: i32, %arg2: i32) -> (i32, i32) {
    %c0_i32 = arith.constant 0 : i32
    return %arg0, %arg1 : i32, i32
  }
}

module attributes {stable_mosaic.version = 11 : i64} {
  func.func @_ln_linear_kernel(%arg0: i32, %arg1: i32, %arg2: memref<16x32xf32, #tpu.memory_space<vmem>>, %arg3: memref<1x32xf32, #tpu.memory_space<vmem>>, %arg4: memref<1x32xf32, #tpu.memory_space<vmem>>, %arg5: memref<32x128xbf16, #tpu.memory_space<vmem>>, %arg6: memref<1x128xf32, #tpu.memory_space<vmem>>, %arg7: memref<16x128xbf16, #tpu.memory_space<vmem>>, %arg8: memref<16x32xbf16, #tpu.memory_space<vmem>>) attributes {dimension_semantics = [#tpu.dimension_semantics<parallel>, #tpu.dimension_semantics<arbitrary>], iteration_bounds = array<i64: 1, 1>, scalar_prefetch = 0 : i64, scratch_operands = 1 : i64, tpu.core_type = #tpu.core_type<tc>, window_params = [{transform_indices = @transform_0, window_bounds = array<i64: 16, 32>}, {pipeline_mode = #tpu.pipeline_mode<synchronous>, transform_indices = @transform_1, window_bounds = array<i64: 1, 32>}, {pipeline_mode = #tpu.pipeline_mode<synchronous>, transform_indices = @transform_2, window_bounds = array<i64: 1, 32>}, {transform_indices = @transform_3, window_bounds = array<i64: 32, 128>}, {transform_indices = @transform_4, window_bounds = array<i64: 1, 128>}, {transform_indices = @transform_5, window_bounds = array<i64: 16, 128>}]} {
    %c0_i32 = arith.constant 0 : i32
    %0 = arith.cmpi eq, %arg1, %c0_i32 : i32
    %1 = arith.extui %0 : i1 to i32
    %c0_i32_0 = arith.constant 0 : i32
    %2 = arith.cmpi ne, %1, %c0_i32_0 : i32
    scf.if %2 {
      %c0_12 = arith.constant 0 : index
      %c0_13 = arith.constant 0 : index
      %24 = vector.load %arg2[%c0_12, %c0_13] : memref<16x32xf32, #tpu.memory_space<vmem>>, vector<16x32xf32>
      %cst_14 = arith.constant dense<0.000000e+00> : vector<16xf32>
      %25 = vector.multi_reduction <add>, %24, %cst_14 [1] : vector<16x32xf32> to vector<16xf32>
      %26 = vector.shape_cast %25 : vector<16xf32> to vector<16x1xf32>
      %cst_15 = arith.constant 3.200000e+01 : f32
      %27 = vector.broadcast %cst_15 : f32 to vector<16x1xf32>
      %28 = arith.divf %26, %27 : vector<16x1xf32>
      %29 = vector.broadcast %28 : vector<16x1xf32> to vector<16x32xf32>
      %30 = arith.subf %24, %29 : vector<16x32xf32>
      %31 = arith.mulf %30, %30 : vector<16x32xf32>
      %cst_16 = arith.constant dense<0.000000e+00> : vector<16xf32>
      %32 = vector.multi_reduction <add>, %31, %cst_16 [1] : vector<16x32xf32> to vector<16xf32>
      %33 = vector.shape_cast %32 : vector<16xf32> to vector<16x1xf32>
      %cst_17 = arith.constant 3.200000e+01 : f32
      %34 = vector.broadcast %cst_17 : f32 to vector<16x1xf32>
      %35 = arith.divf %33, %34 : vector<16x1xf32>
      %36 = vector.broadcast %28 : vector<16x1xf32> to vector<16x32xf32>
      %37 = arith.subf %24, %36 : vector<16x32xf32>
      %cst_18 = arith.constant 9.99999974E-6 : f32
      %38 = vector.broadcast %cst_18 : f32 to vector<16x1xf32>
      %39 = arith.addf %35, %38 : vector<16x1xf32>
      %40 = math.rsqrt %39 : vector<16x1xf32>
      %41 = vector.broadcast %40 : vector<16x1xf32> to vector<16x32xf32>
      %42 = arith.mulf %37, %41 : vector<16x32xf32>
      %c0_19 = arith.constant 0 : index
      %c0_20 = arith.constant 0 : index
      %43 = vector.load %arg3[%c0_19, %c0_20] : memref<1x32xf32, #tpu.memory_space<vmem>>, vector<1x32xf32>
      %44 = vector.broadcast %43 : vector<1x32xf32> to vector<16x32xf32>
      %45 = arith.mulf %42, %44 : vector<16x32xf32>
      %c0_21 = arith.constant 0 : index
      %c0_22 = arith.constant 0 : index
      %46 = vector.load %arg4[%c0_21, %c0_22] : memref<1x32xf32, #tpu.memory_space<vmem>>, vector<1x32xf32>
      %47 = vector.broadcast %46 : vector<1x32xf32> to vector<16x32xf32>
      %48 = arith.addf %45, %47 : vector<16x32xf32>
      %49 = arith.truncf %48 : vector<16x32xf32> to vector<16x32xbf16>
      %c0_23 = arith.constant 0 : index
      %c0_24 = arith.constant 0 : index
      %50 = vector.load %arg8[%c0_23, %c0_24] : memref<16x32xbf16, #tpu.memory_space<vmem>>, vector<16x32xbf16>
      tpu.vector_store %arg8[%c0_23, %c0_24], %49 {strides = array<i32>} : memref<16x32xbf16, #tpu.memory_space<vmem>>, vector<16x32xbf16>,
    } else {
    }
    %c0 = arith.constant 0 : index
    %c0_1 = arith.constant 0 : index
    %3 = vector.load %arg8[%c0, %c0_1] : memref<16x32xbf16, #tpu.memory_space<vmem>>, vector<16x32xbf16>
    %c0_2 = arith.constant 0 : index
    %c0_3 = arith.constant 0 : index
    %4 = vector.load %arg5[%c0_2, %c0_3] : memref<32x128xbf16, #tpu.memory_space<vmem>>, vector<32x128xbf16>
    %cst = arith.constant dense<0.000000e+00> : vector<16x128xf32>
    %5 = tpu.matmul %3, %4, %cst {dimension_numbers = #tpu.dot_dimension_numbers<[1], [0], [0], [1], [0, 0, 1, 1], [], []>} : vector<16x32xbf16>, vector<32x128xbf16>, vector<16x128xf32> -> vector<16x128xf32>
    %c0_4 = arith.constant 0 : index
    %c0_5 = arith.constant 0 : index
    %6 = vector.load %arg6[%c0_4, %c0_5] : memref<1x128xf32, #tpu.memory_space<vmem>>, vector<1x128xf32>
    %7 = vector.broadcast %6 : vector<1x128xf32> to vector<16x128xf32>
    %8 = arith.addf %5, %7 : vector<16x128xf32>
    %cst_6 = arith.constant 5.000000e-01 : f32
    %9 = vector.broadcast %cst_6 : f32 to vector<16x128xf32>
    %10 = arith.mulf %9, %8 : vector<16x128xf32>
    %cst_7 = arith.constant 4.471500e-02 : f32
    %11 = vector.broadcast %cst_7 : f32 to vector<16x128xf32>
    %12 = arith.mulf %11, %8 : vector<16x128xf32>
    %13 = arith.mulf %12, %8 : vector<16x128xf32>
    %14 = arith.mulf %13, %8 : vector<16x128xf32>
    %15 = arith.addf %8, %14 : vector<16x128xf32>
    %cst_8 = arith.constant 0.797884583 : f32
    %16 = vector.broadcast %cst_8 : f32 to vector<16x128xf32>
    %17 = arith.mulf %16, %15 : vector<16x128xf32>
    %18 = math.tanh %17 : vector<16x128xf32>
    %cst_9 = arith.constant 1.000000e+00 : f32
    %19 = vector.broadcast %cst_9 : f32 to vector<16x128xf32>
    %20 = arith.addf %19, %18 : vector<16x128xf32>
    %21 = arith.mulf %10, %20 : vector<16x128xf32>
    %22 = arith.truncf %21 : vector<16x128xf32> to vector<16x128xbf16>
    %c0_10 = arith.constant 0 : index
    %c0_11 = arith.constant 0 : index
    %23 = vector.load %arg7[%c0_10, %c0_11] : memref<16x128xbf16, #tpu.memory_space<vmem>>, vector<16x128xbf16>
    tpu.vector_store %arg7[%c0_10, %c0_11], %22 {strides = array<i32>} : memref<16x128xbf16, #tpu.memory_space<vmem>>, vector<16x128xbf16>,
    return
  }
  func.func @transform_0(%arg0: i32, %arg1: i32) -> (i32, i32) {
    %c0_i32 = arith.constant 0 : i32
    %c0_i32_0 = arith.constant 0 : i32
    return %arg0, %c0_i32 : i32, i32
  }
  func.func @transform_1(%arg0: i32, %arg1: i32) -> (i32, i32) {
    %c0_i32 = arith.constant 0 : i32
    %c0_i32_0 = arith.constant 0 : i32
    %c0_i32_1 = arith.constant 0 : i32
    return %c0_i32, %c0_i32_0 : i32, i32
  }
  func.func @transform_2(%arg0: i32, %arg1: i32) -> (i32, i32) {
    %c0_i32 = arith.constant 0 : i32
    %c0_i32_0 = arith.constant 0 : i32
    %c0_i32_1 = arith.constant 0 : i32
    return %c0_i32, %c0_i32_0 : i32, i32
  }
  func.func @transform_3(%arg0: i32, %arg1: i32) -> (i32, i32) {
    %c0_i32 = arith.constant 0 : i32
    %c0_i32_0 = arith.constant 0 : i32
    return %c0_i32, %arg1 : i32, i32
  }
  func.func @transform_4(%arg0: i32, %arg1: i32) -> (i32, i32) {
    %c0_i32 = arith.constant 0 : i32
    %c0_i32_0 = arith.constant 0 : i32
    return %c0_i32, %arg1 : i32, i32
  }
  func.func @transform_5(%arg0: i32, %arg1: i32) -> (i32, i32) {
    %c0_i32 = arith.constant 0 : i32
    return %arg0, %arg1 : i32, i32
  }
}

module attributes {stable_mosaic.version = 11 : i64} {
  func.func @_flash_attn_kernel(%arg0: i32, %arg1: i32, %arg2: i32, %arg3: i32, %arg4: memref<1x1x4x16xbf16, #tpu.memory_space<vmem>>, %arg5: memref<1x1x4x16xbf16, #tpu.memory_space<vmem>>, %arg6: memref<1x1x4x16xbf16, #tpu.memory_space<vmem>>, %arg7: memref<1x1x4x16xbf16, #tpu.memory_space<vmem>>, %arg8: memref<4x1xf32, #tpu.memory_space<vmem>>, %arg9: memref<4x1xf32, #tpu.memory_space<vmem>>, %arg10: memref<4x16xf32, #tpu.memory_space<vmem>>) attributes {dimension_semantics = [#tpu.dimension_semantics<parallel>, #tpu.dimension_semantics<parallel>, #tpu.dimension_semantics<parallel>, #tpu.dimension_semantics<arbitrary>], iteration_bounds = array<i64: 2, 2, 1, 1>, scalar_prefetch = 0 : i64, scratch_operands = 3 : i64, tpu.core_type = #tpu.core_type<tc>, window_params = [{transform_indices = @transform_0, window_bounds = array<i64: 1, 1, 4, 16>}, {transform_indices = @transform_1, window_bounds = array<i64: 1, 1, 4, 16>}, {transform_indices = @transform_2, window_bounds = array<i64: 1, 1, 4, 16>}, {transform_indices = @transform_3, window_bounds = array<i64: 1, 1, 4, 16>}]} {
    %c0_i32 = arith.constant 0 : i32
    %0 = arith.cmpi eq, %arg3, %c0_i32 : i32
    %1 = arith.extui %0 : i1 to i32
    %c0_i32_0 = arith.constant 0 : i32
    %2 = arith.cmpi ne, %1, %c0_i32_0 : i32
    scf.if %2 {
      %cst_35 = arith.constant 0xFF800000 : f32
      %51 = vector.broadcast %cst_35 : f32 to vector<4x1xf32>
      %c0_36 = arith.constant 0 : index
      %c0_37 = arith.constant 0 : index
      %52 = vector.load %arg8[%c0_36, %c0_37] : memref<4x1xf32, #tpu.memory_space<vmem>>, vector<4x1xf32>
      tpu.vector_store %arg8[%c0_36, %c0_37], %51 {strides = array<i32>} : memref<4x1xf32, #tpu.memory_space<vmem>>, vector<4x1xf32>,
      %cst_38 = arith.constant 0.000000e+00 : f32
      %53 = vector.broadcast %cst_38 : f32 to vector<4x1xf32>
      %c0_39 = arith.constant 0 : index
      %c0_40 = arith.constant 0 : index
      %54 = vector.load %arg9[%c0_39, %c0_40] : memref<4x1xf32, #tpu.memory_space<vmem>>, vector<4x1xf32>
      tpu.vector_store %arg9[%c0_39, %c0_40], %53 {strides = array<i32>} : memref<4x1xf32, #tpu.memory_space<vmem>>, vector<4x1xf32>,
      %cst_41 = arith.constant 0.000000e+00 : f32
      %55 = vector.broadcast %cst_41 : f32 to vector<4x16xf32>
      %c0_42 = arith.constant 0 : index
      %c0_43 = arith.constant 0 : index
      %56 = vector.load %arg10[%c0_42, %c0_43] : memref<4x16xf32, #tpu.memory_space<vmem>>, vector<4x16xf32>
      tpu.vector_store %arg10[%c0_42, %c0_43], %55 {strides = array<i32>} : memref<4x16xf32, #tpu.memory_space<vmem>>, vector<4x16xf32>,
    } else {
    }
    %c0 = arith.constant 0 : index
    %c0_1 = arith.constant 0 : index
    %c0_2 = arith.constant 0 : index
    %c0_3 = arith.constant 0 : index
    %3 = vector.load %arg4[%c0, %c0_1, %c0_2, %c0_3] : memref<1x1x4x16xbf16, #tpu.memory_space<vmem>>, vector<1x1x4x16xbf16>
    %4 = vector.shape_cast %3 : vector<1x1x4x16xbf16> to vector<4x16xbf16>
    %c0_4 = arith.constant 0 : index
    %c0_5 = arith.constant 0 : index
    %c0_6 = arith.constant 0 : index
    %c0_7 = arith.constant 0 : index
    %5 = vector.load %arg5[%c0_4, %c0_5, %c0_6, %c0_7] : memref<1x1x4x16xbf16, #tpu.memory_space<vmem>>, vector<1x1x4x16xbf16>
    %6 = vector.shape_cast %5 : vector<1x1x4x16xbf16> to vector<4x16xbf16>
    %c0_8 = arith.constant 0 : index
    %c0_9 = arith.constant 0 : index
    %c0_10 = arith.constant 0 : index
    %c0_11 = arith.constant 0 : index
    %7 = vector.load %arg6[%c0_8, %c0_9, %c0_10, %c0_11] : memref<1x1x4x16xbf16, #tpu.memory_space<vmem>>, vector<1x1x4x16xbf16>
    %8 = vector.shape_cast %7 : vector<1x1x4x16xbf16> to vector<4x16xbf16>
    %cst = arith.constant dense<0.000000e+00> : vector<4x4xf32>
    %9 = tpu.matmul %4, %6, %cst {dimension_numbers = #tpu.dot_dimension_numbers<[1], [1], [0], [0], [0, 0, 1, 0], [], []>} : vector<4x16xbf16>, vector<4x16xbf16>, vector<4x4xf32> -> vector<4x4xf32>
    %cst_12 = arith.constant 2.500000e-01 : f32
    %10 = vector.broadcast %cst_12 : f32 to vector<4x4xf32>
    %11 = arith.mulf %9, %10 : vector<4x4xf32>
    %c4_i32 = arith.constant 4 : i32
    %12 = arith.muli %arg2, %c4_i32 : i32
    %c0_i32_13 = arith.constant 0 : i32
    %13 = arith.addi %c0_i32_13, %12 : i32
    %14 = tpu.iota {dimensions = array<i32: 0>} : vector<4x4xi32>
    %15 = vector.broadcast %13 : i32 to vector<4x4xi32>
    %16 = arith.addi %15, %14 : vector<4x4xi32>
    %c4_i32_14 = arith.constant 4 : i32
    %17 = arith.muli %arg3, %c4_i32_14 : i32
    %18 = tpu.iota {dimensions = array<i32: 1>} : vector<4x4xi32>
    %19 = vector.broadcast %17 : i32 to vector<4x4xi32>
    %20 = arith.addi %19, %18 : vector<4x4xi32>
    %21 = arith.cmpi sle, %20, %16 : vector<4x4xi32>
    %cst_15 = arith.constant -1.000000e+30 : f32
    %22 = vector.broadcast %cst_15 : f32 to vector<4x4xf32>
    %23 = arith.select %21, %11, %22 : vector<4x4xi1>, vector<4x4xf32>
    %c0_16 = arith.constant 0 : index
    %c0_17 = arith.constant 0 : index
    %24 = vector.load %arg8[%c0_16, %c0_17] : memref<4x1xf32, #tpu.memory_space<vmem>>, vector<4x1xf32>
    %cst_18 = arith.constant dense<0xFF800000> : vector<4xf32>
    %25 = vector.multi_reduction <maximumf>, %23, %cst_18 [1] : vector<4x4xf32> to vector<4xf32>
    %26 = vector.shape_cast %25 : vector<4xf32> to vector<4x1xf32>
    %27 = arith.maximumf %24, %26 : vector<4x1xf32>
    %c0_19 = arith.constant 0 : index
    %c0_20 = arith.constant 0 : index
    %28 = vector.load %arg8[%c0_19, %c0_20] : memref<4x1xf32, #tpu.memory_space<vmem>>, vector<4x1xf32>
    %29 = arith.subf %28, %27 : vector<4x1xf32>
    %30 = math.exp %29 : vector<4x1xf32>
    %31 = vector.broadcast %27 : vector<4x1xf32> to vector<4x4xf32>
    %32 = arith.subf %23, %31 : vector<4x4xf32>
    %33 = math.exp %32 : vector<4x4xf32>
    %c0_21 = arith.constant 0 : index
    %c0_22 = arith.constant 0 : index
    %34 = vector.load %arg9[%c0_21, %c0_22] : memref<4x1xf32, #tpu.memory_space<vmem>>, vector<4x1xf32>
    %35 = arith.mulf %30, %34 : vector<4x1xf32>
    %cst_23 = arith.constant dense<0.000000e+00> : vector<4xf32>
    %36 = vector.multi_reduction <add>, %33, %cst_23 [1] : vector<4x4xf32> to vector<4xf32>
    %37 = vector.shape_cast %36 : vector<4xf32> to vector<4x1xf32>
    %38 = arith.addf %35, %37 : vector<4x1xf32>
    %c0_24 = arith.constant 0 : index
    %c0_25 = arith.constant 0 : index
    %39 = vector.load %arg9[%c0_24, %c0_25] : memref<4x1xf32, #tpu.memory_space<vmem>>, vector<4x1xf32>
    tpu.vector_store %arg9[%c0_24, %c0_25], %38 {strides = array<i32>} : memref<4x1xf32, #tpu.memory_space<vmem>>, vector<4x1xf32>,
    %c0_26 = arith.constant 0 : index
    %c0_27 = arith.constant 0 : index
    %40 = vector.load %arg10[%c0_26, %c0_27] : memref<4x16xf32, #tpu.memory_space<vmem>>, vector<4x16xf32>
    %41 = vector.broadcast %30 : vector<4x1xf32> to vector<4x16xf32>
    %42 = arith.mulf %41, %40 : vector<4x16xf32>
    %43 = arith.truncf %33 : vector<4x4xf32> to vector<4x4xbf16>
    %cst_28 = arith.constant dense<0.000000e+00> : vector<4x16xf32>
    %44 = tpu.matmul %43, %8, %cst_28 {dimension_numbers = #tpu.dot_dimension_numbers<[1], [0], [0], [1], [0, 0, 1, 1], [], []>} : vector<4x4xbf16>, vector<4x16xbf16>, vector<4x16xf32> -> vector<4x16xf32>
    %45 = arith.addf %42, %44 : vector<4x16xf32>
    %c0_29 = arith.constant 0 : index
    %c0_30 = arith.constant 0 : index
    %46 = vector.load %arg10[%c0_29, %c0_30] : memref<4x16xf32, #tpu.memory_space<vmem>>, vector<4x16xf32>
    tpu.vector_store %arg10[%c0_29, %c0_30], %45 {strides = array<i32>} : memref<4x16xf32, #tpu.memory_space<vmem>>, vector<4x16xf32>,
    %c0_31 = arith.constant 0 : index
    %c0_32 = arith.constant 0 : index
    %47 = vector.load %arg8[%c0_31, %c0_32] : memref<4x1xf32, #tpu.memory_space<vmem>>, vector<4x1xf32>
    tpu.vector_store %arg8[%c0_31, %c0_32], %27 {strides = array<i32>} : memref<4x1xf32, #tpu.memory_space<vmem>>, vector<4x1xf32>,
    %c0_i32_33 = arith.constant 0 : i32
    %48 = arith.cmpi eq, %arg3, %c0_i32_33 : i32
    %49 = arith.extui %48 : i1 to i32
    %c0_i32_34 = arith.constant 0 : i32
    %50 = arith.cmpi ne, %49, %c0_i32_34 : i32
    scf.if %50 {
      %c0_35 = arith.constant 0 : index
      %c0_36 = arith.constant 0 : index
      %51 = vector.load %arg9[%c0_35, %c0_36] : memref<4x1xf32, #tpu.memory_space<vmem>>, vector<4x1xf32>
      %52 = tpu.reciprocal %51 {approx = true} : vector<4x1xf32> -> vector<4x1xf32>
      %c0_37 = arith.constant 0 : index
      %c0_38 = arith.constant 0 : index
      %53 = vector.load %arg10[%c0_37, %c0_38] : memref<4x16xf32, #tpu.memory_space<vmem>>, vector<4x16xf32>
      %54 = vector.broadcast %52 : vector<4x1xf32> to vector<4x16xf32>
      %55 = arith.mulf %53, %54 : vector<4x16xf32>
      %56 = arith.truncf %55 : vector<4x16xf32> to vector<4x16xbf16>
      %c0_39 = arith.constant 0 : index
      %c0_40 = arith.constant 0 : index
      %c0_41 = arith.constant 0 : index
      %c0_42 = arith.constant 0 : index
      %57 = vector.load %arg7[%c0_39, %c0_40, %c0_41, %c0_42] : memref<1x1x4x16xbf16, #tpu.memory_space<vmem>>, vector<1x1x4x16xbf16>
      %58 = vector.shape_cast %57 : vector<1x1x4x16xbf16> to vector<4x16xbf16>
      %59 = vector.shape_cast %56 : vector<4x16xbf16> to vector<1x1x4x16xbf16>
      tpu.vector_store %arg7[%c0_39, %c0_40, %c0_41, %c0_42], %59 {strides = array<i32>} : memref<1x1x4x16xbf16, #tpu.memory_space<vmem>>, vector<1x1x4x16xbf16>,
    } else {
    }
    return
  }
  func.func @transform_0(%arg0: i32, %arg1: i32, %arg2: i32, %arg3: i32) -> (i32, i32, i32, i32) {
    %c0_i32 = arith.constant 0 : i32
    %c0_i32_0 = arith.constant 0 : i32
    return %arg0, %arg1, %arg2, %c0_i32 : i32, i32, i32, i32
  }
  func.func @transform_1(%arg0: i32, %arg1: i32, %arg2: i32, %arg3: i32) -> (i32, i32, i32, i32) {
    %c0_i32 = arith.constant 0 : i32
    %c0_i32_0 = arith.constant 0 : i32
    return %arg0, %arg1, %arg3, %c0_i32 : i32, i32, i32, i32
  }
  func.func @transform_2(%arg0: i32, %arg1: i32, %arg2: i32, %arg3: i32) -> (i32, i32, i32, i32) {
    %c0_i32 = arith.constant 0 : i32
    %c0_i32_0 = arith.constant 0 : i32
    return %arg0, %arg1, %arg3, %c0_i32 : i32, i32, i32, i32
  }
  func.func @transform_3(%arg0: i32, %arg1: i32, %arg2: i32, %arg3: i32) -> (i32, i32, i32, i32) {
    %c0_i32 = arith.constant 0 : i32
    %c0_i32_0 = arith.constant 0 : i32
    return %arg0, %arg1, %arg2, %c0_i32 : i32, i32, i32, i32
  }
}

module attributes {stable_mosaic.version = 11 : i64} {
  func.func @_linear_acc_kernel(%arg0: i32, %arg1: i32, %arg2: i32, %arg3: memref<8x32xbf16, #tpu.memory_space<vmem>>, %arg4: memref<32x32xbf16, #tpu.memory_space<vmem>>, %arg5: memref<1x32xf32, #tpu.memory_space<vmem>>, %arg6: memref<8x32xf32, #tpu.memory_space<vmem>>, %arg7: memref<8x32xf32, #tpu.memory_space<vmem>>, %arg8: memref<8x32xf32, #tpu.memory_space<vmem>>) attributes {dimension_semantics = [#tpu.dimension_semantics<parallel>, #tpu.dimension_semantics<parallel>, #tpu.dimension_semantics<arbitrary>], iteration_bounds = array<i64: 1, 1, 1>, scalar_prefetch = 0 : i64, scratch_operands = 1 : i64, tpu.core_type = #tpu.core_type<tc>, window_params = [{transform_indices = @transform_0, window_bounds = array<i64: 8, 32>}, {transform_indices = @transform_1, window_bounds = array<i64: 32, 32>}, {transform_indices = @transform_2, window_bounds = array<i64: 1, 32>}, {transform_indices = @transform_3, window_bounds = array<i64: 8, 32>}, {transform_indices = @transform_4, window_bounds = array<i64: 8, 32>}]} {
    %c0_i32 = arith.constant 0 : i32
    %0 = arith.cmpi eq, %arg2, %c0_i32 : i32
    %1 = arith.extui %0 : i1 to i32
    %c0_i32_0 = arith.constant 0 : i32
    %2 = arith.cmpi ne, %1, %c0_i32_0 : i32
    scf.if %2 {
      %cst_10 = arith.constant 0.000000e+00 : f32
      %12 = vector.broadcast %cst_10 : f32 to vector<8x32xf32>
      %c0_11 = arith.constant 0 : index
      %c0_12 = arith.constant 0 : index
      %13 = vector.load %arg8[%c0_11, %c0_12] : memref<8x32xf32, #tpu.memory_space<vmem>>, vector<8x32xf32>
      tpu.vector_store %arg8[%c0_11, %c0_12], %12 {strides = array<i32>} : memref<8x32xf32, #tpu.memory_space<vmem>>, vector<8x32xf32>,
    } else {
    }
    %c0 = arith.constant 0 : index
    %c0_1 = arith.constant 0 : index
    %3 = vector.load %arg8[%c0, %c0_1] : memref<8x32xf32, #tpu.memory_space<vmem>>, vector<8x32xf32>
    %c0_2 = arith.constant 0 : index
    %c0_3 = arith.constant 0 : index
    %4 = vector.load %arg3[%c0_2, %c0_3] : memref<8x32xbf16, #tpu.memory_space<vmem>>, vector<8x32xbf16>
    %c0_4 = arith.constant 0 : index
    %c0_5 = arith.constant 0 : index
    %5 = vector.load %arg4[%c0_4, %c0_5] : memref<32x32xbf16, #tpu.memory_space<vmem>>, vector<32x32xbf16>
    %cst = arith.constant dense<0.000000e+00> : vector<8x32xf32>
    %6 = tpu.matmul %4, %5, %cst {dimension_numbers = #tpu.dot_dimension_numbers<[1], [0], [0], [1], [0, 0, 1, 1], [], []>} : vector<8x32xbf16>, vector<32x32xbf16>, vector<8x32xf32> -> vector<8x32xf32>
    %7 = arith.addf %3, %6 : vector<8x32xf32>
    %c0_6 = arith.constant 0 : index
    %c0_7 = arith.constant 0 : index
    %8 = vector.load %arg8[%c0_6, %c0_7] : memref<8x32xf32, #tpu.memory_space<vmem>>, vector<8x32xf32>
    tpu.vector_store %arg8[%c0_6, %c0_7], %7 {strides = array<i32>} : memref<8x32xf32, #tpu.memory_space<vmem>>, vector<8x32xf32>,
    %c0_i32_8 = arith.constant 0 : i32
    %9 = arith.cmpi eq, %arg2, %c0_i32_8 : i32
    %10 = arith.extui %9 : i1 to i32
    %c0_i32_9 = arith.constant 0 : i32
    %11 = arith.cmpi ne, %10, %c0_i32_9 : i32
    scf.if %11 {
      %c0_10 = arith.constant 0 : index
      %c0_11 = arith.constant 0 : index
      %12 = vector.load %arg8[%c0_10, %c0_11] : memref<8x32xf32, #tpu.memory_space<vmem>>, vector<8x32xf32>
      %c0_12 = arith.constant 0 : index
      %c0_13 = arith.constant 0 : index
      %13 = vector.load %arg5[%c0_12, %c0_13] : memref<1x32xf32, #tpu.memory_space<vmem>>, vector<1x32xf32>
      %14 = vector.broadcast %13 : vector<1x32xf32> to vector<8x32xf32>
      %15 = arith.addf %12, %14 : vector<8x32xf32>
      %c0_14 = arith.constant 0 : index
      %c0_15 = arith.constant 0 : index
      %16 = vector.load %arg6[%c0_14, %c0_15] : memref<8x32xf32, #tpu.memory_space<vmem>>, vector<8x32xf32>
      %17 = arith.addf %15, %16 : vector<8x32xf32>
      %c0_16 = arith.constant 0 : index
      %c0_17 = arith.constant 0 : index
      %18 = vector.load %arg7[%c0_16, %c0_17] : memref<8x32xf32, #tpu.memory_space<vmem>>, vector<8x32xf32>
      tpu.vector_store %arg7[%c0_16, %c0_17], %17 {strides = array<i32>} : memref<8x32xf32, #tpu.memory_space<vmem>>, vector<8x32xf32>,
    } else {
    }
    return
  }
  func.func @transform_0(%arg0: i32, %arg1: i32, %arg2: i32) -> (i32, i32) {
    %c0_i32 = arith.constant 0 : i32
    return %arg0, %arg2 : i32, i32
  }
  func.func @transform_1(%arg0: i32, %arg1: i32, %arg2: i32) -> (i32, i32) {
    %c0_i32 = arith.constant 0 : i32
    return %arg2, %arg1 : i32, i32
  }
  func.func @transform_2(%arg0: i32, %arg1: i32, %arg2: i32) -> (i32, i32) {
    %c0_i32 = arith.constant 0 : i32
    %c0_i32_0 = arith.constant 0 : i32
    return %c0_i32, %arg1 : i32, i32
  }
  func.func @transform_3(%arg0: i32, %arg1: i32, %arg2: i32) -> (i32, i32) {
    %c0_i32 = arith.constant 0 : i32
    return %arg0, %arg1 : i32, i32
  }
  func.func @transform_4(%arg0: i32, %arg1: i32, %arg2: i32) -> (i32, i32) {
    %c0_i32 = arith.constant 0 : i32
    return %arg0, %arg1 : i32, i32
  }
}

module attributes {stable_mosaic.version = 11 : i64} {
  func.func @_ln_linear_kernel(%arg0: i32, %arg1: i32, %arg2: memref<8x32xf32, #tpu.memory_space<vmem>>, %arg3: memref<1x32xf32, #tpu.memory_space<vmem>>, %arg4: memref<1x32xf32, #tpu.memory_space<vmem>>, %arg5: memref<32x128xbf16, #tpu.memory_space<vmem>>, %arg6: memref<1x128xf32, #tpu.memory_space<vmem>>, %arg7: memref<8x128xbf16, #tpu.memory_space<vmem>>, %arg8: memref<8x32xbf16, #tpu.memory_space<vmem>>) attributes {dimension_semantics = [#tpu.dimension_semantics<parallel>, #tpu.dimension_semantics<arbitrary>], iteration_bounds = array<i64: 1, 1>, scalar_prefetch = 0 : i64, scratch_operands = 1 : i64, tpu.core_type = #tpu.core_type<tc>, window_params = [{transform_indices = @transform_0, window_bounds = array<i64: 8, 32>}, {pipeline_mode = #tpu.pipeline_mode<synchronous>, transform_indices = @transform_1, window_bounds = array<i64: 1, 32>}, {pipeline_mode = #tpu.pipeline_mode<synchronous>, transform_indices = @transform_2, window_bounds = array<i64: 1, 32>}, {transform_indices = @transform_3, window_bounds = array<i64: 32, 128>}, {transform_indices = @transform_4, window_bounds = array<i64: 1, 128>}, {transform_indices = @transform_5, window_bounds = array<i64: 8, 128>}]} {
    %c0_i32 = arith.constant 0 : i32
    %0 = arith.cmpi eq, %arg1, %c0_i32 : i32
    %1 = arith.extui %0 : i1 to i32
    %c0_i32_0 = arith.constant 0 : i32
    %2 = arith.cmpi ne, %1, %c0_i32_0 : i32
    scf.if %2 {
      %c0_12 = arith.constant 0 : index
      %c0_13 = arith.constant 0 : index
      %24 = vector.load %arg2[%c0_12, %c0_13] : memref<8x32xf32, #tpu.memory_space<vmem>>, vector<8x32xf32>
      %cst_14 = arith.constant dense<0.000000e+00> : vector<8xf32>
      %25 = vector.multi_reduction <add>, %24, %cst_14 [1] : vector<8x32xf32> to vector<8xf32>
      %26 = vector.shape_cast %25 : vector<8xf32> to vector<8x1xf32>
      %cst_15 = arith.constant 3.200000e+01 : f32
      %27 = vector.broadcast %cst_15 : f32 to vector<8x1xf32>
      %28 = arith.divf %26, %27 : vector<8x1xf32>
      %29 = vector.broadcast %28 : vector<8x1xf32> to vector<8x32xf32>
      %30 = arith.subf %24, %29 : vector<8x32xf32>
      %31 = arith.mulf %30, %30 : vector<8x32xf32>
      %cst_16 = arith.constant dense<0.000000e+00> : vector<8xf32>
      %32 = vector.multi_reduction <add>, %31, %cst_16 [1] : vector<8x32xf32> to vector<8xf32>
      %33 = vector.shape_cast %32 : vector<8xf32> to vector<8x1xf32>
      %cst_17 = arith.constant 3.200000e+01 : f32
      %34 = vector.broadcast %cst_17 : f32 to vector<8x1xf32>
      %35 = arith.divf %33, %34 : vector<8x1xf32>
      %36 = vector.broadcast %28 : vector<8x1xf32> to vector<8x32xf32>
      %37 = arith.subf %24, %36 : vector<8x32xf32>
      %cst_18 = arith.constant 9.99999974E-6 : f32
      %38 = vector.broadcast %cst_18 : f32 to vector<8x1xf32>
      %39 = arith.addf %35, %38 : vector<8x1xf32>
      %40 = math.rsqrt %39 : vector<8x1xf32>
      %41 = vector.broadcast %40 : vector<8x1xf32> to vector<8x32xf32>
      %42 = arith.mulf %37, %41 : vector<8x32xf32>
      %c0_19 = arith.constant 0 : index
      %c0_20 = arith.constant 0 : index
      %43 = vector.load %arg3[%c0_19, %c0_20] : memref<1x32xf32, #tpu.memory_space<vmem>>, vector<1x32xf32>
      %44 = vector.broadcast %43 : vector<1x32xf32> to vector<8x32xf32>
      %45 = arith.mulf %42, %44 : vector<8x32xf32>
      %c0_21 = arith.constant 0 : index
      %c0_22 = arith.constant 0 : index
      %46 = vector.load %arg4[%c0_21, %c0_22] : memref<1x32xf32, #tpu.memory_space<vmem>>, vector<1x32xf32>
      %47 = vector.broadcast %46 : vector<1x32xf32> to vector<8x32xf32>
      %48 = arith.addf %45, %47 : vector<8x32xf32>
      %49 = arith.truncf %48 : vector<8x32xf32> to vector<8x32xbf16>
      %c0_23 = arith.constant 0 : index
      %c0_24 = arith.constant 0 : index
      %50 = vector.load %arg8[%c0_23, %c0_24] : memref<8x32xbf16, #tpu.memory_space<vmem>>, vector<8x32xbf16>
      tpu.vector_store %arg8[%c0_23, %c0_24], %49 {strides = array<i32>} : memref<8x32xbf16, #tpu.memory_space<vmem>>, vector<8x32xbf16>,
    } else {
    }
    %c0 = arith.constant 0 : index
    %c0_1 = arith.constant 0 : index
    %3 = vector.load %arg8[%c0, %c0_1] : memref<8x32xbf16, #tpu.memory_space<vmem>>, vector<8x32xbf16>
    %c0_2 = arith.constant 0 : index
    %c0_3 = arith.constant 0 : index
    %4 = vector.load %arg5[%c0_2, %c0_3] : memref<32x128xbf16, #tpu.memory_space<vmem>>, vector<32x128xbf16>
    %cst = arith.constant dense<0.000000e+00> : vector<8x128xf32>
    %5 = tpu.matmul %3, %4, %cst {dimension_numbers = #tpu.dot_dimension_numbers<[1], [0], [0], [1], [0, 0, 1, 1], [], []>} : vector<8x32xbf16>, vector<32x128xbf16>, vector<8x128xf32> -> vector<8x128xf32>
    %c0_4 = arith.constant 0 : index
    %c0_5 = arith.constant 0 : index
    %6 = vector.load %arg6[%c0_4, %c0_5] : memref<1x128xf32, #tpu.memory_space<vmem>>, vector<1x128xf32>
    %7 = vector.broadcast %6 : vector<1x128xf32> to vector<8x128xf32>
    %8 = arith.addf %5, %7 : vector<8x128xf32>
    %cst_6 = arith.constant 5.000000e-01 : f32
    %9 = vector.broadcast %cst_6 : f32 to vector<8x128xf32>
    %10 = arith.mulf %9, %8 : vector<8x128xf32>
    %cst_7 = arith.constant 4.471500e-02 : f32
    %11 = vector.broadcast %cst_7 : f32 to vector<8x128xf32>
    %12 = arith.mulf %11, %8 : vector<8x128xf32>
    %13 = arith.mulf %12, %8 : vector<8x128xf32>
    %14 = arith.mulf %13, %8 : vector<8x128xf32>
    %15 = arith.addf %8, %14 : vector<8x128xf32>
    %cst_8 = arith.constant 0.797884583 : f32
    %16 = vector.broadcast %cst_8 : f32 to vector<8x128xf32>
    %17 = arith.mulf %16, %15 : vector<8x128xf32>
    %18 = math.tanh %17 : vector<8x128xf32>
    %cst_9 = arith.constant 1.000000e+00 : f32
    %19 = vector.broadcast %cst_9 : f32 to vector<8x128xf32>
    %20 = arith.addf %19, %18 : vector<8x128xf32>
    %21 = arith.mulf %10, %20 : vector<8x128xf32>
    %22 = arith.truncf %21 : vector<8x128xf32> to vector<8x128xbf16>
    %c0_10 = arith.constant 0 : index
    %c0_11 = arith.constant 0 : index
    %23 = vector.load %arg7[%c0_10, %c0_11] : memref<8x128xbf16, #tpu.memory_space<vmem>>, vector<8x128xbf16>
    tpu.vector_store %arg7[%c0_10, %c0_11], %22 {strides = array<i32>} : memref<8x128xbf16, #tpu.memory_space<vmem>>, vector<8x128xbf16>,
    return
  }
  func.func @transform_0(%arg0: i32, %arg1: i32) -> (i32, i32) {
    %c0_i32 = arith.constant 0 : i32
    %c0_i32_0 = arith.constant 0 : i32
    return %arg0, %c0_i32 : i32, i32
  }
  func.func @transform_1(%arg0: i32, %arg1: i32) -> (i32, i32) {
    %c0_i32 = arith.constant 0 : i32
    %c0_i32_0 = arith.constant 0 : i32
    %c0_i32_1 = arith.constant 0 : i32
    return %c0_i32, %c0_i32_0 : i32, i32
  }
  func.func @transform_2(%arg0: i32, %arg1: i32) -> (i32, i32) {
    %c0_i32 = arith.constant 0 : i32
    %c0_i32_0 = arith.constant 0 : i32
    %c0_i32_1 = arith.constant 0 : i32
    return %c0_i32, %c0_i32_0 : i32, i32
  }
  func.func @transform_3(%arg0: i32, %arg1: i32) -> (i32, i32) {
    %c0_i32 = arith.constant 0 : i32
    %c0_i32_0 = arith.constant 0 : i32
    return %c0_i32, %arg1 : i32, i32
  }
  func.func @transform_4(%arg0: i32, %arg1: i32) -> (i32, i32) {
    %c0_i32 = arith.constant 0 : i32
    %c0_i32_0 = arith.constant 0 : i32
    return %c0_i32, %arg1 : i32, i32
  }
  func.func @transform_5(%arg0: i32, %arg1: i32) -> (i32, i32) {
    %c0_i32 = arith.constant 0 : i32
    return %arg0, %arg1 : i32, i32
  }
}

module attributes {stable_mosaic.version = 11 : i64} {
  func.func @_linear_acc_kernel(%arg0: i32, %arg1: i32, %arg2: i32, %arg3: memref<8x128xbf16, #tpu.memory_space<vmem>>, %arg4: memref<128x32xbf16, #tpu.memory_space<vmem>>, %arg5: memref<1x32xf32, #tpu.memory_space<vmem>>, %arg6: memref<8x32xf32, #tpu.memory_space<vmem>>, %arg7: memref<8x32xf32, #tpu.memory_space<vmem>>, %arg8: memref<8x32xf32, #tpu.memory_space<vmem>>) attributes {dimension_semantics = [#tpu.dimension_semantics<parallel>, #tpu.dimension_semantics<parallel>, #tpu.dimension_semantics<arbitrary>], iteration_bounds = array<i64: 1, 1, 1>, scalar_prefetch = 0 : i64, scratch_operands = 1 : i64, tpu.core_type = #tpu.core_type<tc>, window_params = [{transform_indices = @transform_0, window_bounds = array<i64: 8, 128>}, {transform_indices = @transform_1, window_bounds = array<i64: 128, 32>}, {transform_indices = @transform_2, window_bounds = array<i64: 1, 32>}, {transform_indices = @transform_3, window_bounds = array<i64: 8, 32>}, {transform_indices = @transform_4, window_bounds = array<i64: 8, 32>}]} {
    %c0_i32 = arith.constant 0 : i32
    %0 = arith.cmpi eq, %arg2, %c0_i32 : i32
    %1 = arith.extui %0 : i1 to i32
    %c0_i32_0 = arith.constant 0 : i32
    %2 = arith.cmpi ne, %1, %c0_i32_0 : i32
    scf.if %2 {
      %cst_10 = arith.constant 0.000000e+00 : f32
      %12 = vector.broadcast %cst_10 : f32 to vector<8x32xf32>
      %c0_11 = arith.constant 0 : index
      %c0_12 = arith.constant 0 : index
      %13 = vector.load %arg8[%c0_11, %c0_12] : memref<8x32xf32, #tpu.memory_space<vmem>>, vector<8x32xf32>
      tpu.vector_store %arg8[%c0_11, %c0_12], %12 {strides = array<i32>} : memref<8x32xf32, #tpu.memory_space<vmem>>, vector<8x32xf32>,
    } else {
    }
    %c0 = arith.constant 0 : index
    %c0_1 = arith.constant 0 : index
    %3 = vector.load %arg8[%c0, %c0_1] : memref<8x32xf32, #tpu.memory_space<vmem>>, vector<8x32xf32>
    %c0_2 = arith.constant 0 : index
    %c0_3 = arith.constant 0 : index
    %4 = vector.load %arg3[%c0_2, %c0_3] : memref<8x128xbf16, #tpu.memory_space<vmem>>, vector<8x128xbf16>
    %c0_4 = arith.constant 0 : index
    %c0_5 = arith.constant 0 : index
    %5 = vector.load %arg4[%c0_4, %c0_5] : memref<128x32xbf16, #tpu.memory_space<vmem>>, vector<128x32xbf16>
    %cst = arith.constant dense<0.000000e+00> : vector<8x32xf32>
    %6 = tpu.matmul %4, %5, %cst {dimension_numbers = #tpu.dot_dimension_numbers<[1], [0], [0], [1], [0, 0, 1, 1], [], []>} : vector<8x128xbf16>, vector<128x32xbf16>, vector<8x32xf32> -> vector<8x32xf32>
    %7 = arith.addf %3, %6 : vector<8x32xf32>
    %c0_6 = arith.constant 0 : index
    %c0_7 = arith.constant 0 : index
    %8 = vector.load %arg8[%c0_6, %c0_7] : memref<8x32xf32, #tpu.memory_space<vmem>>, vector<8x32xf32>
    tpu.vector_store %arg8[%c0_6, %c0_7], %7 {strides = array<i32>} : memref<8x32xf32, #tpu.memory_space<vmem>>, vector<8x32xf32>,
    %c0_i32_8 = arith.constant 0 : i32
    %9 = arith.cmpi eq, %arg2, %c0_i32_8 : i32
    %10 = arith.extui %9 : i1 to i32
    %c0_i32_9 = arith.constant 0 : i32
    %11 = arith.cmpi ne, %10, %c0_i32_9 : i32
    scf.if %11 {
      %c0_10 = arith.constant 0 : index
      %c0_11 = arith.constant 0 : index
      %12 = vector.load %arg8[%c0_10, %c0_11] : memref<8x32xf32, #tpu.memory_space<vmem>>, vector<8x32xf32>
      %c0_12 = arith.constant 0 : index
      %c0_13 = arith.constant 0 : index
      %13 = vector.load %arg5[%c0_12, %c0_13] : memref<1x32xf32, #tpu.memory_space<vmem>>, vector<1x32xf32>
      %14 = vector.broadcast %13 : vector<1x32xf32> to vector<8x32xf32>
      %15 = arith.addf %12, %14 : vector<8x32xf32>
      %c0_14 = arith.constant 0 : index
      %c0_15 = arith.constant 0 : index
      %16 = vector.load %arg6[%c0_14, %c0_15] : memref<8x32xf32, #tpu.memory_space<vmem>>, vector<8x32xf32>
      %17 = arith.addf %15, %16 : vector<8x32xf32>
      %c0_16 = arith.constant 0 : index
      %c0_17 = arith.constant 0 : index
      %18 = vector.load %arg7[%c0_16, %c0_17] : memref<8x32xf32, #tpu.memory_space<vmem>>, vector<8x32xf32>
      tpu.vector_store %arg7[%c0_16, %c0_17], %17 {strides = array<i32>} : memref<8x32xf32, #tpu.memory_space<vmem>>, vector<8x32xf32>,
    } else {
    }
    return
  }
  func.func @transform_0(%arg0: i32, %arg1: i32, %arg2: i32) -> (i32, i32) {
    %c0_i32 = arith.constant 0 : i32
    return %arg0, %arg2 : i32, i32
  }
  func.func @transform_1(%arg0: i32, %arg1: i32, %arg2: i32) -> (i32, i32) {
    %c0_i32 = arith.constant 0 : i32
    return %arg2, %arg1 : i32, i32
  }
  func.func @transform_2(%arg0: i32, %arg1: i32, %arg2: i32) -> (i32, i32) {
    %c0_i32 = arith.constant 0 : i32
    %c0_i32_0 = arith.constant 0 : i32
    return %c0_i32, %arg1 : i32, i32
  }
  func.func @transform_3(%arg0: i32, %arg1: i32, %arg2: i32) -> (i32, i32) {
    %c0_i32 = arith.constant 0 : i32
    return %arg0, %arg1 : i32, i32
  }
  func.func @transform_4(%arg0: i32, %arg1: i32, %arg2: i32) -> (i32, i32) {
    %c0_i32 = arith.constant 0 : i32
    return %arg0, %arg1 : i32, i32
  }
}

module attributes {stable_mosaic.version = 11 : i64} {
  func.func @_lmhead_ce_kernel(%arg0: i32, %arg1: i32, %arg2: memref<16x32xf32, #tpu.memory_space<vmem>>, %arg3: memref<1x32xf32, #tpu.memory_space<vmem>>, %arg4: memref<1x32xf32, #tpu.memory_space<vmem>>, %arg5: memref<32x128xbf16, #tpu.memory_space<vmem>>, %arg6: memref<16x1xi32, #tpu.memory_space<vmem>>, %arg7: memref<1x128xf32, #tpu.memory_space<vmem>>, %arg8: memref<16x32xbf16, #tpu.memory_space<vmem>>, %arg9: memref<16x1xf32, #tpu.memory_space<vmem>>, %arg10: memref<16x1xf32, #tpu.memory_space<vmem>>, %arg11: memref<16x1xf32, #tpu.memory_space<vmem>>, %arg12: memref<16x1xf32, #tpu.memory_space<vmem>>, %arg13: memref<16x1xi32, #tpu.memory_space<vmem>>) attributes {dimension_semantics = [#tpu.dimension_semantics<arbitrary>, #tpu.dimension_semantics<arbitrary>], iteration_bounds = array<i64: 1, 1>, scalar_prefetch = 0 : i64, scratch_operands = 6 : i64, tpu.core_type = #tpu.core_type<tc>, window_params = [{transform_indices = @transform_0, window_bounds = array<i64: 16, 32>}, {pipeline_mode = #tpu.pipeline_mode<synchronous>, transform_indices = @transform_1, window_bounds = array<i64: 1, 32>}, {pipeline_mode = #tpu.pipeline_mode<synchronous>, transform_indices = @transform_2, window_bounds = array<i64: 1, 32>}, {transform_indices = @transform_3, window_bounds = array<i64: 32, 128>}, {transform_indices = @transform_4, window_bounds = array<i64: 16, 1>}, {pipeline_mode = #tpu.pipeline_mode<synchronous>, transform_indices = @transform_5, window_bounds = array<i64: 1, 128>}]} {
    %c0_i32 = arith.constant 0 : i32
    %0 = arith.cmpi eq, %arg0, %c0_i32 : i32
    %c0_i32_0 = arith.constant 0 : i32
    %1 = arith.cmpi eq, %arg1, %c0_i32_0 : i32
    %2 = arith.andi %0, %1 : i1
    %3 = arith.extui %2 : i1 to i32
    %c0_i32_1 = arith.constant 0 : i32
    %4 = arith.cmpi ne, %3, %c0_i32_1 : i32
    scf.if %4 {
      %cst_40 = arith.constant 0.000000e+00 : f32
      %59 = vector.broadcast %cst_40 : f32 to vector<1x128xf32>
      %c0_41 = arith.constant 0 : index
      %c0_42 = arith.constant 0 : index
      %60 = vector.load %arg7[%c0_41, %c0_42] : memref<1x128xf32, #tpu.memory_space<vmem>>, vector<1x128xf32>
      tpu.vector_store %arg7[%c0_41, %c0_42], %59 {strides = array<i32>} : memref<1x128xf32, #tpu.memory_space<vmem>>, vector<1x128xf32>,
    } else {
    }
    %c0_i32_2 = arith.constant 0 : i32
    %5 = arith.cmpi eq, %arg1, %c0_i32_2 : i32
    %6 = arith.extui %5 : i1 to i32
    %c0_i32_3 = arith.constant 0 : i32
    %7 = arith.cmpi ne, %6, %c0_i32_3 : i32
    scf.if %7 {
      %c0_40 = arith.constant 0 : index
      %c0_41 = arith.constant 0 : index
      %59 = vector.load %arg2[%c0_40, %c0_41] : memref<16x32xf32, #tpu.memory_space<vmem>>, vector<16x32xf32>
      %cst_42 = arith.constant dense<0.000000e+00> : vector<16xf32>
      %60 = vector.multi_reduction <add>, %59, %cst_42 [1] : vector<16x32xf32> to vector<16xf32>
      %61 = vector.shape_cast %60 : vector<16xf32> to vector<16x1xf32>
      %cst_43 = arith.constant 3.200000e+01 : f32
      %62 = vector.broadcast %cst_43 : f32 to vector<16x1xf32>
      %63 = arith.divf %61, %62 : vector<16x1xf32>
      %64 = vector.broadcast %63 : vector<16x1xf32> to vector<16x32xf32>
      %65 = arith.subf %59, %64 : vector<16x32xf32>
      %66 = arith.mulf %65, %65 : vector<16x32xf32>
      %cst_44 = arith.constant dense<0.000000e+00> : vector<16xf32>
      %67 = vector.multi_reduction <add>, %66, %cst_44 [1] : vector<16x32xf32> to vector<16xf32>
      %68 = vector.shape_cast %67 : vector<16xf32> to vector<16x1xf32>
      %cst_45 = arith.constant 3.200000e+01 : f32
      %69 = vector.broadcast %cst_45 : f32 to vector<16x1xf32>
      %70 = arith.divf %68, %69 : vector<16x1xf32>
      %71 = vector.broadcast %63 : vector<16x1xf32> to vector<16x32xf32>
      %72 = arith.subf %59, %71 : vector<16x32xf32>
      %cst_46 = arith.constant 9.99999974E-6 : f32
      %73 = vector.broadcast %cst_46 : f32 to vector<16x1xf32>
      %74 = arith.addf %70, %73 : vector<16x1xf32>
      %75 = math.rsqrt %74 : vector<16x1xf32>
      %76 = vector.broadcast %75 : vector<16x1xf32> to vector<16x32xf32>
      %77 = arith.mulf %72, %76 : vector<16x32xf32>
      %c0_47 = arith.constant 0 : index
      %c0_48 = arith.constant 0 : index
      %78 = vector.load %arg3[%c0_47, %c0_48] : memref<1x32xf32, #tpu.memory_space<vmem>>, vector<1x32xf32>
      %79 = vector.broadcast %78 : vector<1x32xf32> to vector<16x32xf32>
      %80 = arith.mulf %77, %79 : vector<16x32xf32>
      %c0_49 = arith.constant 0 : index
      %c0_50 = arith.constant 0 : index
      %81 = vector.load %arg4[%c0_49, %c0_50] : memref<1x32xf32, #tpu.memory_space<vmem>>, vector<1x32xf32>
      %82 = vector.broadcast %81 : vector<1x32xf32> to vector<16x32xf32>
      %83 = arith.addf %80, %82 : vector<16x32xf32>
      %84 = arith.truncf %83 : vector<16x32xf32> to vector<16x32xbf16>
      %c0_51 = arith.constant 0 : index
      %c0_52 = arith.constant 0 : index
      %85 = vector.load %arg8[%c0_51, %c0_52] : memref<16x32xbf16, #tpu.memory_space<vmem>>, vector<16x32xbf16>
      tpu.vector_store %arg8[%c0_51, %c0_52], %84 {strides = array<i32>} : memref<16x32xbf16, #tpu.memory_space<vmem>>, vector<16x32xbf16>,
      %cst_53 = arith.constant 0xFF800000 : f32
      %86 = vector.broadcast %cst_53 : f32 to vector<16x1xf32>
      %c0_54 = arith.constant 0 : index
      %c0_55 = arith.constant 0 : index
      %87 = vector.load %arg9[%c0_54, %c0_55] : memref<16x1xf32, #tpu.memory_space<vmem>>, vector<16x1xf32>
      tpu.vector_store %arg9[%c0_54, %c0_55], %86 {strides = array<i32>} : memref<16x1xf32, #tpu.memory_space<vmem>>, vector<16x1xf32>,
      %cst_56 = arith.constant 0.000000e+00 : f32
      %88 = vector.broadcast %cst_56 : f32 to vector<16x1xf32>
      %c0_57 = arith.constant 0 : index
      %c0_58 = arith.constant 0 : index
      %89 = vector.load %arg10[%c0_57, %c0_58] : memref<16x1xf32, #tpu.memory_space<vmem>>, vector<16x1xf32>
      tpu.vector_store %arg10[%c0_57, %c0_58], %88 {strides = array<i32>} : memref<16x1xf32, #tpu.memory_space<vmem>>, vector<16x1xf32>,
      %cst_59 = arith.constant 0.000000e+00 : f32
      %90 = vector.broadcast %cst_59 : f32 to vector<16x1xf32>
      %c0_60 = arith.constant 0 : index
      %c0_61 = arith.constant 0 : index
      %91 = vector.load %arg11[%c0_60, %c0_61] : memref<16x1xf32, #tpu.memory_space<vmem>>, vector<16x1xf32>
      tpu.vector_store %arg11[%c0_60, %c0_61], %90 {strides = array<i32>} : memref<16x1xf32, #tpu.memory_space<vmem>>, vector<16x1xf32>,
      %cst_62 = arith.constant 0xFF800000 : f32
      %92 = vector.broadcast %cst_62 : f32 to vector<16x1xf32>
      %c0_63 = arith.constant 0 : index
      %c0_64 = arith.constant 0 : index
      %93 = vector.load %arg12[%c0_63, %c0_64] : memref<16x1xf32, #tpu.memory_space<vmem>>, vector<16x1xf32>
      tpu.vector_store %arg12[%c0_63, %c0_64], %92 {strides = array<i32>} : memref<16x1xf32, #tpu.memory_space<vmem>>, vector<16x1xf32>,
      %c0_i32_65 = arith.constant 0 : i32
      %94 = vector.broadcast %c0_i32_65 : i32 to vector<16x1xi32>
      %c0_66 = arith.constant 0 : index
      %c0_67 = arith.constant 0 : index
      %95 = vector.load %arg13[%c0_66, %c0_67] : memref<16x1xi32, #tpu.memory_space<vmem>>, vector<16x1xi32>
      tpu.vector_store %arg13[%c0_66, %c0_67], %94 {strides = array<i32>} : memref<16x1xi32, #tpu.memory_space<vmem>>, vector<16x1xi32>,
    } else {
    }
    %c0 = arith.constant 0 : index
    %c0_4 = arith.constant 0 : index
    %8 = vector.load %arg8[%c0, %c0_4] : memref<16x32xbf16, #tpu.memory_space<vmem>>, vector<16x32xbf16>
    %c0_5 = arith.constant 0 : index
    %c0_6 = arith.constant 0 : index
    %9 = vector.load %arg5[%c0_5, %c0_6] : memref<32x128xbf16, #tpu.memory_space<vmem>>, vector<32x128xbf16>
    %cst = arith.constant dense<0.000000e+00> : vector<16x128xf32>
    %10 = tpu.matmul %8, %9, %cst {dimension_numbers = #tpu.dot_dimension_numbers<[1], [0], [0], [1], [0, 0, 1, 1], [], []>} : vector<16x32xbf16>, vector<32x128xbf16>, vector<16x128xf32> -> vector<16x128xf32>
    %c0_7 = arith.constant 0 : index
    %c0_8 = arith.constant 0 : index
    %11 = vector.load %arg6[%c0_7, %c0_8] : memref<16x1xi32, #tpu.memory_space<vmem>>, vector<16x1xi32>
    %c128_i32 = arith.constant 128 : i32
    %12 = arith.muli %arg1, %c128_i32 : i32
    %13 = tpu.iota {dimensions = array<i32: 1>} : vector<16x128xi32>
    %14 = vector.broadcast %12 : i32 to vector<16x128xi32>
    %15 = arith.addi %14, %13 : vector<16x128xi32>
    %cst_9 = arith.constant dense<0xFF800000> : vector<16xf32>
    %16 = vector.multi_reduction <maximumf>, %10, %cst_9 [1] : vector<16x128xf32> to vector<16xf32>
    %17 = vector.shape_cast %16 : vector<16xf32> to vector<16x1xf32>
    %c0_10 = arith.constant 0 : index
    %c0_11 = arith.constant 0 : index
    %18 = vector.load %arg9[%c0_10, %c0_11] : memref<16x1xf32, #tpu.memory_space<vmem>>, vector<16x1xf32>
    %19 = arith.maximumf %18, %17 : vector<16x1xf32>
    %c0_12 = arith.constant 0 : index
    %c0_13 = arith.constant 0 : index
    %20 = vector.load %arg10[%c0_12, %c0_13] : memref<16x1xf32, #tpu.memory_space<vmem>>, vector<16x1xf32>
    %c0_14 = arith.constant 0 : index
    %c0_15 = arith.constant 0 : index
    %21 = vector.load %arg9[%c0_14, %c0_15] : memref<16x1xf32, #tpu.memory_space<vmem>>, vector<16x1xf32>
    %22 = arith.subf %21, %19 : vector<16x1xf32>
    %23 = math.exp %22 : vector<16x1xf32>
    %24 = arith.mulf %20, %23 : vector<16x1xf32>
    %25 = vector.broadcast %19 : vector<16x1xf32> to vector<16x128xf32>
    %26 = arith.subf %10, %25 : vector<16x128xf32>
    %27 = math.exp %26 : vector<16x128xf32>
    %cst_16 = arith.constant dense<0.000000e+00> : vector<16xf32>
    %28 = vector.multi_reduction <add>, %27, %cst_16 [1] : vector<16x128xf32> to vector<16xf32>
    %29 = vector.shape_cast %28 : vector<16xf32> to vector<16x1xf32>
    %30 = arith.addf %24, %29 : vector<16x1xf32>
    %c0_17 = arith.constant 0 : index
    %c0_18 = arith.constant 0 : index
    %31 = vector.load %arg10[%c0_17, %c0_18] : memref<16x1xf32, #tpu.memory_space<vmem>>, vector<16x1xf32>
    tpu.vector_store %arg10[%c0_17, %c0_18], %30 {strides = array<i32>} : memref<16x1xf32, #tpu.memory_space<vmem>>, vector<16x1xf32>,
    %c0_19 = arith.constant 0 : index
    %c0_20 = arith.constant 0 : index
    %32 = vector.load %arg9[%c0_19, %c0_20] : memref<16x1xf32, #tpu.memory_space<vmem>>, vector<16x1xf32>
    tpu.vector_store %arg9[%c0_19, %c0_20], %19 {strides = array<i32>} : memref<16x1xf32, #tpu.memory_space<vmem>>, vector<16x1xf32>,
    %c0_21 = arith.constant 0 : index
    %c0_22 = arith.constant 0 : index
    %33 = vector.load %arg11[%c0_21, %c0_22] : memref<16x1xf32, #tpu.memory_space<vmem>>, vector<16x1xf32>
    %34 = vector.broadcast %11 : vector<16x1xi32> to vector<16x128xi32>
    %35 = arith.cmpi eq, %15, %34 : vector<16x128xi32>
    %cst_23 = arith.constant 0.000000e+00 : f32
    %36 = vector.broadcast %cst_23 : f32 to vector<16x128xf32>
    %37 = arith.select %35, %10, %36 : vector<16x128xi1>, vector<16x128xf32>
    %cst_24 = arith.constant dense<0.000000e+00> : vector<16xf32>
    %38 = vector.multi_reduction <add>, %37, %cst_24 [1] : vector<16x128xf32> to vector<16xf32>
    %39 = vector.shape_cast %38 : vector<16xf32> to vector<16x1xf32>
    %40 = arith.addf %33, %39 : vector<16x1xf32>
    %c0_25 = arith.constant 0 : index
    %c0_26 = arith.constant 0 : index
    %41 = vector.load %arg11[%c0_25, %c0_26] : memref<16x1xf32, #tpu.memory_space<vmem>>, vector<16x1xf32>
    tpu.vector_store %arg11[%c0_25, %c0_26], %40 {strides = array<i32>} : memref<16x1xf32, #tpu.memory_space<vmem>>, vector<16x1xf32>,
    %42 = vector.broadcast %17 : vector<16x1xf32> to vector<16x128xf32>
    %43 = arith.cmpf oeq, %10, %42 : vector<16x128xf32>
    %c1073741824_i32 = arith.constant 1073741824 : i32
    %44 = vector.broadcast %c1073741824_i32 : i32 to vector<16x128xi32>
    %45 = arith.select %43, %15, %44 : vector<16x128xi1>, vector<16x128xi32>
    %cst_27 = arith.constant dense<2147483647> : vector<16xi32>
    %46 = vector.multi_reduction <minsi>, %45, %cst_27 [1] : vector<16x128xi32> to vector<16xi32>
    %47 = vector.shape_cast %46 : vector<16xi32> to vector<16x1xi32>
    %c0_28 = arith.constant 0 : index
    %c0_29 = arith.constant 0 : index
    %48 = vector.load %arg12[%c0_28, %c0_29] : memref<16x1xf32, #tpu.memory_space<vmem>>, vector<16x1xf32>
    %49 = arith.cmpf ogt, %17, %48 : vector<16x1xf32>
    %c0_30 = arith.constant 0 : index
    %c0_31 = arith.constant 0 : index
    %50 = vector.load %arg13[%c0_30, %c0_31] : memref<16x1xi32, #tpu.memory_space<vmem>>, vector<16x1xi32>
    %51 = arith.select %49, %47, %50 : vector<16x1xi1>, vector<16x1xi32>
    %c0_32 = arith.constant 0 : index
    %c0_33 = arith.constant 0 : index
    %52 = vector.load %arg13[%c0_32, %c0_33] : memref<16x1xi32, #tpu.memory_space<vmem>>, vector<16x1xi32>
    tpu.vector_store %arg13[%c0_32, %c0_33], %51 {strides = array<i32>} : memref<16x1xi32, #tpu.memory_space<vmem>>, vector<16x1xi32>,
    %c0_34 = arith.constant 0 : index
    %c0_35 = arith.constant 0 : index
    %53 = vector.load %arg12[%c0_34, %c0_35] : memref<16x1xf32, #tpu.memory_space<vmem>>, vector<16x1xf32>
    %54 = arith.maximumf %53, %17 : vector<16x1xf32>
    %c0_36 = arith.constant 0 : index
    %c0_37 = arith.constant 0 : index
    %55 = vector.load %arg12[%c0_36, %c0_37] : memref<16x1xf32, #tpu.memory_space<vmem>>, vector<16x1xf32>
    tpu.vector_store %arg12[%c0_36, %c0_37], %54 {strides = array<i32>} : memref<16x1xf32, #tpu.memory_space<vmem>>, vector<16x1xf32>,
    %c0_i32_38 = arith.constant 0 : i32
    %56 = arith.cmpi eq, %arg1, %c0_i32_38 : i32
    %57 = arith.extui %56 : i1 to i32
    %c0_i32_39 = arith.constant 0 : i32
    %58 = arith.cmpi ne, %57, %c0_i32_39 : i32
    scf.if %58 {
      %c0_40 = arith.constant 0 : index
      %c0_41 = arith.constant 0 : index
      %59 = vector.load %arg9[%c0_40, %c0_41] : memref<16x1xf32, #tpu.memory_space<vmem>>, vector<16x1xf32>
      %c0_42 = arith.constant 0 : index
      %c0_43 = arith.constant 0 : index
      %60 = vector.load %arg10[%c0_42, %c0_43] : memref<16x1xf32, #tpu.memory_space<vmem>>, vector<16x1xf32>
      %61 = math.log %60 : vector<16x1xf32>
      %62 = arith.addf %59, %61 : vector<16x1xf32>
      %c-1_i32 = arith.constant -1 : i32
      %63 = vector.broadcast %c-1_i32 : i32 to vector<16x1xi32>
      %64 = arith.cmpi ne, %11, %63 : vector<16x1xi32>
      %c0_44 = arith.constant 0 : index
      %c0_45 = arith.constant 0 : index
      %65 = vector.load %arg11[%c0_44, %c0_45] : memref<16x1xf32, #tpu.memory_space<vmem>>, vector<16x1xf32>
      %66 = arith.subf %62, %65 : vector<16x1xf32>
      %cst_46 = arith.constant 0.000000e+00 : f32
      %67 = vector.broadcast %cst_46 : f32 to vector<16x1xf32>
      %68 = arith.select %64, %66, %67 : vector<16x1xi1>, vector<16x1xf32>
      %c0_47 = arith.constant 0 : index
      %c0_48 = arith.constant 0 : index
      %69 = vector.load %arg13[%c0_47, %c0_48] : memref<16x1xi32, #tpu.memory_space<vmem>>, vector<16x1xi32>
      %70 = arith.cmpi eq, %69, %11 : vector<16x1xi32>
      %71 = arith.extui %70 : vector<16x1xi1> to vector<16x1xi32>
      %72 = arith.sitofp %71 : vector<16x1xi32> to vector<16x1xf32>
      %73 = tpu.iota {dimensions = array<i32: 1>} : vector<1x128xi32>
      %c0_i32_49 = arith.constant 0 : i32
      %74 = vector.broadcast %c0_i32_49 : i32 to vector<1x128xi32>
      %75 = arith.cmpi eq, %73, %74 : vector<1x128xi32>
      %76 = vector.shape_cast %68 : vector<16x1xf32> to vector<1x16x1xf32>
      %cst_50 = arith.constant dense<0.000000e+00> : vector<1xf32>
      %77 = vector.multi_reduction <add>, %76, %cst_50 [1, 2] : vector<1x16x1xf32> to vector<1xf32>
      %78 = vector.shape_cast %77 : vector<1xf32> to vector<1x1x1xf32>
      %79 = vector.extract %78[0, 0, 0] : f32 from vector<1x1x1xf32>
      %c1_i32 = arith.constant 1 : i32
      %80 = vector.broadcast %c1_i32 : i32 to vector<1x128xi32>
      %81 = arith.cmpi eq, %73, %80 : vector<1x128xi32>
      %82 = vector.shape_cast %72 : vector<16x1xf32> to vector<1x16x1xf32>
      %cst_51 = arith.constant dense<0.000000e+00> : vector<1xf32>
      %83 = vector.multi_reduction <add>, %82, %cst_51 [1, 2] : vector<1x16x1xf32> to vector<1xf32>
      %84 = vector.shape_cast %83 : vector<1xf32> to vector<1x1x1xf32>
      %85 = vector.extract %84[0, 0, 0] : f32 from vector<1x1x1xf32>
      %cst_52 = arith.constant 0.000000e+00 : f32
      %86 = vector.broadcast %85 : f32 to vector<1x128xf32>
      %87 = vector.broadcast %cst_52 : f32 to vector<1x128xf32>
      %88 = arith.select %81, %86, %87 : vector<1x128xi1>, vector<1x128xf32>
      %89 = vector.broadcast %79 : f32 to vector<1x128xf32>
      %90 = arith.select %75, %89, %88 : vector<1x128xi1>, vector<1x128xf32>
      %c0_53 = arith.constant 0 : index
      %c0_54 = arith.constant 0 : index
      %91 = vector.load %arg7[%c0_53, %c0_54] : memref<1x128xf32, #tpu.memory_space<vmem>>, vector<1x128xf32>
      %92 = arith.addf %91, %90 : vector<1x128xf32>
      %c0_55 = arith.constant 0 : index
      %c0_56 = arith.constant 0 : index
      %93 = vector.load %arg7[%c0_55, %c0_56] : memref<1x128xf32, #tpu.memory_space<vmem>>, vector<1x128xf32>
      tpu.vector_store %arg7[%c0_55, %c0_56], %92 {strides = array<i32>} : memref<1x128xf32, #tpu.memory_space<vmem>>, vector<1x128xf32>,
    } else {
    }
    return
  }
  func.func @transform_0(%arg0: i32, %arg1: i32) -> (i32, i32) {
    %c0_i32 = arith.constant 0 : i32
    %c0_i32_0 = arith.constant 0 : i32
    return %arg0, %c0_i32 : i32, i32
  }
  func.func @transform_1(%arg0: i32, %arg1: i32) -> (i32, i32) {
    %c0_i32 = arith.constant 0 : i32
    %c0_i32_0 = arith.constant 0 : i32
    %c0_i32_1 = arith.constant 0 : i32
    return %c0_i32, %c0_i32_0 : i32, i32
  }
  func.func @transform_2(%arg0: i32, %arg1: i32) -> (i32, i32) {
    %c0_i32 = arith.constant 0 : i32
    %c0_i32_0 = arith.constant 0 : i32
    %c0_i32_1 = arith.constant 0 : i32
    return %c0_i32, %c0_i32_0 : i32, i32
  }
  func.func @transform_3(%arg0: i32, %arg1: i32) -> (i32, i32) {
    %c0_i32 = arith.constant 0 : i32
    %c0_i32_0 = arith.constant 0 : i32
    return %c0_i32, %arg1 : i32, i32
  }
  func.func @transform_4(%arg0: i32, %arg1: i32) -> (i32, i32) {
    %c0_i32 = arith.constant 0 : i32
    %c0_i32_0 = arith.constant 0 : i32
    return %arg0, %c0_i32 : i32, i32
  }
  func.func @transform_5(%arg0: i32, %arg1: i32) -> (i32, i32) {
    %c0_i32 = arith.constant 0 : i32
    %c0_i32_0 = arith.constant 0 : i32
    %c0_i32_1 = arith.constant 0 : i32
    return %c0_i32, %c0_i32_0 : i32, i32
  }
}

</mosaic_0001>

<bundles_post_ra>
// kernel: gpt2_decoder_forward.25
= control target key start
LH: loop header
LB: loop body
LE: loop exit
PB: predicated region body
PF: predicated region fallthrough
CT: control target
= control target key end

     0   :  { %vm27_vm0 = vcmask 261120   ;;  %v176_v4 = vmov 32.0   ;;  %vm93_vm6 = vcmask 257024   ;;  %vm143_vm9 = vcmask 781312   ;;  %s239_s0 = inlined_call_operand.vmem [shape: f32[16,32], index: 0, kind: input, shape index: {}]   ;;  %s240_s1 = inlined_call_operand.vmem [shape: f32[1,32], index: 1, kind: input, shape index: {}]   ;;  %s241_s2 = inlined_call_operand.vmem [shape: f32[1,32], index: 2, kind: input, shape index: {}]   ;;  %s242_s4 = inlined_call_operand.vmem [shape: f32[1,96], index: 4, kind: input, shape index: {}]   ;;  %s243_s3 = inlined_call_operand.vmem [shape: bf16[32,96], index: 3, kind: input, shape index: {}]   ;;  %s244_s5 = inlined_call_operand.vmem [shape: bf16[16,96], index: 5, kind: output, shape index: {}]  }
   0x1   :  { %v25_v0 = vld [vmem:[%s239_s0] sm:$0xff]  ;;  %v26_v2 = vld [vmem:[%s239_s0 + $0x8] sm:$0xff]  ;;  %170 = vrcp.f32 %v176_v4 }
   0x2   :  { %v28_v1 = vsel %vm27_vm0, %v25_v0, 0.0  ;;  %v31_v3 = vsel %vm27_vm0, %v26_v2, 0.0  ;;  %v165_v24 = vld [vmem:[%s243_s3 + $0x8] sm:$0xff]  ;;  %v164_v27 = vld [vmem:[%s243_s3] sm:$0xff] }
   0x3   :  { %29 = vadd.xlane.f32.xlu0 %v28_v1  ;;  %133 = vmatpush.bf16.msra.mxu0 %v165_v24  ;;  %v167_v37 = vld [vmem:[%s240_s1] ss:$0 sm:$0xff] }
   0x4   :  { %v168_v40 = vld [vmem:[%s241_s2] ss:$0 sm:$0xff] }
   0x5   :  { %v169_v54 = vld [vmem:[%s242_s4] ss:$0 sm:$0xff] }
   0x7   :  { %v171_v5 = vpop.eup %170  ;;  %134 = vmatpush.bf16.msra.mxu0 %v164_v27 }
   0x8   :  { %v35_v6 = vmul.f32 32.0, %v171_v5  ;;  %vm39_vm1 = vweird.f32 %v171_v5 }
   0xa   :  { %v36_v7 = vsub.f32 1.0, %v35_v6 }
   0xb   :  { %32 = vadd.xlane.f32.xlu0 %v31_v3 }
   0xc   :  { %v37_v8 = vmul.f32 %v171_v5, %v36_v7 }
   0xe   :  { %v38_v9 = vadd.f32 %v171_v5, %v37_v8 }
  0x10   :  { %v40_v10 = vsel %vm39_vm1, %v171_v5, %v38_v9 }
  0x76   :  { %v30_v11 = vpop.xlane.xlu0 %29 }
  0x77   :  { %v41_v12 = vmul.f32 %v40_v10, %v30_v11 }
  0x79   :  { %v43_v13 = vsub.f32 %v25_v0, %v41_v12 }
  0x7b   :  { %v45_v14 = vmul.f32 %v43_v13, %v43_v13 }
  0x7d   :  { %v47_v15 = vsel %vm27_vm0, %v45_v14, 0.0 }
  0x7e   :  { %48 = vadd.xlane.f32.xlu1 %v47_v15  ;;  %v33_v16 = vpop.xlane.xlu0 %32 }
  0x7f   :  { %v42_v17 = vmul.f32 %v40_v10, %v33_v16 }
  0x81   :  { %v44_v18 = vsub.f32 %v26_v2, %v42_v17 }
  0x83   :  { %v46_v19 = vmul.f32 %v44_v18, %v44_v18 }
  0x85   :  { %v50_v20 = vsel %vm27_vm0, %v46_v19, 0.0 }
  0x86   :  { %51 = vadd.xlane.f32.xlu1 %v50_v20 }
  0xf1   :  { %v49_v21 = vpop.xlane.xlu1 %48 }
  0xf2   :  { %v53_v22 = vmul.f32 %v49_v21, %v40_v10 }
  0xf4   :  { %v55_v23 = vadd.f32 1e-05, %v53_v22 }
  0xf6   :  { %172 = vrsqrt.f32 %v55_v23  ;;  %vm63_vm3 = vweird.f32 %v55_v23 }
  0xf9   :  { %v52_v25 = vpop.xlane.xlu1 %51 }
  0xfa   :  { %v54_v26 = vmul.f32 %v52_v25, %v40_v10 }
  0xfc   :  { %v173_v28 = vpop.eup %172  ;;  %v56_v29 = vadd.f32 1e-05, %v54_v26 }
  0xfd   :  { %v58_v30 = vmul.f32 %v173_v28, %v55_v23  ;;  %vm64_vm2 = vweird.f32 %v173_v28 }
  0xfe   :  { %174 = vrsqrt.f32 %v56_v29  ;;  %vm65_vm4 = vmor %vm63_vm3, %vm64_vm2  ;;  %vm73_vm7 = vweird.f32 %v56_v29 }
  0xff   :  { %v59_v31 = vmul.f32 %v173_v28, %v58_v30 }
 0x101   :  { %v60_v32 = vmul.f32 0.5, %v59_v31 }
 0x103   :  { %v61_v33 = vsub.f32 1.5, %v60_v32 }
 0x104   :  { %v175_v34 = vpop.eup %174 }
 0x105   :  { %v62_v35 = vmul.f32 %v173_v28, %v61_v33  ;;  %v68_v36 = vmul.f32 %v175_v34, %v56_v29  ;;  %vm74_vm5 = vweird.f32 %v175_v34 }
 0x106   :  { %vm75_vm8 = vmor %vm73_vm7, %vm74_vm5 }
 0x107   :  { %v66_v38 = vsel %vm65_vm4, %v173_v28, %v62_v35  ;;  %v69_v39 = vmul.f32 %v175_v34, %v68_v36 }
 0x108   :  { %v77_v41 = vmul.f32 %v66_v38, %v43_v13 }
 0x109   :  { %v70_v42 = vmul.f32 0.5, %v69_v39 }
 0x10a   :  { %v83_v43 = vmul.f32 %v167_v37, %v77_v41 }
 0x10b   :  { %v71_v44 = vsub.f32 1.5, %v70_v42 }
 0x10c   :  { %v89_v45 = vadd.f32 %v168_v40, %v83_v43 }
 0x10d   :  { %v72_v46 = vmul.f32 %v175_v34, %v71_v44 }
 0x10e   :  { %v91_v47 = vpack.c.bf16 %v89_v45, %v89_v45 }
 0x10f   :  { %v76_v48 = vsel %vm75_vm8, %v175_v34, %v72_v46 }
 0x110   :  { %94 = vst.msk [vmem:[#allocation2] sm:$0xf] %vm93_vm6, %v91_v47  ;;  %v78_v49 = vmul.f32 %v76_v48, %v44_v18 }
 0x112   :  { %v84_v50 = vmul.f32 %v167_v37, %v78_v49 }
 0x114   :  { %v90_v51 = vadd.f32 %v168_v40, %v84_v50 }
 0x116   :  { %v92_v52 = vpack.c.bf16 %v90_v51, %v90_v51 }
 0x118   :  { %95 = vst.msk [vmem:[#allocation2 + $0x4] sm:$0xf] %vm93_vm6, %v92_v52 }
 0x11f   :  { %v163_v53 = vld [vmem:[#allocation2] sm:$0xff] }
 0x120   :  { %162 = vmatmul.msk.bf16.vlgmr.msra.gmra.mxu0 %vm27_vm0, %v163_v53 }
 0x19d   :  { %v136_v55 = vpop.f32.mrf.mxu0 }
 0x19e   :  { %v137_v56 = vadd.f32 %v169_v54, %v136_v55 }
 0x1a0   :  { %v141_v57 = vpack.c.bf16 %v137_v56, %v137_v56 }
 0x1a2   :  { %144 = vst.msk [vmem:[%s244_s5] sm:$0xf] %vm143_vm9, %v141_v57 }
 0x1a5   :  { %v138_v58 = vpop.f32.mrf.mxu0 }
 0x1a6   :  { %v139_v59 = vadd.f32 %v169_v54, %v138_v58 }
 0x1a8   :  { %v142_v60 = vpack.c.bf16 %v139_v59, %v139_v59 }
 0x1aa   :  { %145 = vst.msk [vmem:[%s244_s5 + $0x4] sm:$0xf] %vm143_vm9, %v142_v60 }

// kernel: gpt2_decoder_forward.18
= control target key start
LH: loop header
LB: loop body
LE: loop exit
PB: predicated region body
PF: predicated region fallthrough
CT: control target
= control target key end

     0   :  { %vm19_vm0 = vcmask 261120   ;;  %v73_v1 = vmov 0.0   ;;  %vm31_vm1 = vcmask 130048   ;;  %s109_s1 = inlined_call_operand.vmem [shape: bf16[16,32], index: 1, kind: input, shape index: {}]   ;;  %s110_s0 = inlined_call_operand.vmem [shape: bf16[8,16], index: 0, kind: input, shape index: {}]   ;;  %s111_s2 = inlined_call_operand.vmem [shape: f32[1,32], index: 2, kind: input, shape index: {}]   ;;  %s112_s3 = inlined_call_operand.vmem [shape: f32[8,32], index: 3, kind: output, shape index: {}]  }
   0x1   :  { %v70_v0 = vld [vmem:[%s109_s1] sm:$0xff]  ;;  %20 = vst.msk [vmem:[#allocation2] sm:$0xff] %vm19_vm0, %v73_v1 }
   0x2   :  { %42 = vmatpush.bf16.msra.mxu0 %v70_v0  ;;  %v22_v2 = vld [vmem:[%s110_s0] sm:$0xf] }
   0x3   :  { %v72_v6 = vld [vmem:[%s111_s2] ss:$0 sm:$0xff] }
   0x5   :  { %69 = vmatmul.msk.bf16.vlgmr.msra.gmra.mxu0 %vm31_vm1, %v22_v2 }
   0x8   :  { %v21_v3 = vld [vmem:[#allocation2] sm:$0xff] }
  0x82   :  { %v44_v4 = vpop.f32.mrf.mxu0 }
  0x83   :  { %v48_v5 = vadd.f32 %v44_v4, %v21_v3 }
  0x85   :  { %50 = vst.msk [vmem:[#allocation2] sm:$0xff] %vm19_vm0, %v48_v5 }
  0x8a   :  { %v46_v7 = vpop.f32.mrf.mxu0 }
  0x8c   :  { %v54_v8 = vld [vmem:[#allocation2] sm:$0xff] }
  0x8d   :  { %v59_v9 = vadd.f32 %v72_v6, %v54_v8 }
  0x8f   :  { %60 = vst.msk [vmem:[%s112_s3] sm:$0xff] %vm19_vm0, %v59_v9 }

// kernel: gpt2_decoder_forward.19
= control target key start
LH: loop header
LB: loop body
LE: loop exit
PB: predicated region body
PF: predicated region fallthrough
CT: control target
= control target key end

     0   :  { %vm26_vm0 = vcmask 261120   ;;  %v133_v2 = vmov 32.0   ;;  %vm67_vm5 = vcmask 257024   ;;  %vm108_vm6 = vcmask 781312   ;;  %s188_s0 = inlined_call_operand.vmem [shape: f32[8,32], index: 0, kind: input, shape index: {}]   ;;  %s189_s1 = inlined_call_operand.vmem [shape: f32[1,32], index: 1, kind: input, shape index: {}]   ;;  %s190_s2 = inlined_call_operand.vmem [shape: f32[1,32], index: 2, kind: input, shape index: {}]   ;;  %s191_s4 = inlined_call_operand.vmem [shape: f32[1,96], index: 4, kind: input, shape index: {}]   ;;  %s192_s3 = inlined_call_operand.vmem [shape: bf16[32,96], index: 3, kind: input, shape index: {}]   ;;  %s193_s5 = inlined_call_operand.vmem [shape: bf16[8,96], index: 5, kind: output, shape index: {}]  }
   0x1   :  { %v25_v0 = vld [vmem:[%s188_s0] sm:$0xff]  ;;  %129 = vrcp.f32 %v133_v2  ;;  %v124_v14 = vld [vmem:[%s192_s3 + $0x8] sm:$0xff] }
   0x2   :  { %v27_v1 = vsel %vm26_vm0, %v25_v0, 0.0  ;;  %100 = vmatpush.bf16.msra.mxu0 %v124_v14  ;;  %v123_v16 = vld [vmem:[%s192_s3] sm:$0xff] }
   0x3   :  { %28 = vadd.xlane.f32.xlu0 %v27_v1  ;;  %v126_v25 = vld [vmem:[%s189_s1] ss:$0 sm:$0xff] }
   0x4   :  { %v127_v27 = vld [vmem:[%s190_s2] ss:$0 sm:$0xff] }
   0x5   :  { %v128_v33 = vld [vmem:[%s191_s4] ss:$0 sm:$0xff] }
   0x6   :  { %101 = vmatpush.bf16.msra.mxu0 %v123_v16 }
   0x7   :  { %v130_v3 = vpop.eup %129 }
   0x8   :  { %v31_v4 = vmul.f32 32.0, %v130_v3  ;;  %vm35_vm1 = vweird.f32 %v130_v3 }
   0xa   :  { %v32_v5 = vsub.f32 1.0, %v31_v4 }
   0xc   :  { %v33_v6 = vmul.f32 %v130_v3, %v32_v5 }
   0xe   :  { %v34_v7 = vadd.f32 %v130_v3, %v33_v6 }
  0x10   :  { %v36_v8 = vsel %vm35_vm1, %v130_v3, %v34_v7 }
  0x76   :  { %v29_v9 = vpop.xlane.xlu0 %28 }
  0x77   :  { %v37_v10 = vmul.f32 %v36_v8, %v29_v9 }
  0x79   :  { %v38_v11 = vsub.f32 %v25_v0, %v37_v10 }
  0x7b   :  { %v39_v12 = vmul.f32 %v38_v11, %v38_v11 }
  0x7d   :  { %v40_v13 = vsel %vm26_vm0, %v39_v12, 0.0 }
  0x7e   :  { %41 = vadd.xlane.f32.xlu0 %v40_v13 }
  0xf1   :  { %v42_v15 = vpop.xlane.xlu0 %41 }
  0xf2   :  { %v43_v17 = vmul.f32 %v42_v15, %v36_v8 }
  0xf4   :  { %v44_v18 = vadd.f32 1e-05, %v43_v17 }
  0xf6   :  { %131 = vrsqrt.f32 %v44_v18  ;;  %vm51_vm3 = vweird.f32 %v44_v18 }
  0xfc   :  { %v132_v19 = vpop.eup %131 }
  0xfd   :  { %v46_v20 = vmul.f32 %v132_v19, %v44_v18  ;;  %vm52_vm2 = vweird.f32 %v132_v19 }
  0xfe   :  { %vm53_vm4 = vmor %vm51_vm3, %vm52_vm2 }
  0xff   :  { %v47_v21 = vmul.f32 %v132_v19, %v46_v20 }
 0x101   :  { %v48_v22 = vmul.f32 0.5, %v47_v21 }
 0x103   :  { %v49_v23 = vsub.f32 1.5, %v48_v22 }
 0x105   :  { %v50_v24 = vmul.f32 %v132_v19, %v49_v23 }
 0x107   :  { %v54_v26 = vsel %vm53_vm4, %v132_v19, %v50_v24 }
 0x108   :  { %v55_v28 = vmul.f32 %v54_v26, %v38_v11 }
 0x10a   :  { %v60_v29 = vmul.f32 %v126_v25, %v55_v28 }
 0x10c   :  { %v65_v30 = vadd.f32 %v127_v27, %v60_v29 }
 0x10e   :  { %v66_v31 = vpack.c.bf16 %v65_v30, %v65_v30 }
 0x110   :  { %68 = vst.msk [vmem:[#allocation2] sm:$0xf] %vm67_vm5, %v66_v31 }
 0x117   :  { %v69_v32 = vld [vmem:[#allocation2] sm:$0xf] }
 0x118   :  { %122 = vmatmul.msk.bf16.vlgmr.msra.gmra.mxu0 %vm26_vm0, %v69_v32 }
 0x195   :  { %v103_v34 = vpop.f32.mrf.mxu0 }
 0x196   :  { %v104_v35 = vadd.f32 %v128_v33, %v103_v34 }
 0x198   :  { %v107_v36 = vpack.c.bf16 %v104_v35, %v104_v35 }
 0x19a   :  { %109 = vst.msk [vmem:[%s193_s5] sm:$0xf] %vm108_vm6, %v107_v36 }
 0x19d   :  { %v105_v37 = vpop.f32.mrf.mxu0 }

// kernel: gpt2_decoder_forward.26
= control target key start
LH: loop header
LB: loop body
LE: loop exit
PB: predicated region body
PF: predicated region fallthrough
CT: control target
= control target key end

     0   :  { %s762_s12 = smov 0   ;;  %s764_s13 = smov 0   ;;  %s844_s0 = inlined_call_operand.vmem [shape: bf16[2,2,8,16], index: 0, kind: input, shape index: {}]   ;;  %s845_s1 = inlined_call_operand.vmem [shape: bf16[2,2,12,16], index: 1, kind: input, shape index: {}]   ;;  %s846_s2 = inlined_call_operand.vmem [shape: bf16[2,2,12,16], index: 2, kind: input, shape index: {}]   ;;  %s847_s3 = inlined_call_operand.vmem [shape: bf16[2,2,8,16], index: 3, kind: output, shape index: {}]  }
   0x1   :  { %s766_s14 = smov 0   ;;  %s768_s15 = smov 0  }
   0x2   :  { %s770_s16 = smov 0  }
   0x3 LB: > { %s35_s17 = sadd.s32 1, %s729_s14  ;;  %s39_s18 = sadd.s32 1, %s733_s15  ;;  %s737_s16 = sphi %s770_s16, %s13_s16   ;;  %s733_s15 = sphi %s768_s15, %s851_s15   ;;  %s729_s14 = sphi %s766_s14, %s850_s14   ;;  %s725_s13 = sphi %s764_s13, %s849_s13   ;;  %s721_s12 = sphi %s762_s12, %s848_s12  }
   0x4   : > { %p37_p0 = scmp.ge.s32.totalorder %s35_s17, 2  ;;  %p622_p1 = scmp.ge.s32.totalorder %s737_s16, 1 }
   0x5   : > { %p223_p2 = scmp.lt.s32.totalorder %s737_s16, 5 }
   0x6   : > { %s853_s17 = smov (%p37_p0, %s35_s17), 0  ;;  %s855_s18 = smov (!%p37_p0, %s39_s18), %s733_s15 }
   0x7   : > { %p224_p3 = pnand %p622_p1, %p223_p2  ;;  %p41_p4 = scmp.ge.s32.totalorder %s855_s18, 2 }
   0x8   : > { %p285_p5 = scmp.lt.s32.totalorder (!%p224_p3), %s725_s13, 1  ;;  %p287_p6 = scmp.lt.s32.totalorder (!%p224_p3), %s721_s12, 1 }
   0x9   : > { %s857_s18 = smov (%p41_p4, %s855_s18), 0  ;;  %227 = sbr.rel (%p224_p3) target bundleno = 634 (0x27a), region = 32 }
   0xe   : > { %vm340_vm0 = vcmask 7168   ;;  %v739_v0 = vmov 0.0   ;;  %vm343_vm1 = vcmask 130048   ;;  %s859_s13 = smov (!%p285_p5, %s725_s13), 1  ;;  %s861_s12 = smov (!%p287_p6, %s721_s12), 1  ;;  %v740_v6 = vmov -inf  }
   0xf   : > { %342 = vst.msk [vmem:[#allocation3] sm:$0xff] %vm340_vm0, %v739_v0  ;;  %s626_s19 = sshll.u32 %s859_s13, 2  ;;  %s625_s20 = sshll.u32 %s861_s12, 1  ;;  %v378_v7 = vlaneseq  ;;  %vm390_vm3 = vcmask 97280   ;;  %v741_v16 = vmov 0   ;;  %vm430_vm4 = vcmask 1045504  }
  0x10   : > { %344 = vst.msk [vmem:[#allocation4] sm:$0xff] %vm343_vm1, %v739_v0  ;;  %s623_s21 = sshll.u32 %s859_s13, 1  ;;  %s794_s22 = sadd.s32 %s626_s19, %s625_s20  ;;  %690 = vset.pattern.permute.xlu0 %v741_v16  ;;  %691 = vset.pattern.permute.xlu1 %v741_v16  ;;  %vm463_vm5 = vcmask 125952  }
  0x11   : > { %s627_s23 = sshll.u32 %s794_s22, 2  ;;  %s802_s27 = sadd.s32 %s623_s21, %s861_s12  ;;  %341 = vst.msk [vmem:[#allocation2] sm:$0xff] %vm340_vm0, %v740_v6  ;;  %v379_v8 = vshrl.u32 %v378_v7, 7  ;;  %v384_v10 = vand.u32 127, %v378_v7  ;;  %692 = vset.pattern.permute.xlu2 %v741_v16 }
  0x12   : > { %s308_s26 = scalar_lea.vmem %s845_s1, %s627_s23  ;;  %s624_s28 = sshll.u32 %s802_s27, 2 }
  0x13   : > { %v635_v1 = vld [vmem:[%s308_s26] sm:$0xf]  ;;  %v645_v2 = vld [vmem:[%s308_s26] sm:$0x30]  ;;  %s295_s4 = scalar_lea.vmem %s844_s0, %s624_s28  ;;  %v381_v9 = vadd.s32 4, %v379_v8  ;;  %s322_s7 = scalar_lea.vmem %s846_s2, %s627_s23 }
  0x14   : > { %v636_v3 = vor.u32 %v645_v2, %v635_v1  ;;  %v345_v5 = vld [vmem:[%s295_s4] sm:$0xf]  ;;  %v646_v22 = vld [vmem:[%s322_s7] sm:$0x30]  ;;  %s334_s10 = scalar_lea.vmem %s847_s3, %s624_s28 }
  0x15   : > { %vm387_vm2 = vcmp.le.s32.totalorder %v384_v10, %v381_v9  ;;  %v640_v21 = vld [vmem:[%s322_s7] sm:$0xf] }
  0x16   : > { %v360_v4 = vsel %vm343_vm1, %v636_v3, 0  ;;  %v641_v23 = vor.u32 %v646_v22, %v640_v21  ;;  %v406_v33 = vld [vmem:[#allocation3] sm:$0xff] }
  0x17   : > { %369 = vmatpush.bf16.xpose.msra.mxu0 %v360_v4  ;;  %v414_v41 = vld [vmem:[#allocation4] sm:$0xff] }
  0x18   : > { %v389_v17 = vld [vmem:[#allocation2] sm:$0xff]  ;;  %v432_v24 = vsel %vm430_vm4, %v641_v23, 0 }
  0x19   : > { %441 = vmatpush.bf16.msra.mxu1 %v432_v24 }
  0x1e   : > { %637 = vmatmul.msk.bf16.vlgmr.msra.gmra.mxu0 %vm343_vm1, %v345_v5 }
  0x9b   : > { %v371_v11 = vpop.f32.mrf.mxu0 }
  0x9c   : > { %v375_v12 = vmul.f32 0.25, %v371_v11 }
  0x9e   : > { %v388_v13 = vsel %vm387_vm2, %v375_v12, -1e+30 }
  0x9f   : > { %v391_v14 = vsel %vm390_vm3, %v388_v13, -inf }
  0xa0   : > { %392 = vmax.xlane.f32.xlu0 %v391_v14 }
  0xa3   : > { %v373_v15 = vpop.f32.mrf.mxu0 }
 0x113   : > { %v393_v18 = vpop.xlane.xlu0 %392 }
 0x114   : > { %v394_v19 = vmax.f32 %v389_v17, %v393_v18 }
 0x116   : > { %v395_v20 = vsub.f32 %v389_v17, %v394_v19  ;;  %449 = vst.msk [vmem:[#allocation2] sm:$0xff] %vm340_vm0, %v394_v19  ;;  %400 = vperm.xlu0 %690, %v394_v19  }
 0x118   : > { %v396_v31 = vmul.f32 1.442695, %v395_v20 }
 0x188   : > { %v401_v25 = vpop.permute.xlu0 %400 }
 0x189   : > { %v403_v26 = vsub.f32 %v388_v13, %v401_v25 }
 0x18b   : > { %v404_v27 = vmul.f32 1.442695, %v403_v26 }
 0x18d   : > { %693 = vpow2.f32 %v404_v27 }
 0x18e   : > { %695 = vpow2.f32 %v396_v31 }
 0x193   : > { %v694_v28 = vpop.eup %693 }
 0x194   : > { %v408_v29 = vsel %vm390_vm3, %v694_v28, 0.0  ;;  %v421_v30 = vpack.c.bf16 %v694_v28, %v694_v28  ;;  %v696_v32 = vpop.eup %695 }
 0x195   : > { %409 = vadd.xlane.f32.xlu1 %v408_v29  ;;  %v407_v34 = vmul.f32 %v696_v32, %v406_v33 }
 0x196   : > { %642 = vmatmul.msk.bf16.vlgmr.msra.gmra.mxu1 %vm390_vm3, %v421_v30 }
 0x1ae   : > { %417 = vperm.xlu1 %691, %v696_v32  }
 0x208   : > { %v410_v35 = vpop.xlane.xlu1 %409 }
 0x209   : > { %v411_v36 = vadd.f32 %v410_v35, %v407_v34 }
 0x20b   : > { %413 = vst.msk [vmem:[#allocation3] sm:$0xff] %vm340_vm0, %v411_v36 }
 0x212   : > { %v453_v37 = vld [vmem:[#allocation3] sm:$0xff] }
 0x213   : > { %v443_v38 = vpop.f32.mrf.mxu1  ;;  %697 = vrcp.f32 %v453_v37 }
 0x219   : > { %v698_v39 = vpop.eup %697 }
 0x21a   : > { %458 = vperm.xlu2 %692, %v698_v39  }
 0x21b   : > { %v445_v40 = vpop.f32.mrf.mxu1 }
 0x220   : > { %v418_v42 = vpop.permute.xlu1 %417 }
 0x221   : > { %v420_v43 = vmul.f32 %v418_v42, %v414_v41 }
 0x223   : > { %v447_v44 = vadd.f32 %v443_v38, %v420_v43 }
 0x225   : > { %448 = vst.msk [vmem:[#allocation4] sm:$0xff] %vm343_vm1, %v447_v44 }
 0x22c   : > { %v455_v45 = vld [vmem:[#allocation4] sm:$0xff] }
 0x274   : > { %v459_v46 = vpop.permute.xlu2 %458 }
 0x275   : > { %v461_v47 = vmul.f32 %v459_v46, %v455_v45 }
 0x277   : > { %v462_v48 = vpack.c.bf16 %v461_v47, %v461_v47 }
 0x279   : > { %464 = vst.msk [vmem:[%s334_s10] sm:$0xf] %vm463_vm5, %v462_v48 }
 0x27a PF: > { %s13_s16 = sadd.s32 1, %s737_s16   ;;  %s848_s12 = smov %s729_s14 }
 0x27b   : > { %p10_p7 = scmp.ge.s32.totalorder %s13_s16, 6   ;;  %s849_s13 = smov %s733_s15 }
 0x27c   : > { %s850_s14 = smov %s853_s17  ;;  %s851_s15 = smov %s857_s18 }
 0x27d   :  { %12 = sbr.rel (!%p10_p7) target bundleno = 3 (0x3), region = 76 }

// kernel: gpt2_decoder_forward.27
= control target key start
LH: loop header
LB: loop body
LE: loop exit
PB: predicated region body
PF: predicated region fallthrough
CT: control target
= control target key end

     0   :  { %vm22_vm0 = vcmask 261120   ;;  %v111_v1 = vmov 0.0   ;;  %s168_s1 = inlined_call_operand.vmem [shape: bf16[32,32], index: 1, kind: input, shape index: {}]   ;;  %s169_s2 = inlined_call_operand.vmem [shape: f32[1,32], index: 2, kind: input, shape index: {}]   ;;  %s170_s0 = inlined_call_operand.vmem [shape: bf16[16,32], index: 0, kind: input, shape index: {}]   ;;  %s171_s3 = inlined_call_operand.vmem [shape: f32[16,32], index: 3, kind: input, shape index: {}]   ;;  %s172_s4 = inlined_call_operand.vmem [shape: f32[16,32], index: 4, kind: output, shape index: {}]  }
   0x1   :  { %v108_v0 = vld [vmem:[%s168_s1 + $0x8] sm:$0xff]  ;;  %23 = vst.msk [vmem:[#allocation2] sm:$0xff] %vm22_vm0, %v111_v1  ;;  %v107_v2 = vld [vmem:[%s168_s1] sm:$0xff] }
   0x2   :  { %24 = vst.msk [vmem:[#allocation2 + $0x8] sm:$0xff] %vm22_vm0, %v111_v1  ;;  %60 = vmatpush.bf16.msra.mxu0 %v108_v0  ;;  %v106_v3 = vld [vmem:[%s170_s0] sm:$0xff]  ;;  %v84_v16 = vld [vmem:[%s171_s3 + $0x8] sm:$0xff] }
   0x3   :  { %v110_v8 = vld [vmem:[%s169_s2] ss:$0 sm:$0xff] }
   0x4   :  { %v83_v12 = vld [vmem:[%s171_s3] sm:$0xff] }
   0x6   :  { %61 = vmatpush.bf16.msra.mxu0 %v107_v2 }
   0x8   :  { %v25_v4 = vld [vmem:[#allocation2] sm:$0xff] }
   0x9   :  { %105 = vmatmul.msk.bf16.vlgmr.msra.gmra.mxu0 %vm22_vm0, %v106_v3  ;;  %v26_v7 = vld [vmem:[#allocation2 + $0x8] sm:$0xff] }
  0x86   :  { %v63_v5 = vpop.f32.mrf.mxu0 }
  0x87   :  { %v68_v6 = vadd.f32 %v63_v5, %v25_v4 }
  0x89   :  { %70 = vst.msk [vmem:[#allocation2] sm:$0xff] %vm22_vm0, %v68_v6 }
  0x8e   :  { %v65_v9 = vpop.f32.mrf.mxu0 }
  0x8f   :  { %v69_v10 = vadd.f32 %v65_v9, %v26_v7 }
  0x90   :  { %v75_v11 = vld [vmem:[#allocation2] sm:$0xff] }
  0x91   :  { %v81_v13 = vadd.f32 %v110_v8, %v75_v11  ;;  %71 = vst.msk [vmem:[#allocation2 + $0x8] sm:$0xff] %vm22_vm0, %v69_v10 }
  0x93   :  { %v85_v14 = vadd.f32 %v83_v12, %v81_v13 }
  0x95   :  { %87 = vst.msk [vmem:[%s172_s4] sm:$0xff] %vm22_vm0, %v85_v14 }
  0x98   :  { %v76_v15 = vld [vmem:[#allocation2 + $0x8] sm:$0xff] }
  0x99   :  { %v82_v17 = vadd.f32 %v110_v8, %v76_v15 }
  0x9b   :  { %v86_v18 = vadd.f32 %v84_v16, %v82_v17 }
  0x9d   :  { %88 = vst.msk [vmem:[%s172_s4 + $0x8] sm:$0xff] %vm22_vm0, %v86_v18 }

// kernel: gpt2_decoder_forward.29
= control target key start
LH: loop header
LB: loop body
LE: loop exit
PB: predicated region body
PF: predicated region fallthrough
CT: control target
= control target key end

     0   :  { %vm21_vm0 = vcmask 261120   ;;  %v185_v2 = vmov 0.0   ;;  %s259_s1 = inlined_call_operand.vmem [shape: bf16[128,32], index: 1, kind: input, shape index: {}]   ;;  %s260_s2 = inlined_call_operand.vmem [shape: f32[1,32], index: 2, kind: input, shape index: {}]   ;;  %s261_s0 = inlined_call_operand.vmem [shape: bf16[16,128], index: 0, kind: input, shape index: {}]   ;;  %s262_s3 = inlined_call_operand.vmem [shape: f32[16,32], index: 3, kind: input, shape index: {}]   ;;  %s263_s4 = inlined_call_operand.vmem [shape: f32[16,32], index: 4, kind: output, shape index: {}]  }
   0x1   :  { %v182_v0 = vld [vmem:[%s259_s1 + $0x38] sm:$0xff]  ;;  %v181_v1 = vld [vmem:[%s259_s1 + $0x30] sm:$0xff]  ;;  %22 = vst.msk [vmem:[#allocation2] sm:$0xff] %vm21_vm0, %v185_v2  ;;  %v180_v3 = vld [vmem:[%s259_s1 + $0x28] sm:$0xff] }
   0x2   :  { %98 = vmatpush.bf16.msra.mxu0 %v182_v0  ;;  %23 = vst.msk [vmem:[#allocation2 + $0x8] sm:$0xff] %vm21_vm0, %v185_v2  ;;  %v179_v4 = vld [vmem:[%s259_s1 + $0x20] sm:$0xff]  ;;  %v178_v5 = vld [vmem:[%s259_s1 + $0x18] sm:$0xff]  ;;  %v177_v6 = vld [vmem:[%s259_s1 + $0x10] sm:$0xff] }
   0x3   :  { %v176_v7 = vld [vmem:[%s259_s1 + $0x8] sm:$0xff]  ;;  %v175_v8 = vld [vmem:[%s259_s1] sm:$0xff] }
   0x4   :  { %v174_v9 = vld [vmem:[%s261_s0] sm:$0xff]  ;;  %v129_v21 = vld [vmem:[%s262_s3 + $0x8] sm:$0xff] }
   0x5   :  { %v184_v14 = vld [vmem:[%s260_s2] ss:$0 sm:$0xff] }
   0x6   :  { %99 = vmatpush.bf16.msra.mxu0 %v181_v1  ;;  %v128_v18 = vld [vmem:[%s262_s3] sm:$0xff] }
   0x8   :  { %v24_v10 = vld [vmem:[#allocation2] sm:$0xff] }
   0x9   :  { %v25_v13 = vld [vmem:[#allocation2 + $0x8] sm:$0xff] }
   0xa   :  { %100 = vmatpush.bf16.msra.mxu0 %v180_v3 }
   0xe   :  { %101 = vmatpush.bf16.msra.mxu0 %v179_v4 }
  0x12   :  { %102 = vmatpush.bf16.msra.mxu0 %v178_v5 }
  0x16   :  { %103 = vmatpush.bf16.msra.mxu0 %v177_v6 }
  0x1a   :  { %104 = vmatpush.bf16.msra.mxu0 %v176_v7 }
  0x1e   :  { %105 = vmatpush.bf16.msra.mxu0 %v175_v8 }
  0x21   :  { %106 = vmatmul.bf16.vlgmr.msra.gmra.mxu0 %v174_v9 }
  0x9e   :  { %v107_v11 = vpop.f32.mrf.mxu0 }
  0x9f   :  { %v112_v12 = vadd.f32 %v107_v11, %v24_v10 }
  0xa1   :  { %115 = vst.msk [vmem:[#allocation2] sm:$0xff] %vm21_vm0, %v112_v12 }
  0xa6   :  { %v109_v15 = vpop.f32.mrf.mxu0 }
  0xa7   :  { %v113_v16 = vadd.f32 %v109_v15, %v25_v13 }
  0xa8   :  { %v120_v17 = vld [vmem:[#allocation2] sm:$0xff] }
  0xa9   :  { %v126_v19 = vadd.f32 %v184_v14, %v120_v17  ;;  %116 = vst.msk [vmem:[#allocation2 + $0x8] sm:$0xff] %vm21_vm0, %v113_v16 }
  0xab   :  { %v130_v20 = vadd.f32 %v128_v18, %v126_v19 }
  0xad   :  { %132 = vst.msk [vmem:[%s263_s4] sm:$0xff] %vm21_vm0, %v130_v20 }
  0xb0   :  { %v121_v22 = vld [vmem:[#allocation2 + $0x8] sm:$0xff] }
  0xb1   :  { %v127_v23 = vadd.f32 %v184_v14, %v121_v22 }
  0xb3   :  { %v131_v24 = vadd.f32 %v129_v21, %v127_v23 }
  0xb5   :  { %133 = vst.msk [vmem:[%s263_s4 + $0x8] sm:$0xff] %vm21_vm0, %v131_v24 }

// kernel: gpt2_decoder_forward.28
= control target key start
LH: loop header
LB: loop body
LE: loop exit
PB: predicated region body
PF: predicated region fallthrough
CT: control target
= control target key end

     0   :  { %vm27_vm0 = vcmask 261120   ;;  %v202_v4 = vmov 32.0   ;;  %vm93_vm6 = vcmask 257024   ;;  %s262_s0 = inlined_call_operand.vmem [shape: f32[16,32], index: 0, kind: input, shape index: {}]   ;;  %s263_s1 = inlined_call_operand.vmem [shape: f32[1,32], index: 1, kind: input, shape index: {}]   ;;  %s264_s2 = inlined_call_operand.vmem [shape: f32[1,32], index: 2, kind: input, shape index: {}]   ;;  %s265_s4 = inlined_call_operand.vmem [shape: f32[1,128], index: 4, kind: input, shape index: {}]   ;;  %s266_s3 = inlined_call_operand.vmem [shape: bf16[32,128], index: 3, kind: input, shape index: {}]   ;;  %s267_s5 = inlined_call_operand.vmem [shape: bf16[16,128], index: 5, kind: output, shape index: {}]  }
   0x1   :  { %v25_v0 = vld [vmem:[%s262_s0] sm:$0xff]  ;;  %v26_v2 = vld [vmem:[%s262_s0 + $0x8] sm:$0xff]  ;;  %192 = vrcp.f32 %v202_v4 }
   0x2   :  { %v28_v1 = vsel %vm27_vm0, %v25_v0, 0.0  ;;  %v31_v3 = vsel %vm27_vm0, %v26_v2, 0.0  ;;  %v182_v24 = vld [vmem:[%s266_s3 + $0x8] sm:$0xff]  ;;  %v181_v27 = vld [vmem:[%s266_s3] sm:$0xff] }
   0x3   :  { %29 = vadd.xlane.f32.xlu0 %v28_v1  ;;  %133 = vmatpush.bf16.msra.mxu0 %v182_v24  ;;  %v189_v37 = vld [vmem:[%s263_s1] ss:$0 sm:$0xff] }
   0x4   :  { %v190_v40 = vld [vmem:[%s264_s2] ss:$0 sm:$0xff] }
   0x5   :  { %v191_v54 = vld [vmem:[%s265_s4] ss:$0 sm:$0xff] }
   0x7   :  { %v193_v5 = vpop.eup %192  ;;  %134 = vmatpush.bf16.msra.mxu0 %v181_v27 }
   0x8   :  { %v35_v6 = vmul.f32 32.0, %v193_v5  ;;  %vm39_vm1 = vweird.f32 %v193_v5 }
   0xa   :  { %v36_v7 = vsub.f32 1.0, %v35_v6 }
   0xb   :  { %32 = vadd.xlane.f32.xlu0 %v31_v3 }
   0xc   :  { %v37_v8 = vmul.f32 %v193_v5, %v36_v7 }
   0xe   :  { %v38_v9 = vadd.f32 %v193_v5, %v37_v8 }
  0x10   :  { %v40_v10 = vsel %vm39_vm1, %v193_v5, %v38_v9 }
  0x76   :  { %v30_v11 = vpop.xlane.xlu0 %29 }
  0x77   :  { %v41_v12 = vmul.f32 %v40_v10, %v30_v11 }
  0x79   :  { %v43_v13 = vsub.f32 %v25_v0, %v41_v12 }
  0x7b   :  { %v45_v14 = vmul.f32 %v43_v13, %v43_v13 }
  0x7d   :  { %v47_v15 = vsel %vm27_vm0, %v45_v14, 0.0 }
  0x7e   :  { %48 = vadd.xlane.f32.xlu1 %v47_v15  ;;  %v33_v16 = vpop.xlane.xlu0 %32 }
  0x7f   :  { %v42_v17 = vmul.f32 %v40_v10, %v33_v16 }
  0x81   :  { %v44_v18 = vsub.f32 %v26_v2, %v42_v17 }
  0x83   :  { %v46_v19 = vmul.f32 %v44_v18, %v44_v18 }
  0x85   :  { %v50_v20 = vsel %vm27_vm0, %v46_v19, 0.0 }
  0x86   :  { %51 = vadd.xlane.f32.xlu1 %v50_v20 }
  0xf1   :  { %v49_v21 = vpop.xlane.xlu1 %48 }
  0xf2   :  { %v53_v22 = vmul.f32 %v49_v21, %v40_v10 }
  0xf4   :  { %v55_v23 = vadd.f32 1e-05, %v53_v22 }
  0xf6   :  { %194 = vrsqrt.f32 %v55_v23  ;;  %vm63_vm3 = vweird.f32 %v55_v23 }
  0xf9   :  { %v52_v25 = vpop.xlane.xlu1 %51 }
  0xfa   :  { %v54_v26 = vmul.f32 %v52_v25, %v40_v10 }
  0xfc   :  { %v195_v28 = vpop.eup %194  ;;  %v56_v29 = vadd.f32 1e-05, %v54_v26 }
  0xfd   :  { %v58_v30 = vmul.f32 %v195_v28, %v55_v23  ;;  %vm64_vm2 = vweird.f32 %v195_v28 }
  0xfe   :  { %196 = vrsqrt.f32 %v56_v29  ;;  %vm65_vm4 = vmor %vm63_vm3, %vm64_vm2  ;;  %vm73_vm7 = vweird.f32 %v56_v29 }
  0xff   :  { %v59_v31 = vmul.f32 %v195_v28, %v58_v30 }
 0x101   :  { %v60_v32 = vmul.f32 0.5, %v59_v31 }
 0x103   :  { %v61_v33 = vsub.f32 1.5, %v60_v32 }
 0x104   :  { %v197_v34 = vpop.eup %196 }
 0x105   :  { %v62_v35 = vmul.f32 %v195_v28, %v61_v33  ;;  %v68_v36 = vmul.f32 %v197_v34, %v56_v29  ;;  %vm74_vm5 = vweird.f32 %v197_v34 }
 0x106   :  { %vm75_vm8 = vmor %vm73_vm7, %vm74_vm5 }
 0x107   :  { %v66_v38 = vsel %vm65_vm4, %v195_v28, %v62_v35  ;;  %v69_v39 = vmul.f32 %v197_v34, %v68_v36 }
 0x108   :  { %v77_v41 = vmul.f32 %v66_v38, %v43_v13 }
 0x109   :  { %v70_v42 = vmul.f32 0.5, %v69_v39 }
 0x10a   :  { %v83_v43 = vmul.f32 %v189_v37, %v77_v41 }
 0x10b   :  { %v71_v44 = vsub.f32 1.5, %v70_v42 }
 0x10c   :  { %v89_v45 = vadd.f32 %v190_v40, %v83_v43 }
 0x10d   :  { %v72_v46 = vmul.f32 %v197_v34, %v71_v44 }
 0x10e   :  { %v91_v47 = vpack.c.bf16 %v89_v45, %v89_v45 }
 0x10f   :  { %v76_v48 = vsel %vm75_vm8, %v197_v34, %v72_v46 }
 0x110   :  { %94 = vst.msk [vmem:[#allocation2] sm:$0xf] %vm93_vm6, %v91_v47  ;;  %v78_v49 = vmul.f32 %v76_v48, %v44_v18 }
 0x112   :  { %v84_v50 = vmul.f32 %v189_v37, %v78_v49 }
 0x114   :  { %v90_v51 = vadd.f32 %v190_v40, %v84_v50 }
 0x116   :  { %v92_v52 = vpack.c.bf16 %v90_v51, %v90_v51 }
 0x118   :  { %95 = vst.msk [vmem:[#allocation2 + $0x4] sm:$0xf] %vm93_vm6, %v92_v52 }
 0x11f   :  { %v180_v53 = vld [vmem:[#allocation2] sm:$0xff] }
 0x120   :  { %179 = vmatmul.msk.bf16.vlgmr.msra.gmra.mxu0 %vm27_vm0, %v180_v53 }
 0x19d   :  { %v136_v55 = vpop.f32.mrf.mxu0 }
 0x19e   :  { %v137_v56 = vadd.f32 %v191_v54, %v136_v55 }
 0x1a0   :  { %v143_v57 = vmul.f32 0.044715, %v137_v56  ;;  %v141_v8 = vmul.f32 0.5, %v137_v56 }
 0x1a2   :  { %v145_v58 = vmul.f32 %v143_v57, %v137_v56 }
 0x1a4   :  { %v147_v59 = vmul.f32 %v145_v58, %v137_v56 }
 0x1a5   :  { %v138_v60 = vpop.f32.mrf.mxu0 }
 0x1a6   :  { %v149_v61 = vadd.f32 %v147_v59, %v137_v56  ;;  %v139_v62 = vadd.f32 %v191_v54, %v138_v60 }
 0x1a8   :  { %v144_v63 = vmul.f32 0.044715, %v139_v62  ;;  %v151_v0 = vmul.f32 0.7978846, %v149_v61  ;;  %v142_v9 = vmul.f32 0.5, %v139_v62 }
 0x1aa   :  { %v146_v1 = vmul.f32 %v144_v63, %v139_v62  ;;  %198 = vtanh.f32 %v151_v0 }
 0x1ac   :  { %v148_v2 = vmul.f32 %v146_v1, %v139_v62 }
 0x1ae   :  { %v150_v3 = vadd.f32 %v148_v2, %v139_v62 }
 0x1b0   :  { %v152_v4 = vmul.f32 0.7978846, %v150_v3  ;;  %v199_v5 = vpop.eup %198 }
 0x1b1   :  { %v155_v6 = vadd.f32 1.0, %v199_v5 }
 0x1b2   :  { %200 = vtanh.f32 %v152_v4 }
 0x1b3   :  { %v157_v11 = vmul.f32 %v155_v6, %v141_v8 }
 0x1b8   :  { %v201_v7 = vpop.eup %200 }
 0x1b9   :  { %v156_v10 = vadd.f32 1.0, %v201_v7 }
 0x1bb   :  { %v158_v12 = vmul.f32 %v156_v10, %v142_v9 }
 0x1bd   :  { %v186_v13 = vpack.c.bf16 %v158_v12, %v157_v11 }
 0x1bf   :  { %187 = vst [vmem:[%s267_s5] sm:$0xff] %v186_v13  }

// kernel: gpt2_decoder_forward.21
= control target key start
LH: loop header
LB: loop body
LE: loop exit
PB: predicated region body
PF: predicated region fallthrough
CT: control target
= control target key end

     0   :  { %vm22_vm0 = vcmask 261120   ;;  %v90_v1 = vmov 0.0   ;;  %s138_s1 = inlined_call_operand.vmem [shape: bf16[32,32], index: 1, kind: input, shape index: {}]   ;;  %s139_s2 = inlined_call_operand.vmem [shape: f32[1,32], index: 2, kind: input, shape index: {}]   ;;  %s140_s0 = inlined_call_operand.vmem [shape: bf16[8,32], index: 0, kind: input, shape index: {}]   ;;  %s141_s3 = inlined_call_operand.vmem [shape: f32[8,32], index: 3, kind: input, shape index: {}]   ;;  %s142_s4 = inlined_call_operand.vmem [shape: f32[8,32], index: 4, kind: output, shape index: {}]  }
   0x1   :  { %v87_v0 = vld [vmem:[%s138_s1 + $0x8] sm:$0xff]  ;;  %23 = vst.msk [vmem:[#allocation2] sm:$0xff] %vm22_vm0, %v90_v1  ;;  %v86_v2 = vld [vmem:[%s138_s1] sm:$0xff] }
   0x2   :  { %52 = vmatpush.bf16.msra.mxu0 %v87_v0  ;;  %v25_v3 = vld [vmem:[%s140_s0] sm:$0xf] }
   0x3   :  { %v89_v7 = vld [vmem:[%s139_s2] ss:$0 sm:$0xff] }
   0x4   :  { %v70_v10 = vld [vmem:[%s141_s3] sm:$0xff] }
   0x6   :  { %53 = vmatpush.bf16.msra.mxu0 %v86_v2 }
   0x8   :  { %v24_v4 = vld [vmem:[#allocation2] sm:$0xff] }
   0x9   :  { %85 = vmatmul.msk.bf16.vlgmr.msra.gmra.mxu0 %vm22_vm0, %v25_v3 }
  0x86   :  { %v55_v5 = vpop.f32.mrf.mxu0 }
  0x87   :  { %v59_v6 = vadd.f32 %v55_v5, %v24_v4 }
  0x89   :  { %60 = vst.msk [vmem:[#allocation2] sm:$0xff] %vm22_vm0, %v59_v6 }
  0x8e   :  { %v57_v8 = vpop.f32.mrf.mxu0 }
  0x90   :  { %v64_v9 = vld [vmem:[#allocation2] sm:$0xff] }
  0x91   :  { %v69_v11 = vadd.f32 %v89_v7, %v64_v9 }
  0x93   :  { %v71_v12 = vadd.f32 %v70_v10, %v69_v11 }
  0x95   :  { %72 = vst.msk [vmem:[%s142_s4] sm:$0xff] %vm22_vm0, %v71_v12 }

// kernel: gpt2_decoder_forward.22
= control target key start
LH: loop header
LB: loop body
LE: loop exit
PB: predicated region body
PF: predicated region fallthrough
CT: control target
= control target key end

     0   :  { %vm26_vm0 = vcmask 261120   ;;  %v143_v2 = vmov 32.0   ;;  %vm67_vm5 = vcmask 257024   ;;  %s198_s0 = inlined_call_operand.vmem [shape: f32[8,32], index: 0, kind: input, shape index: {}]   ;;  %s199_s1 = inlined_call_operand.vmem [shape: f32[1,32], index: 1, kind: input, shape index: {}]   ;;  %s200_s2 = inlined_call_operand.vmem [shape: f32[1,32], index: 2, kind: input, shape index: {}]   ;;  %s201_s4 = inlined_call_operand.vmem [shape: f32[1,128], index: 4, kind: input, shape index: {}]   ;;  %s202_s3 = inlined_call_operand.vmem [shape: bf16[32,128], index: 3, kind: input, shape index: {}]   ;;  %s203_s5 = inlined_call_operand.vmem [shape: bf16[8,128], index: 5, kind: output, shape index: {}]  }
   0x1   :  { %v25_v0 = vld [vmem:[%s198_s0] sm:$0xff]  ;;  %137 = vrcp.f32 %v143_v2  ;;  %v132_v14 = vld [vmem:[%s202_s3 + $0x8] sm:$0xff] }
   0x2   :  { %v27_v1 = vsel %vm26_vm0, %v25_v0, 0.0  ;;  %100 = vmatpush.bf16.msra.mxu0 %v132_v14  ;;  %v131_v16 = vld [vmem:[%s202_s3] sm:$0xff] }
   0x3   :  { %28 = vadd.xlane.f32.xlu0 %v27_v1  ;;  %v134_v25 = vld [vmem:[%s199_s1] ss:$0 sm:$0xff] }
   0x4   :  { %v135_v27 = vld [vmem:[%s200_s2] ss:$0 sm:$0xff] }
   0x5   :  { %v136_v33 = vld [vmem:[%s201_s4] ss:$0 sm:$0xff] }
   0x6   :  { %101 = vmatpush.bf16.msra.mxu0 %v131_v16 }
   0x7   :  { %v138_v3 = vpop.eup %137 }
   0x8   :  { %v31_v4 = vmul.f32 32.0, %v138_v3  ;;  %vm35_vm1 = vweird.f32 %v138_v3 }
   0xa   :  { %v32_v5 = vsub.f32 1.0, %v31_v4 }
   0xc   :  { %v33_v6 = vmul.f32 %v138_v3, %v32_v5 }
   0xe   :  { %v34_v7 = vadd.f32 %v138_v3, %v33_v6 }
  0x10   :  { %v36_v8 = vsel %vm35_vm1, %v138_v3, %v34_v7 }
  0x76   :  { %v29_v9 = vpop.xlane.xlu0 %28 }
  0x77   :  { %v37_v10 = vmul.f32 %v36_v8, %v29_v9 }
  0x79   :  { %v38_v11 = vsub.f32 %v25_v0, %v37_v10 }
  0x7b   :  { %v39_v12 = vmul.f32 %v38_v11, %v38_v11 }
  0x7d   :  { %v40_v13 = vsel %vm26_vm0, %v39_v12, 0.0 }
  0x7e   :  { %41 = vadd.xlane.f32.xlu0 %v40_v13 }
  0xf1   :  { %v42_v15 = vpop.xlane.xlu0 %41 }
  0xf2   :  { %v43_v17 = vmul.f32 %v42_v15, %v36_v8 }
  0xf4   :  { %v44_v18 = vadd.f32 1e-05, %v43_v17 }
  0xf6   :  { %139 = vrsqrt.f32 %v44_v18  ;;  %vm51_vm3 = vweird.f32 %v44_v18 }
  0xfc   :  { %v140_v19 = vpop.eup %139 }
  0xfd   :  { %v46_v20 = vmul.f32 %v140_v19, %v44_v18  ;;  %vm52_vm2 = vweird.f32 %v140_v19 }
  0xfe   :  { %vm53_vm4 = vmor %vm51_vm3, %vm52_vm2 }
  0xff   :  { %v47_v21 = vmul.f32 %v140_v19, %v46_v20 }
 0x101   :  { %v48_v22 = vmul.f32 0.5, %v47_v21 }
 0x103   :  { %v49_v23 = vsub.f32 1.5, %v48_v22 }
 0x105   :  { %v50_v24 = vmul.f32 %v140_v19, %v49_v23 }
 0x107   :  { %v54_v26 = vsel %vm53_vm4, %v140_v19, %v50_v24 }
 0x108   :  { %v55_v28 = vmul.f32 %v54_v26, %v38_v11 }
 0x10a   :  { %v60_v29 = vmul.f32 %v134_v25, %v55_v28 }
 0x10c   :  { %v65_v30 = vadd.f32 %v135_v27, %v60_v29 }
 0x10e   :  { %v66_v31 = vpack.c.bf16 %v65_v30, %v65_v30 }
 0x110   :  { %68 = vst.msk [vmem:[#allocation2] sm:$0xf] %vm67_vm5, %v66_v31 }
 0x117   :  { %v69_v32 = vld [vmem:[#allocation2] sm:$0xf] }
 0x118   :  { %130 = vmatmul.msk.bf16.vlgmr.msra.gmra.mxu0 %vm26_vm0, %v69_v32 }
 0x195   :  { %v103_v34 = vpop.f32.mrf.mxu0 }
 0x196   :  { %v104_v35 = vadd.f32 %v136_v33, %v103_v34 }
 0x198   :  { %v108_v36 = vmul.f32 0.044715, %v104_v35  ;;  %v107_v43 = vmul.f32 0.5, %v104_v35 }
 0x19a   :  { %v109_v37 = vmul.f32 %v108_v36, %v104_v35 }
 0x19c   :  { %v110_v38 = vmul.f32 %v109_v37, %v104_v35 }
 0x19d   :  { %v105_v39 = vpop.f32.mrf.mxu0 }
 0x19e   :  { %v111_v40 = vadd.f32 %v110_v38, %v104_v35 }
 0x1a0   :  { %v112_v41 = vmul.f32 0.7978846, %v111_v40 }
 0x1a2   :  { %141 = vtanh.f32 %v112_v41 }
 0x1a8   :  { %v142_v42 = vpop.eup %141 }
 0x1a9   :  { %v114_v44 = vadd.f32 1.0, %v142_v42 }
 0x1ab   :  { %v115_v45 = vmul.f32 %v114_v44, %v107_v43 }
 0x1ad   :  { %v116_v46 = vpack.c.bf16 %v115_v45, %v115_v45 }
 0x1af   :  { %117 = vst [vmem:[%s203_s5] sm:$0xf] %v116_v46 }

// kernel: gpt2_decoder_forward.20
= control target key start
LH: loop header
LB: loop body
LE: loop exit
PB: predicated region body
PF: predicated region fallthrough
CT: control target
= control target key end

     0   :  { %s717_s12 = smov 0   ;;  %s719_s13 = smov 0   ;;  %s788_s0 = inlined_call_operand.vmem [shape: bf16[2,2,4,16], index: 0, kind: input, shape index: {}]   ;;  %s789_s1 = inlined_call_operand.vmem [shape: bf16[2,2,4,16], index: 1, kind: input, shape index: {}]   ;;  %s790_s2 = inlined_call_operand.vmem [shape: bf16[2,2,4,16], index: 2, kind: input, shape index: {}]   ;;  %s791_s3 = inlined_call_operand.vmem [shape: bf16[2,2,4,16], index: 3, kind: output, shape index: {}]  }
   0x1   :  { %s721_s14 = smov 0   ;;  %s723_s15 = smov 0  }
   0x2   :  { %s725_s16 = smov 0  }
   0x3 LB: > { %s35_s17 = sadd.s32 1, %s684_s14  ;;  %s39_s18 = sadd.s32 1, %s688_s15  ;;  %s692_s16 = sphi %s725_s16, %s13_s16   ;;  %s688_s15 = sphi %s723_s15, %s795_s15   ;;  %s684_s14 = sphi %s721_s14, %s794_s14   ;;  %s680_s13 = sphi %s719_s13, %s793_s13   ;;  %s676_s12 = sphi %s717_s12, %s792_s12  }
   0x4   : > { %p37_p0 = scmp.ge.s32.totalorder %s35_s17, 2  ;;  %p589_p1 = scmp.ge.s32.totalorder %s692_s16, 1 }
   0x5   : > { %p217_p2 = scmp.lt.s32.totalorder %s692_s16, 5 }
   0x6   : > { %s797_s17 = smov (%p37_p0, %s35_s17), 0  ;;  %s799_s18 = smov (!%p37_p0, %s39_s18), %s688_s15 }
   0x7   : > { %p218_p3 = pnand %p589_p1, %p217_p2  ;;  %p41_p4 = scmp.ge.s32.totalorder %s799_s18, 2 }
   0x8   : > { %p275_p5 = scmp.lt.s32.totalorder (!%p218_p3), %s680_s13, 1  ;;  %p277_p6 = scmp.lt.s32.totalorder (!%p218_p3), %s676_s12, 1 }
   0x9   : > { %s801_s18 = smov (%p41_p4, %s799_s18), 0  ;;  %221 = sbr.rel (%p218_p3) target bundleno = 632 (0x278), region = 32 }
   0xe   : > { %s803_s13 = smov (!%p275_p5, %s680_s13), 1  ;;  %s805_s12 = smov (!%p277_p6, %s676_s12), 1  ;;  %vm332_vm0 = vcmask 130048   ;;  %vm324_vm1 = vcmask 3072   ;;  %v694_v3 = vmov -inf   ;;  %v354_v4 = vlaneseq }
   0xf   : > { %s590_s19 = sshll.u32 %s803_s13, 1  ;;  %325 = vst.msk [vmem:[#allocation2] sm:$0xf] %vm324_vm1, %v694_v3  ;;  %vm366_vm3 = vcmask 27648   ;;  %v695_v12 = vmov 0   ;;  %v696_v13 = vmov 0.0  }
  0x10   : > { %s283_s20 = sadd.s32 %s590_s19, %s805_s12  ;;  %v355_v5 = vshrl.u32 %v354_v4, 7  ;;  %v360_v6 = vand.u32 127, %v354_v4  ;;  %645 = vset.pattern.permute.xlu0 %v695_v12  ;;  %646 = vset.pattern.permute.xlu1 %v695_v12  ;;  %326 = vst.msk [vmem:[#allocation3] sm:$0xf] %vm324_vm1, %v696_v13  ;;  %vm402_vm4 = vcmask 1041408   ;;  %vm398_vm5 = vcmask 31744  }
  0x11   : > { %s747_s21 = sshll.u32 %s283_s20, 1  ;;  %647 = vset.pattern.permute.xlu2 %v695_v12  ;;  %vm327_vm6 = vcmask 125952   ;;  %vm436_vm7 = vcmask 123904  }
  0x12   : > { %s296_s24 = scalar_lea.vmem %s789_s1, %s747_s21  ;;  %s285_s27 = scalar_lea.vmem %s788_s0, %s747_s21  ;;  %vm363_vm2 = vcmp.le.s32.totalorder %v360_v6, %v355_v5  ;;  %328 = vst.msk [vmem:[#allocation4] sm:$0xf] %vm327_vm6, %v696_v13 }
  0x13   : > { %v330_v0 = vld [vmem:[%s296_s24] sm:$0x3]  ;;  %s307_s30 = scalar_lea.vmem %s790_s2, %s747_s21  ;;  %s318_s6 = scalar_lea.vmem %s791_s3, %s747_s21 }
  0x14   : > { %v337_v1 = vsel %vm332_vm0, %v330_v0, 0  ;;  %v329_v2 = vld [vmem:[%s285_s27] sm:$0x3] }
  0x15   : > { %346 = vmatpush.bf16.xpose.msra.mxu0 %v337_v1  ;;  %v331_v18 = vld [vmem:[%s307_s30] sm:$0x3] }
  0x16   : > { %v365_v14 = vld [vmem:[#allocation2] sm:$0xf]  ;;  %v404_v19 = vsel %vm402_vm4, %v331_v18, 0 }
  0x17   : > { %413 = vmatpush.bf16.msra.mxu1 %v404_v19  ;;  %v382_v28 = vld [vmem:[#allocation3] sm:$0xf] }
  0x19   : > { %v390_v36 = vld [vmem:[#allocation4] sm:$0xf] }
  0x1c   : > { %598 = vmatmul.msk.bf16.vlgmr.msra.gmra.mxu0 %vm332_vm0, %v329_v2 }
  0x99   : > { %v348_v7 = vpop.f32.mrf.mxu0 }
  0x9a   : > { %v352_v8 = vmul.f32 0.25, %v348_v7 }
  0x9c   : > { %v364_v9 = vsel %vm363_vm2, %v352_v8, -1e+30 }
  0x9d   : > { %v367_v10 = vsel %vm366_vm3, %v364_v9, -inf }
  0x9e   : > { %368 = vmax.xlane.f32.xlu0 %v367_v10 }
  0xa1   : > { %v350_v11 = vpop.f32.mrf.mxu0 }
 0x111   : > { %v369_v15 = vpop.xlane.xlu0 %368 }
 0x112   : > { %v370_v16 = vmax.f32 %v365_v14, %v369_v15 }
 0x114   : > { %v371_v17 = vsub.f32 %v365_v14, %v370_v16  ;;  %422 = vst.msk [vmem:[#allocation2] sm:$0xf] %vm324_vm1, %v370_v16  ;;  %376 = vperm.xlu0 %645, %v370_v16  }
 0x116   : > { %v372_v26 = vmul.f32 1.442695, %v371_v17 }
 0x186   : > { %v377_v20 = vpop.permute.xlu0 %376 }
 0x187   : > { %v379_v21 = vsub.f32 %v364_v9, %v377_v20 }
 0x189   : > { %v380_v22 = vmul.f32 1.442695, %v379_v21 }
 0x18b   : > { %648 = vpow2.f32 %v380_v22 }
 0x18c   : > { %650 = vpow2.f32 %v372_v26 }
 0x191   : > { %v649_v23 = vpop.eup %648 }
 0x192   : > { %v384_v24 = vsel %vm366_vm3, %v649_v23, 0.0  ;;  %v397_v25 = vpack.c.bf16 %v649_v23, %v649_v23  ;;  %v651_v27 = vpop.eup %650 }
 0x193   : > { %385 = vadd.xlane.f32.xlu1 %v384_v24  ;;  %v383_v29 = vmul.f32 %v651_v27, %v382_v28 }
 0x194   : > { %599 = vmatmul.msk.bf16.vlgmr.msra.gmra.mxu1 %vm398_vm5, %v397_v25 }
 0x1ac   : > { %393 = vperm.xlu1 %646, %v651_v27  }
 0x206   : > { %v386_v30 = vpop.xlane.xlu1 %385 }
 0x207   : > { %v387_v31 = vadd.f32 %v386_v30, %v383_v29 }
 0x209   : > { %389 = vst.msk [vmem:[#allocation3] sm:$0xf] %vm324_vm1, %v387_v31 }
 0x210   : > { %v426_v32 = vld [vmem:[#allocation3] sm:$0xf] }
 0x211   : > { %v415_v33 = vpop.f32.mrf.mxu1  ;;  %652 = vrcp.f32 %v426_v32 }
 0x217   : > { %v653_v34 = vpop.eup %652 }
 0x218   : > { %431 = vperm.xlu2 %647, %v653_v34  }
 0x219   : > { %v417_v35 = vpop.f32.mrf.mxu1 }
 0x21e   : > { %v394_v37 = vpop.permute.xlu1 %393 }
 0x21f   : > { %v396_v38 = vmul.f32 %v394_v37, %v390_v36 }
 0x221   : > { %v419_v39 = vadd.f32 %v415_v33, %v396_v38 }
 0x223   : > { %421 = vst.msk [vmem:[#allocation4] sm:$0xf] %vm327_vm6, %v419_v39 }
 0x22a   : > { %v428_v40 = vld [vmem:[#allocation4] sm:$0xf] }
 0x272   : > { %v432_v41 = vpop.permute.xlu2 %431 }
 0x273   : > { %v434_v42 = vmul.f32 %v432_v41, %v428_v40 }
 0x275   : > { %v435_v43 = vpack.c.bf16 %v434_v42, %v434_v42 }
 0x277   : > { %437 = vst.msk [vmem:[%s318_s6] sm:$0x3] %vm436_vm7, %v435_v43 }
 0x278 PF: > { %s13_s16 = sadd.s32 1, %s692_s16   ;;  %s792_s12 = smov %s684_s14 }
 0x279   : > { %p10_p7 = scmp.ge.s32.totalorder %s13_s16, 6   ;;  %s793_s13 = smov %s688_s15 }
 0x27a   : > { %s794_s14 = smov %s797_s17  ;;  %s795_s15 = smov %s801_s18 }
 0x27b   :  { %12 = sbr.rel (!%p10_p7) target bundleno = 3 (0x3), region = 76 }

// kernel: gpt2_decoder_forward.23
= control target key start
LH: loop header
LB: loop body
LE: loop exit
PB: predicated region body
PF: predicated region fallthrough
CT: control target
= control target key end

     0   :  { %vm21_vm0 = vcmask 261120   ;;  %v163_v2 = vmov 0.0   ;;  %s228_s1 = inlined_call_operand.vmem [shape: bf16[128,32], index: 1, kind: input, shape index: {}]   ;;  %s229_s2 = inlined_call_operand.vmem [shape: f32[1,32], index: 2, kind: input, shape index: {}]   ;;  %s230_s0 = inlined_call_operand.vmem [shape: bf16[8,128], index: 0, kind: input, shape index: {}]   ;;  %s231_s3 = inlined_call_operand.vmem [shape: f32[8,32], index: 3, kind: input, shape index: {}]   ;;  %s232_s4 = inlined_call_operand.vmem [shape: f32[8,32], index: 4, kind: output, shape index: {}]  }
   0x1   :  { %v160_v0 = vld [vmem:[%s228_s1 + $0x38] sm:$0xff]  ;;  %v159_v1 = vld [vmem:[%s228_s1 + $0x30] sm:$0xff]  ;;  %22 = vst.msk [vmem:[#allocation2] sm:$0xff] %vm21_vm0, %v163_v2  ;;  %v158_v3 = vld [vmem:[%s228_s1 + $0x28] sm:$0xff] }
   0x2   :  { %89 = vmatpush.bf16.msra.mxu0 %v160_v0  ;;  %v157_v4 = vld [vmem:[%s228_s1 + $0x20] sm:$0xff]  ;;  %v156_v5 = vld [vmem:[%s228_s1 + $0x18] sm:$0xff]  ;;  %v155_v6 = vld [vmem:[%s228_s1 + $0x10] sm:$0xff] }
   0x3   :  { %v154_v7 = vld [vmem:[%s228_s1 + $0x8] sm:$0xff]  ;;  %v153_v8 = vld [vmem:[%s228_s1] sm:$0xff] }
   0x4   :  { %v24_v9 = vld [vmem:[%s230_s0] sm:$0xf] }
   0x5   :  { %v162_v13 = vld [vmem:[%s229_s2] ss:$0 sm:$0xff] }
   0x6   :  { %90 = vmatpush.bf16.msra.mxu0 %v159_v1  ;;  %v114_v16 = vld [vmem:[%s231_s3] sm:$0xff] }
   0x8   :  { %v23_v10 = vld [vmem:[#allocation2] sm:$0xff] }
   0xa   :  { %91 = vmatpush.bf16.msra.mxu0 %v158_v3 }
   0xe   :  { %92 = vmatpush.bf16.msra.mxu0 %v157_v4 }
  0x12   :  { %93 = vmatpush.bf16.msra.mxu0 %v156_v5 }
  0x16   :  { %94 = vmatpush.bf16.msra.mxu0 %v155_v6 }
  0x1a   :  { %95 = vmatpush.bf16.msra.mxu0 %v154_v7 }
  0x1e   :  { %96 = vmatpush.bf16.msra.mxu0 %v153_v8 }
  0x21   :  { %97 = vmatmul.bf16.vlgmr.msra.gmra.mxu0 %v24_v9 }
  0x9e   :  { %v98_v11 = vpop.f32.mrf.mxu0 }
  0x9f   :  { %v102_v12 = vadd.f32 %v98_v11, %v23_v10 }
  0xa1   :  { %104 = vst.msk [vmem:[#allocation2] sm:$0xff] %vm21_vm0, %v102_v12 }
  0xa6   :  { %v100_v14 = vpop.f32.mrf.mxu0 }
  0xa8   :  { %v108_v15 = vld [vmem:[#allocation2] sm:$0xff] }
  0xa9   :  { %v113_v17 = vadd.f32 %v162_v13, %v108_v15 }
  0xab   :  { %v115_v18 = vadd.f32 %v114_v16, %v113_v17 }
  0xad   :  { %116 = vst.msk [vmem:[%s232_s4] sm:$0xff] %vm21_vm0, %v115_v18 }

// kernel: gpt2_decoder_forward.35
= control target key start
LH: loop header
LB: loop body
LE: loop exit
PB: predicated region body
PF: predicated region fallthrough
CT: control target
= control target key end

     0   :  { %vm33_vm0 = vcmask 261120   ;;  %v389_v4 = vmov 32.0   ;;  %vm99_vm6 = vcmask 257024   ;;  %vm102_vm9 = vcmask 7168   ;;  %s549_s0 = inlined_call_operand.vmem [shape: f32[16,32], index: 0, kind: input, shape index: {}]   ;;  %s550_s1 = inlined_call_operand.vmem [shape: f32[1,32], index: 1, kind: input, shape index: {}]   ;;  %s551_s2 = inlined_call_operand.vmem [shape: f32[1,32], index: 2, kind: input, shape index: {}]   ;;  %s552_s3 = inlined_call_operand.vmem [shape: bf16[32,128], index: 3, kind: input, shape index: {}]   ;;  %s553_s4 = inlined_call_operand.vmem [shape: s32[16,1], index: 4, kind: input, shape index: {}]   ;;  %s554_s5 = inlined_call_operand.vmem [shape: f32[1,128], index: 5, kind: output, shape index: {}]  }
   0x1   :  { %v31_v0 = vld [vmem:[%s549_s0] sm:$0xff]  ;;  %v32_v2 = vld [vmem:[%s549_s0 + $0x8] sm:$0xff]  ;;  %371 = vrcp.f32 %v389_v4  ;;  %v390_v54 = vmov -inf   ;;  %v391_v57 = vmov 0   ;;  %v392_v58 = vmov 0.0  }
   0x2   :  { %v34_v1 = vsel %vm33_vm0, %v31_v0, 0.0  ;;  %v37_v3 = vsel %vm33_vm0, %v32_v2, 0.0  ;;  %v357_v24 = vld [vmem:[%s552_s3 + $0x8] sm:$0xff]  ;;  %v356_v27 = vld [vmem:[%s552_s3] sm:$0xff]  ;;  %109 = vst.msk [vmem:[#allocation6] sm:$0xff] %vm102_vm9, %v390_v54  ;;  %366 = vset.pattern.permute.xlu0 %v391_v57  ;;  %367 = vset.pattern.permute.xlu1 %v391_v57  ;;  %v157_v59 = vlaneseq }
   0x3   :  { %35 = vadd.xlane.f32.xlu0 %v34_v1  ;;  %146 = vmatpush.bf16.msra.mxu0 %v357_v24  ;;  %v369_v37 = vld [vmem:[%s550_s1] ss:$0 sm:$0xff]  ;;  %103 = vst.msk [vmem:[#allocation3] sm:$0xff] %vm102_vm9, %v390_v54 }
   0x4   :  { %v370_v40 = vld [vmem:[%s551_s2] ss:$0 sm:$0xff]  ;;  %104 = vst.msk [vmem:[#allocation3 + $0x8] sm:$0xff] %vm102_vm9, %v390_v54  ;;  %368 = vset.pattern.permute.xlu2 %v391_v57  ;;  %v470_v62 = vand.u32 127, %v157_v59 }
   0x5   :  { %110 = vst.msk [vmem:[#allocation6 + $0x8] sm:$0xff] %vm102_vm9, %v390_v54 }
   0x6   :  { %111 = vst.msk [vmem:[#allocation7] sm:$0xff] %vm102_vm9, %v391_v57 }
   0x7   :  { %v372_v5 = vpop.eup %371  ;;  %147 = vmatpush.bf16.msra.mxu0 %v356_v27  ;;  %112 = vst.msk [vmem:[#allocation7 + $0x8] sm:$0xff] %vm102_vm9, %v391_v57 }
   0x8   :  { %v41_v6 = vmul.f32 32.0, %v372_v5  ;;  %vm45_vm1 = vweird.f32 %v372_v5  ;;  %105 = vst.msk [vmem:[#allocation4] sm:$0xff] %vm102_vm9, %v392_v58 }
   0x9   :  { %106 = vst.msk [vmem:[#allocation4 + $0x8] sm:$0xff] %vm102_vm9, %v392_v58  ;;  %v466_v60 = vld [vmem:[#allocation6] sm:$0xff] }
   0xa   :  { %v42_v7 = vsub.f32 1.0, %v41_v6  ;;  %107 = vst.msk [vmem:[#allocation5] sm:$0xff] %vm102_vm9, %v392_v58  ;;  %v468_v61 = vld [vmem:[#allocation3] sm:$0xff] }
   0xb   :  { %38 = vadd.xlane.f32.xlu0 %v37_v3  ;;  %108 = vst.msk [vmem:[#allocation5 + $0x8] sm:$0xff] %vm102_vm9, %v392_v58 }
   0xc   :  { %v43_v8 = vmul.f32 %v372_v5, %v42_v7  ;;  %v486_v6 = vld [vmem:[#allocation6 + $0x8] sm:$0xff]  ;;  %v166_v7 = vld [vmem:[#allocation3 + $0x8] sm:$0xff]  ;;  %27 = vst [vmem:[%s554_s5] sm:$0x1] %v392_v58 }
   0xe   :  { %v44_v9 = vadd.f32 %v372_v5, %v43_v8 }
  0x10   :  { %v46_v10 = vsel %vm45_vm1, %v372_v5, %v44_v9 }
  0x76   :  { %v36_v11 = vpop.xlane.xlu0 %35 }
  0x77   :  { %v47_v12 = vmul.f32 %v46_v10, %v36_v11 }
  0x79   :  { %v49_v13 = vsub.f32 %v31_v0, %v47_v12 }
  0x7b   :  { %v51_v14 = vmul.f32 %v49_v13, %v49_v13 }
  0x7d   :  { %v53_v15 = vsel %vm33_vm0, %v51_v14, 0.0 }
  0x7e   :  { %54 = vadd.xlane.f32.xlu1 %v53_v15  ;;  %v39_v16 = vpop.xlane.xlu0 %38  ;;  %v501_v15 = vld [vmem:[%s553_s4 + $0x8] sm:$0xff] }
  0x7f   :  { %v48_v17 = vmul.f32 %v46_v10, %v39_v16  ;;  %v507_v16 = vld [vmem:[%s553_s4] sm:$0xff] }
  0x81   :  { %v50_v18 = vsub.f32 %v32_v2, %v48_v17 }
  0x83   :  { %v52_v19 = vmul.f32 %v50_v18, %v50_v18 }
  0x85   :  { %v56_v20 = vsel %vm33_vm0, %v52_v19, 0.0 }
  0x86   :  { %57 = vadd.xlane.f32.xlu1 %v56_v20 }
  0xf1   :  { %v55_v21 = vpop.xlane.xlu1 %54 }
  0xf2   :  { %v59_v22 = vmul.f32 %v55_v21, %v46_v10 }
  0xf4   :  { %v61_v23 = vadd.f32 1e-05, %v59_v22 }
  0xf6   :  { %373 = vrsqrt.f32 %v61_v23  ;;  %vm69_vm3 = vweird.f32 %v61_v23 }
  0xf9   :  { %v58_v25 = vpop.xlane.xlu1 %57 }
  0xfa   :  { %v60_v26 = vmul.f32 %v58_v25, %v46_v10 }
  0xfc   :  { %v374_v28 = vpop.eup %373  ;;  %v62_v29 = vadd.f32 1e-05, %v60_v26 }
  0xfd   :  { %v64_v30 = vmul.f32 %v374_v28, %v61_v23  ;;  %vm70_vm2 = vweird.f32 %v374_v28 }
  0xfe   :  { %375 = vrsqrt.f32 %v62_v29  ;;  %vm71_vm4 = vmor %vm69_vm3, %vm70_vm2  ;;  %vm79_vm7 = vweird.f32 %v62_v29 }
  0xff   :  { %v65_v31 = vmul.f32 %v374_v28, %v64_v30 }
 0x101   :  { %v66_v32 = vmul.f32 0.5, %v65_v31 }
 0x103   :  { %v67_v33 = vsub.f32 1.5, %v66_v32 }
 0x104   :  { %v376_v34 = vpop.eup %375 }
 0x105   :  { %v68_v35 = vmul.f32 %v374_v28, %v67_v33  ;;  %v74_v36 = vmul.f32 %v376_v34, %v62_v29  ;;  %vm80_vm5 = vweird.f32 %v376_v34 }
 0x106   :  { %vm81_vm8 = vmor %vm79_vm7, %vm80_vm5  ;;  %vm288_vm5 = vcmp.ne.s32.totalorder %v501_v15, 4294967295  ;;  %vm303_vm7 = vcmp.eq.s32.totalorder %v470_v62, 0 }
 0x107   :  { %v72_v38 = vsel %vm71_vm4, %v374_v28, %v68_v35  ;;  %v75_v39 = vmul.f32 %v376_v34, %v74_v36  ;;  %vm287_vm4 = vcmp.ne.s32.totalorder %v507_v16, 4294967295 }
 0x108   :  { %v83_v41 = vmul.f32 %v72_v38, %v49_v13 }
 0x109   :  { %v76_v42 = vmul.f32 0.5, %v75_v39 }
 0x10a   :  { %v89_v43 = vmul.f32 %v369_v37, %v83_v41 }
 0x10b   :  { %v77_v44 = vsub.f32 1.5, %v76_v42  ;;  %v169_v42 = vld [vmem:[#allocation4] sm:$0xff] }
 0x10c   :  { %v95_v45 = vadd.f32 %v370_v40, %v89_v43 }
 0x10d   :  { %v78_v46 = vmul.f32 %v376_v34, %v77_v44 }
 0x10e   :  { %v97_v47 = vpack.c.bf16 %v95_v45, %v95_v45  ;;  %v262_v45 = vld [vmem:[#allocation7] sm:$0xff] }
 0x10f   :  { %v82_v48 = vsel %vm81_vm8, %v376_v34, %v78_v46 }
 0x110   :  { %100 = vst.msk [vmem:[#allocation2] sm:$0xf] %vm99_vm6, %v97_v47  ;;  %v84_v49 = vmul.f32 %v82_v48, %v50_v18 }
 0x112   :  { %v90_v50 = vmul.f32 %v369_v37, %v84_v49 }
 0x114   :  { %v96_v51 = vadd.f32 %v370_v40, %v90_v50 }
 0x116   :  { %v98_v52 = vpack.c.bf16 %v96_v51, %v96_v51 }
 0x118   :  { %101 = vst.msk [vmem:[#allocation2 + $0x4] sm:$0xf] %vm99_vm6, %v98_v52  ;;  %v170_v52 = vld [vmem:[#allocation4 + $0x8] sm:$0xff]  ;;  %vm316_vm6 = vcmp.eq.s32.totalorder %v470_v62, 1 }
 0x11f   :  { %v355_v53 = vld [vmem:[#allocation2] sm:$0xff] }
 0x120   :  { %352 = vmatmul.msk.bf16.vlgmr.msra.gmra.mxu0 %vm33_vm0, %v355_v53 }
 0x19d   :  { %v450_v55 = vpop.f32.mrf.mxu0 }
 0x19e   :  { %161 = vmax.xlane.f32.xlu2 %v450_v55 }
 0x1a5   :  { %v453_v56 = vpop.f32.mrf.mxu0 }
 0x1a6   :  { %163 = vmax.xlane.f32.xlu2 %v453_v56 }
 0x211   :  { %v472_v63 = vpop.xlane.xlu2 %161 }
 0x212   :  { %vm260_vm10 = vcmp.gt.f32.partialorder %v472_v63, %v466_v60  ;;  %v270_v0 = vmax.f32 %v466_v60, %v472_v63  ;;  %v167_v1 = vmax.f32 %v468_v61, %v472_v63  ;;  %vm226_vm11 = vcmp.eq.f32.partialorder %v450_v55, %v472_v63 }
 0x213   :  { %v228_v2 = vsel %vm226_vm11, %v470_v62, 1073741824 }
 0x214   :  { %272 = vst.msk [vmem:[#allocation6] sm:$0xff] %vm102_vm9, %v270_v0  ;;  %181 = vperm.xlu0 %366, %v167_v1   ;;  %v171_v3 = vsub.f32 %v468_v61, %v167_v1  ;;  %v231_v4 = vshra.s32 %v228_v2, 16  ;;  %v230_v19 = vand.u32 65535, %v228_v2  ;;  %v263_v0 = vld [vmem:[#allocation7 + $0x8] sm:$0xff] }
 0x215   :  { %204 = vst.msk [vmem:[#allocation3] sm:$0xff] %vm102_vm9, %v167_v1  ;;  %v206_v1 = vld [vmem:[#allocation5] sm:$0xff] }
 0x216   :  { %v233_v5 = vcvt.s32.f32 %v231_v4  ;;  %v232_v22 = vcvt.s32.f32 %v230_v19  ;;  %v173_v37 = vmul.f32 1.442695, %v171_v3 }
 0x218   :  { %234 = vmin.xlane.f32.xlu2 %v233_v5 }
 0x219   :  { %v488_v8 = vpop.xlane.xlu2 %163 }
 0x21a   :  { %v271_v9 = vmax.f32 %v486_v6, %v488_v8  ;;  %v168_v10 = vmax.f32 %v166_v7, %v488_v8  ;;  %vm227_vm12 = vcmp.eq.f32.partialorder %v453_v56, %v488_v8  ;;  %vm261_vm1 = vcmp.gt.f32.partialorder %v488_v8, %v486_v6 }
 0x21b   :  { %v229_v11 = vsel %vm227_vm12, %v470_v62, 1073741824 }
 0x21c   :  { %273 = vst.msk [vmem:[#allocation6 + $0x8] sm:$0xff] %vm102_vm9, %v271_v9  ;;  %186 = vperm.xlu1 %367, %v168_v10   ;;  %v172_v12 = vsub.f32 %v166_v7, %v168_v10  ;;  %v245_v13 = vshra.s32 %v229_v11, 16  ;;  %v244_v29 = vand.u32 65535, %v229_v11 }
 0x21d   :  { %205 = vst.msk [vmem:[#allocation3 + $0x8] sm:$0xff] %vm102_vm9, %v168_v10 }
 0x21e   :  { %v247_v14 = vcvt.s32.f32 %v245_v13  ;;  %v246_v30 = vcvt.s32.f32 %v244_v29  ;;  %v175_v39 = vmul.f32 1.442695, %v172_v12 }
 0x220   :  { %248 = vmin.xlane.f32.xlu2 %v247_v14 }
 0x224   :  { %212 = vperm.xlu1 %367, %v501_v15  }
 0x238   :  { %209 = vperm.xlu2 %368, %v507_v16  }
 0x286   :  { %v182_v17 = vpop.permute.xlu0 %181 }
 0x287   :  { %v189_v18 = vsub.f32 %v450_v55, %v182_v17 }
 0x289   :  { %v191_v20 = vmul.f32 1.442695, %v189_v18 }
 0x28b   :  { %377 = vpow2.f32 %v191_v20  ;;  %v235_v21 = vpop.xlane.xlu2 %234 }
 0x28c   :  { %vm236_vm13 = vcmp.eq.f32.partialorder %v233_v5, %v235_v21  ;;  %v241_v38 = vcvt.f32.s32 %v235_v21  ;;  %v207_v5 = vld [vmem:[#allocation5 + $0x8] sm:$0xff] }
 0x28d   :  { %v237_v23 = vsel %vm236_vm13, %v232_v22, inf }
 0x28e   :  { %v187_v24 = vpop.permute.xlu1 %186  ;;  %238 = vmin.xlane.f32.xlu2 %v237_v23  ;;  %v242_v43 = vshll.u32 %v241_v38, 16 }
 0x28f   :  { %v190_v25 = vsub.f32 %v453_v56, %v187_v24 }
 0x291   :  { %v378_v26 = vpop.eup %377  ;;  %v193_v27 = vmul.f32 1.442695, %v190_v25 }
 0x292   :  { %195 = vadd.xlane.f32.xlu1 %v378_v26  ;;  %v278_v26 = vld [vmem:[#allocation3 + $0x8] sm:$0xff] }
 0x293   :  { %379 = vpow2.f32 %v193_v27  ;;  %v249_v28 = vpop.xlane.xlu2 %248 }
 0x294   :  { %vm250_vm14 = vcmp.eq.f32.partialorder %v247_v14, %v249_v28  ;;  %381 = vpow2.f32 %v173_v37  ;;  %v255_v53 = vcvt.f32.s32 %v249_v28  ;;  %v277_v14 = vld [vmem:[#allocation3] sm:$0xff] }
 0x295   :  { %v251_v32 = vsel %vm250_vm14, %v246_v30, inf  ;;  %383 = vpow2.f32 %v175_v39 }
 0x296   :  { %v213_v33 = vpop.permute.xlu1 %212  ;;  %v256_v57 = vshll.u32 %v255_v53, 16 }
 0x297   :  { %vm215_vm0 = vcmp.eq.s32.totalorder %v470_v62, %v213_v33 }
 0x298   :  { %v217_v36 = vsel %vm215_vm0, %v453_v56, 0.0 }
 0x299   :  { %v380_v31 = vpop.eup %379 }
 0x29a   :  { %197 = vadd.xlane.f32.xlu0 %v380_v31  ;;  %252 = vmin.xlane.f32.xlu1 %v251_v32  ;;  %v382_v40 = vpop.eup %381 }
 0x29b   :  { %v210_v34 = vpop.permute.xlu2 %209  ;;  %v177_v47 = vmul.f32 %v382_v40, %v169_v42  ;;  %v384_v51 = vpop.eup %383 }
 0x29c   :  { %vm214_vm15 = vcmp.eq.s32.totalorder %v470_v62, %v210_v34  ;;  %v178_v54 = vmul.f32 %v384_v51, %v170_v52 }
 0x29d   :  { %v216_v35 = vsel %vm214_vm15, %v450_v55, 0.0 }
 0x29e   :  { %218 = vadd.xlane.f32.xlu2 %v216_v35 }
 0x2a2   :  { %220 = vadd.xlane.f32.xlu0 %v217_v36 }
 0x301   :  { %v239_v41 = vpop.xlane.xlu2 %238 }
 0x302   :  { %v240_v44 = vcvt.f32.s32 %v239_v41 }
 0x304   :  { %v243_v46 = vadd.s32 %v242_v43, %v240_v44 }
 0x305   :  { %v196_v48 = vpop.xlane.xlu1 %195 }
 0x306   :  { %v264_v49 = vsel %vm260_vm10, %v243_v46, %v262_v45  ;;  %v199_v50 = vadd.f32 %v196_v48, %v177_v47  ;;  %v333_v48 = vld [vmem:[%s554_s5] sm:$0x1] }
 0x307   :  { %266 = vst.msk [vmem:[#allocation7] sm:$0xff] %vm102_vm9, %v264_v49 }
 0x308   :  { %202 = vst.msk [vmem:[#allocation4] sm:$0xff] %vm102_vm9, %v199_v50 }
 0x30d   :  { %v198_v55 = vpop.xlane.xlu0 %197  ;;  %v253_v56 = vpop.xlane.xlu1 %252 }
 0x30e   :  { %v200_v59 = vadd.f32 %v198_v55, %v178_v54  ;;  %v254_v61 = vcvt.f32.s32 %v253_v56  ;;  %v295_v7 = vld [vmem:[#allocation7] sm:$0xff] }
 0x30f   :  { %v279_v2 = vld [vmem:[#allocation4] sm:$0xff]  ;;  %vm297_vm2 = vcmp.eq.s32.totalorder %v295_v7, %v507_v16 }
 0x310   :  { %203 = vst.msk [vmem:[#allocation4 + $0x8] sm:$0xff] %vm102_vm9, %v200_v59  ;;  %v257_v60 = vadd.s32 %v256_v57, %v254_v61  ;;  %385 = vlog2.f32 %v279_v2  ;;  %v353_v8 = vsel %vm297_vm2, 1.0, %v392_v58 }
 0x311   :  { %v219_v63 = vpop.xlane.xlu2 %218  ;;  %v317_v20 = vsel %vm102_vm9, %v353_v8, 0.0 }
 0x312   :  { %v265_v3 = vsel %vm261_vm1, %v257_v60, %v263_v0  ;;  %v222_v4 = vadd.f32 %v219_v63, %v206_v1 }
 0x313   :  { %267 = vst.msk [vmem:[#allocation7 + $0x8] sm:$0xff] %vm102_vm9, %v265_v3 }
 0x314   :  { %224 = vst.msk [vmem:[#allocation5] sm:$0xff] %vm102_vm9, %v222_v4 }
 0x315   :  { %v221_v9 = vpop.xlane.xlu0 %220 }
 0x316   :  { %v386_v10 = vpop.eup %385  ;;  %v223_v11 = vadd.f32 %v221_v9, %v207_v5 }
 0x317   :  { %v280_v12 = vld [vmem:[#allocation4 + $0x8] sm:$0xff]  ;;  %v282_v13 = vmul.f32 0.6931472, %v386_v10 }
 0x318   :  { %225 = vst.msk [vmem:[#allocation5 + $0x8] sm:$0xff] %vm102_vm9, %v223_v11  ;;  %387 = vlog2.f32 %v280_v12 }
 0x319   :  { %v285_v17 = vadd.f32 %v282_v13, %v277_v14 }
 0x31a   :  { %v296_v6 = vld [vmem:[#allocation7 + $0x8] sm:$0xff] }
 0x31b   :  { %vm298_vm3 = vcmp.eq.s32.totalorder %v296_v6, %v501_v15  ;;  %v289_v19 = vld [vmem:[#allocation5] sm:$0xff] }
 0x31c   :  { %v354_v18 = vsel %vm298_vm3, 1.0, %v392_v58  ;;  %v291_v25 = vsub.f32 %v285_v17, %v289_v19 }
 0x31d   :  { %v318_v21 = vsel %vm102_vm9, %v354_v18, 0.0 }
 0x31e   :  { %v388_v22 = vpop.eup %387  ;;  %v319_v23 = vadd.f32 %v318_v21, %v317_v20  ;;  %v293_v30 = vsel %vm287_vm4, %v291_v25, 0.0 }
 0x31f   :  { %v284_v24 = vmul.f32 0.6931472, %v388_v22  ;;  %v290_v28 = vld [vmem:[#allocation5 + $0x8] sm:$0xff]  ;;  %v304_v32 = vsel %vm102_vm9, %v293_v30, 0.0 }
 0x320   :  { %320 = vadd.xlane.f32.xlu2 %v319_v23 }
 0x321   :  { %v286_v27 = vadd.f32 %v284_v24, %v278_v26 }
 0x323   :  { %v292_v29 = vsub.f32 %v286_v27, %v290_v28 }
 0x325   :  { %v294_v31 = vsel %vm288_vm5, %v292_v29, 0.0 }
 0x326   :  { %v305_v33 = vsel %vm102_vm9, %v294_v31, 0.0 }
 0x327   :  { %v306_v34 = vadd.f32 %v305_v33, %v304_v32 }
 0x329   :  { %307 = vadd.xlane.f32.xlu1 %v306_v34 }
 0x393   :  { %v321_v16 = vpop.xlane.xlu2 %320 }
 0x394   :  { %v322_v35 = vrot.slane %v321_v16, 4 }
 0x396   :  { %v323_v36 = vadd.f32 %v322_v35, %v321_v16 }
 0x398   :  { %v324_v37 = vrot.slane %v323_v36, 2 }
 0x39a   :  { %v325_v40 = vadd.f32 %v324_v37, %v323_v36 }
 0x39c   :  { %v308_v15 = vpop.xlane.xlu1 %307  ;;  %v326_v43 = vrot.slane %v325_v40, 1 }
 0x39d   :  { %v309_v38 = vrot.slane %v308_v15, 4 }
 0x39e   :  { %v327_v46 = vadd.f32 %v326_v43, %v325_v40 }
 0x39f   :  { %v310_v39 = vadd.f32 %v309_v38, %v308_v15 }
 0x3a1   :  { %v311_v41 = vrot.slane %v310_v39, 2 }
 0x3a3   :  { %v312_v42 = vadd.f32 %v311_v41, %v310_v39 }
 0x3a5   :  { %v313_v44 = vrot.slane %v312_v42, 1 }
 0x3a7   :  { %v314_v45 = vadd.f32 %v313_v44, %v312_v42 }
 0x3a9   :  { %358 = vpush %v314_v45 }
 0x3aa   :  { %360 = vpush %v327_v46 }
 0x3da   :  { %s359_s6 = spop %358 }
 0x3db   :  { %v331_v58 = vstv %s359_s6  ;;  %s361_s7 = spop %360 }
 0x3dc   :  { %v329_v47 = vstv %s361_s7 }
 0x3dd   :  { %v330_v49 = vsel %vm316_vm6, %v329_v47, 0.0 }
 0x3de   :  { %v332_v50 = vsel %vm303_vm7, %v331_v58, %v330_v49 }
 0x3df   :  { %v334_v51 = vadd.f32 %v333_v48, %v332_v50 }
 0x3e1   :  { %335 = vst [vmem:[%s554_s5] sm:$0x1] %v334_v51 }

</bundles_post_ra>
